<compile_context>
chip_gen: v6e
topology: v6e:2x2x1
jax: 0.10.0
libtpu: 0.0.40
codegen_flags: <defaults>
</compile_context>

<pallas_src>
import functools

import jax
import jax.numpy as jnp
import numpy as np
from jax.experimental import pallas as pl
from jax.experimental.pallas import tpu as pltpu

BN_EPS = 1e-5


def _conv_stats_kernel(x_ref, w_ref, y_ref, stats_ref, *, kh, kw, dilation,
                       tr, wo, cin_p, cout):
    """Direct dilated conv for one (image, output-row-band) + per-band BN partials.

    x_ref:     (1, Cin_p, Hp, Wp)   full padded image (resident across row bands)
    w_ref:     (KH*KW, Cout, Cin_p) per-tap weight slabs
    y_ref:     (1, Cout, TR*Wo)     raw conv output (f32, lane-dense)
    stats_ref: (1, 1, Cout, 2)      per-band per-channel [sum, M2]
    """
    row0 = pl.program_id(1) * tr
    m = tr * wo
    acc = jnp.zeros((cout, m), dtype=jnp.float32)
    for i in range(kh):
        # One sublane-sliced load per kernel row; lane slicing per tap is static.
        rows = x_ref[0, :, pl.ds(row0 + i * dilation, tr), :]       # (Cin_p, TR, Wp)
        for j in range(kw):
            tap = rows[:, :, j * dilation:j * dilation + wo]        # (Cin_p, TR, Wo)
            tap = tap.reshape(cin_p, m)
            acc = acc + jnp.dot(w_ref[i * kw + j], tap,
                                preferred_element_type=jnp.float32)
    y_ref[0] = acc.astype(y_ref.dtype)

    # Welford-style per-band partials in f32 (sum and sum of squared deviations
    # from the band mean) — merged exactly in the wrapper.
    s = jnp.sum(acc, axis=1, keepdims=True)                          # (Cout, 1)
    dev = acc - s * (1.0 / m)
    m2 = jnp.sum(dev * dev, axis=1, keepdims=True)                   # (Cout, 1)
    stats_ref[0, 0] = jnp.concatenate([s, m2], axis=1)               # single store


def _bn_relu_kernel(y_ref, scale_ref, shift_ref, o_ref):
    """Pass 2: out = relu(y * scale + shift); scale/shift fold mean/var/gamma/beta."""
    o_ref[0] = jnp.maximum(
        y_ref[0] * scale_ref[...] + shift_ref[...], 0.0
    ).astype(o_ref.dtype)


def _pick_row_tile(ho, wo, n, cin_p, cout, esize):
    """Largest row-band TR (divisor of Ho) with a 128-multiple lane width TR*Wo
    and a modest per-band working set; falls back to the full-extent block."""
    budget = 4 << 20  # per-band f32 working set target (acc + tap copies + y block)

    def ws(d):
        return (cin_p * esize + 3 * cout * 4) * d * wo

    cands = [d for d in range(ho, 0, -1)
             if ho % d == 0 and (d * wo) % 128 == 0 and ws(d) <= budget]
    if not cands:
        return ho  # full-extent output block (always legal)
    tr = cands[0]
    if n == 1 and any(d < ho for d in cands):
        # keep >= 2 grid points so both v7x TensorCores get work
        tr = next(d for d in cands if d < ho)
    return tr


@functools.partial(
    jax.jit, static_argnames=("kernel_size", "dilation", "padding", "use_bf16"))
def aspp_forward(x, weight, gamma, beta, *, kernel_size, dilation, padding,
                 use_bf16=False):
    """x: (N, Cin, H, W) NCHW; weight: (Cout, Cin, KH, KW); gamma/beta: (Cout,)."""
    N, Cin, H, W = x.shape
    Cout = weight.shape[0]
    kh = kw = kernel_size

    Hp, Wp = H + 2 * padding, W + 2 * padding
    Ho = Hp - dilation * (kh - 1)
    Wo = Wp - dilation * (kw - 1)
    assert Ho > 0 and Wo > 0, "output spatial size must be positive"
    M = Ho * Wo

    mm_dtype = jnp.bfloat16 if use_bf16 else jnp.float32
    esize = jnp.dtype(mm_dtype).itemsize

    # Zero-pad spatially (conv padding) and pad Cin to a sublane multiple; zero
    # channels contribute nothing to the conv or the stats.
    Cin_p = ((Cin + 7) // 8) * 8
    xpad = jnp.pad(
        x.astype(mm_dtype),
        ((0, 0), (0, Cin_p - Cin), (padding, padding), (padding, padding)))

    # Per-tap weight slabs (KH*KW, Cout, Cin_p), tap-major to match the kernel loop.
    w_taps = jnp.transpose(weight.astype(jnp.float32),
                           (2, 3, 0, 1)).reshape(kh * kw, Cout, Cin)
    if Cin_p != Cin:
        w_taps = jnp.pad(w_taps, ((0, 0), (0, 0), (0, Cin_p - Cin)))
    w_taps = w_taps.astype(mm_dtype)

    TR = _pick_row_tile(Ho, Wo, N, Cin_p, Cout, esize)
    nR = Ho // TR
    TM = TR * Wo

    # Explicit scoped-VMEM budget: double-buffered blocks + weights + working set.
    blk_in = Cin_p * Hp * Wp * esize
    blk_y = Cout * TM * 4
    work = (Cin_p * esize + 3 * Cout * 4) * TM
    est = 2 * (blk_in + blk_y + Cout * 2 * 4) + kh * kw * Cout * Cin_p * esize + 2 * work
    vmem_limit = int(min(max(2 * est, 16 << 20), 48 << 20))
    cparams = pltpu.CompilerParams(
        dimension_semantics=("parallel", "parallel"),
        vmem_limit_bytes=vmem_limit,
    )

    conv_kernel = functools.partial(
        _conv_stats_kernel, kh=kh, kw=kw, dilation=dilation,
        tr=TR, wo=Wo, cin_p=Cin_p, cout=Cout)

    conv_cost = pl.CostEstimate(
        flops=2 * N * Cout * Cin_p * kh * kw * M + 4 * N * Cout * M,
        transcendentals=0,
        bytes_accessed=int(xpad.size * esize + w_taps.size * esize
                           + N * Cout * M * 4 + N * nR * Cout * 2 * 4),
    )

    # ---- Pass 1: direct dilated conv (tap-accumulated matmuls) + BN partials ----
    y, stats = pl.pallas_call(
        conv_kernel,
        grid=(N, nR),
        out_shape=(jax.ShapeDtypeStruct((N, Cout, M), jnp.float32),
                   jax.ShapeDtypeStruct((N, nR, Cout, 2), jnp.float32)),
        in_specs=[
            # Full padded image per n; block index ignores r, so the tile is
            # fetched from HBM once per image and stays resident across bands.
            pl.BlockSpec((1, Cin_p, Hp, Wp), lambda n, r: (n, 0, 0, 0)),
            pl.BlockSpec((kh * kw, Cout, Cin_p), lambda n, r: (0, 0, 0)),
        ],
        out_specs=(
            pl.BlockSpec((1, Cout, TM), lambda n, r: (n, 0, r)),
            pl.BlockSpec((1, 1, Cout, 2), lambda n, r: (n, r, 0, 0)),
        ),
        compiler_params=cparams,
        cost_estimate=conv_cost,
    )(xpad, w_taps)

    # ---- BatchNorm2d (training-mode) stats: exact Welford merge of per-band
    # (sum, M2) partials -> per-channel scale / shift (tiny, f32). ----
    cnt_band = float(TM)
    total = float(N * M)
    sums = stats[..., 0]                                   # (N, nR, Cout)
    m2s = stats[..., 1]
    mean = jnp.sum(sums, axis=(0, 1)) / total              # (Cout,)
    band_mean = sums / cnt_band
    m2_total = jnp.sum(m2s, axis=(0, 1)) + cnt_band * jnp.sum(
        (band_mean - mean) ** 2, axis=(0, 1))
    var = jnp.maximum(m2_total / total, 0.0)               # biased var (BN train)
    inv_std = jax.lax.rsqrt(var + BN_EPS)
    g32 = gamma.astype(jnp.float32)
    b32 = beta.astype(jnp.float32)
    scale = (g32 * inv_std).reshape(Cout, 1)
    shift = (b32 - mean * g32 * inv_std).reshape(Cout, 1)

    bn_cost = pl.CostEstimate(
        flops=3 * N * Cout * M, transcendentals=0,
        bytes_accessed=int(2 * N * Cout * M * 4 + 2 * Cout * 4),
    )

    # ---- Pass 2: apply BN + ReLU, lane-dense, output aliased onto y ----
    out = pl.pallas_call(
        _bn_relu_kernel,
        grid=(N, nR),
        out_shape=jax.ShapeDtypeStruct((N, Cout, M), jnp.float32),
        in_specs=[
            pl.BlockSpec((1, Cout, TM), lambda n, r: (n, 0, r)),
            pl.BlockSpec((Cout, 1), lambda n, r: (0, 0)),
            pl.BlockSpec((Cout, 1), lambda n, r: (0, 0)),
        ],
        out_specs=pl.BlockSpec((1, Cout, TM), lambda n, r: (n, 0, r)),
        compiler_params=cparams,
        cost_estimate=bn_cost,
        input_output_aliases={0: 0},   # overwrite the y buffer in place
    )(y, scale, shift)

    # (N, Cout, Ho*Wo) -> NCHW is a pure reshape (no transpose).
    return out.reshape(N, Cout, Ho, Wo)


def _reference(x, weight, gamma, beta, *, kernel_size, dilation, padding):
    """Plain-JAX reference matching PyTorch Conv2d + BatchNorm2d(train) + ReLU."""
    y = jax.lax.conv_general_dilated(
        x.astype(jnp.float32), weight.astype(jnp.float32),
        window_strides=(1, 1),
        padding=[(padding, padding), (padding, padding)],
        rhs_dilation=(dilation, dilation),
        dimension_numbers=("NCHW", "OIHW", "NCHW"),
    )
    mean = jnp.mean(y, axis=(0, 2, 3), keepdims=True)
    var = jnp.mean((y - mean) ** 2, axis=(0, 2, 3), keepdims=True)
    yn = (y - mean) * jax.lax.rsqrt(var + BN_EPS)
    yn = yn * gamma.reshape(1, -1, 1, 1) + beta.reshape(1, -1, 1, 1)
    return jnp.maximum(yn, 0.0)


if __name__ == "__main__":
    # ASPP_module(in_channels=4, out_channels=8, kernel_size=3, dilation_rate=2, padding=2)
    N, Cin, H, W = 2, 4, 16, 16
    Cout, ks, dil, pad = 8, 3, 2, 2

    key = jax.random.PRNGKey(0)
    kx, kw_, kg, kb = jax.random.split(key, 4)

    x = jax.random.normal(kx, (N, Cin, H, W), dtype=jnp.float32)
    # Conv2d has bias=False; BN affine params.
    fan_in = Cin * ks * ks
    bound = 1.0 / np.sqrt(fan_in)
    weight = jax.random.uniform(kw_, (Cout, Cin, ks, ks), jnp.float32, -bound, bound)
    gamma = 1.0 + 0.1 * jax.random.normal(kg, (Cout,), dtype=jnp.float32)
    beta = 0.1 * jax.random.normal(kb, (Cout,), dtype=jnp.float32)

    out = aspp_forward(x, weight, gamma, beta, kernel_size=ks, dilation=dil, padding=pad)
    out = jax.block_until_ready(out)

    ref = jax.block_until_ready(
        _reference(x, weight, gamma, beta, kernel_size=ks, dilation=dil, padding=pad))
    assert out.shape == (N, Cout, H, W), out.shape
    err = np.max(np.abs(np.asarray(out) - np.asarray(ref)))
    assert np.allclose(np.asarray(out), np.asarray(ref), atol=1e-4, rtol=1e-4), err

    print("KERNEL_OK")
</pallas_src>

<mosaic_0001>
module attributes {stable_mosaic.version = 11 : i64} {
  func.func @_conv_stats_kernel(%arg0: i32, %arg1: i32, %arg2: memref<1x8x20x20xf32, #tpu.memory_space<vmem>>, %arg3: memref<9x8x8xf32, #tpu.memory_space<vmem>>, %arg4: memref<1x8x256xf32, #tpu.memory_space<vmem>>, %arg5: memref<1x1x8x2xf32, #tpu.memory_space<vmem>>) attributes {dimension_semantics = [#tpu.dimension_semantics<parallel>, #tpu.dimension_semantics<parallel>], iteration_bounds = array<i64: 2, 1>, scalar_prefetch = 0 : i64, scratch_operands = 0 : i64, tpu.core_type = #tpu.core_type<tc>, window_params = [{transform_indices = @transform_0, window_bounds = array<i64: 1, 8, 20, 20>}, {pipeline_mode = #tpu.pipeline_mode<synchronous>, transform_indices = @transform_1, window_bounds = array<i64: 9, 8, 8>}, {transform_indices = @transform_2, window_bounds = array<i64: 1, 8, 256>}, {transform_indices = @transform_3, window_bounds = array<i64: 1, 1, 8, 2>}]} {
    %c16_i32 = arith.constant 16 : i32
    %0 = arith.muli %arg1, %c16_i32 : i32
    %cst = arith.constant 0.000000e+00 : f32
    %1 = vector.broadcast %cst : f32 to vector<8x256xf32>
    %c0_i32 = arith.constant 0 : i32
    %2 = arith.addi %0, %c0_i32 : i32
    %c0 = arith.constant 0 : index
    %c0_0 = arith.constant 0 : index
    %3 = arith.index_cast %2 : i32 to index
    %c0_1 = arith.constant 0 : index
    %4 = vector.load %arg2[%c0, %c0_0, %3, %c0_1] : memref<1x8x20x20xf32, #tpu.memory_space<vmem>>, vector<1x8x16x20xf32>
    %5 = vector.shape_cast %4 : vector<1x8x16x20xf32> to vector<8x16x20xf32>
    %6 = vector.extract_strided_slice %5 {offsets = [0, 0, 0], sizes = [8, 16, 16], strides = [1, 1, 1]} : vector<8x16x20xf32> to vector<8x16x16xf32>
    %7 = vector.shape_cast %6 : vector<8x16x16xf32> to vector<8x256xf32>
    %c0_2 = arith.constant 0 : index
    %c0_3 = arith.constant 0 : index
    %c0_4 = arith.constant 0 : index
    %8 = vector.load %arg3[%c0_2, %c0_3, %c0_4] : memref<9x8x8xf32, #tpu.memory_space<vmem>>, vector<1x8x8xf32>
    %9 = vector.shape_cast %8 : vector<1x8x8xf32> to vector<8x8xf32>
    %cst_5 = arith.constant dense<0.000000e+00> : vector<8x256xf32>
    %10 = tpu.matmul %9, %7, %cst_5 {dimension_numbers = #tpu.dot_dimension_numbers<[1], [0], [0], [1], [0, 0, 1, 1], [], []>} : vector<8x8xf32>, vector<8x256xf32>, vector<8x256xf32> -> vector<8x256xf32>
    %11 = arith.addf %1, %10 : vector<8x256xf32>
    %12 = vector.extract_strided_slice %5 {offsets = [0, 0, 2], sizes = [8, 16, 16], strides = [1, 1, 1]} : vector<8x16x20xf32> to vector<8x16x16xf32>
    %13 = vector.shape_cast %12 : vector<8x16x16xf32> to vector<8x256xf32>
    %c1 = arith.constant 1 : index
    %c0_6 = arith.constant 0 : index
    %c0_7 = arith.constant 0 : index
    %14 = vector.load %arg3[%c1, %c0_6, %c0_7] : memref<9x8x8xf32, #tpu.memory_space<vmem>>, vector<1x8x8xf32>
    %15 = vector.shape_cast %14 : vector<1x8x8xf32> to vector<8x8xf32>
    %cst_8 = arith.constant dense<0.000000e+00> : vector<8x256xf32>
    %16 = tpu.matmul %15, %13, %cst_8 {dimension_numbers = #tpu.dot_dimension_numbers<[1], [0], [0], [1], [0, 0, 1, 1], [], []>} : vector<8x8xf32>, vector<8x256xf32>, vector<8x256xf32> -> vector<8x256xf32>
    %17 = arith.addf %11, %16 : vector<8x256xf32>
    %18 = vector.extract_strided_slice %5 {offsets = [0, 0, 4], sizes = [8, 16, 16], strides = [1, 1, 1]} : vector<8x16x20xf32> to vector<8x16x16xf32>
    %19 = vector.shape_cast %18 : vector<8x16x16xf32> to vector<8x256xf32>
    %c2 = arith.constant 2 : index
    %c0_9 = arith.constant 0 : index
    %c0_10 = arith.constant 0 : index
    %20 = vector.load %arg3[%c2, %c0_9, %c0_10] : memref<9x8x8xf32, #tpu.memory_space<vmem>>, vector<1x8x8xf32>
    %21 = vector.shape_cast %20 : vector<1x8x8xf32> to vector<8x8xf32>
    %cst_11 = arith.constant dense<0.000000e+00> : vector<8x256xf32>
    %22 = tpu.matmul %21, %19, %cst_11 {dimension_numbers = #tpu.dot_dimension_numbers<[1], [0], [0], [1], [0, 0, 1, 1], [], []>} : vector<8x8xf32>, vector<8x256xf32>, vector<8x256xf32> -> vector<8x256xf32>
    %23 = arith.addf %17, %22 : vector<8x256xf32>
    %c2_i32 = arith.constant 2 : i32
    %24 = arith.addi %0, %c2_i32 : i32
    %c0_12 = arith.constant 0 : index
    %c0_13 = arith.constant 0 : index
    %25 = arith.index_cast %24 : i32 to index
    %c0_14 = arith.constant 0 : index
    %26 = vector.load %arg2[%c0_12, %c0_13, %25, %c0_14] : memref<1x8x20x20xf32, #tpu.memory_space<vmem>>, vector<1x8x16x20xf32>
    %27 = vector.shape_cast %26 : vector<1x8x16x20xf32> to vector<8x16x20xf32>
    %28 = vector.extract_strided_slice %27 {offsets = [0, 0, 0], sizes = [8, 16, 16], strides = [1, 1, 1]} : vector<8x16x20xf32> to vector<8x16x16xf32>
    %29 = vector.shape_cast %28 : vector<8x16x16xf32> to vector<8x256xf32>
    %c3 = arith.constant 3 : index
    %c0_15 = arith.constant 0 : index
    %c0_16 = arith.constant 0 : index
    %30 = vector.load %arg3[%c3, %c0_15, %c0_16] : memref<9x8x8xf32, #tpu.memory_space<vmem>>, vector<1x8x8xf32>
    %31 = vector.shape_cast %30 : vector<1x8x8xf32> to vector<8x8xf32>
    %cst_17 = arith.constant dense<0.000000e+00> : vector<8x256xf32>
    %32 = tpu.matmul %31, %29, %cst_17 {dimension_numbers = #tpu.dot_dimension_numbers<[1], [0], [0], [1], [0, 0, 1, 1], [], []>} : vector<8x8xf32>, vector<8x256xf32>, vector<8x256xf32> -> vector<8x256xf32>
    %33 = arith.addf %23, %32 : vector<8x256xf32>
    %34 = vector.extract_strided_slice %27 {offsets = [0, 0, 2], sizes = [8, 16, 16], strides = [1, 1, 1]} : vector<8x16x20xf32> to vector<8x16x16xf32>
    %35 = vector.shape_cast %34 : vector<8x16x16xf32> to vector<8x256xf32>
    %c4 = arith.constant 4 : index
    %c0_18 = arith.constant 0 : index
    %c0_19 = arith.constant 0 : index
    %36 = vector.load %arg3[%c4, %c0_18, %c0_19] : memref<9x8x8xf32, #tpu.memory_space<vmem>>, vector<1x8x8xf32>
    %37 = vector.shape_cast %36 : vector<1x8x8xf32> to vector<8x8xf32>
    %cst_20 = arith.constant dense<0.000000e+00> : vector<8x256xf32>
    %38 = tpu.matmul %37, %35, %cst_20 {dimension_numbers = #tpu.dot_dimension_numbers<[1], [0], [0], [1], [0, 0, 1, 1], [], []>} : vector<8x8xf32>, vector<8x256xf32>, vector<8x256xf32> -> vector<8x256xf32>
    %39 = arith.addf %33, %38 : vector<8x256xf32>
    %40 = vector.extract_strided_slice %27 {offsets = [0, 0, 4], sizes = [8, 16, 16], strides = [1, 1, 1]} : vector<8x16x20xf32> to vector<8x16x16xf32>
    %41 = vector.shape_cast %40 : vector<8x16x16xf32> to vector<8x256xf32>
    %c5 = arith.constant 5 : index
    %c0_21 = arith.constant 0 : index
    %c0_22 = arith.constant 0 : index
    %42 = vector.load %arg3[%c5, %c0_21, %c0_22] : memref<9x8x8xf32, #tpu.memory_space<vmem>>, vector<1x8x8xf32>
    %43 = vector.shape_cast %42 : vector<1x8x8xf32> to vector<8x8xf32>
    %cst_23 = arith.constant dense<0.000000e+00> : vector<8x256xf32>
    %44 = tpu.matmul %43, %41, %cst_23 {dimension_numbers = #tpu.dot_dimension_numbers<[1], [0], [0], [1], [0, 0, 1, 1], [], []>} : vector<8x8xf32>, vector<8x256xf32>, vector<8x256xf32> -> vector<8x256xf32>
    %45 = arith.addf %39, %44 : vector<8x256xf32>
    %c4_i32 = arith.constant 4 : i32
    %46 = arith.addi %0, %c4_i32 : i32
    %c0_24 = arith.constant 0 : index
    %c0_25 = arith.constant 0 : index
    %47 = arith.index_cast %46 : i32 to index
    %c0_26 = arith.constant 0 : index
    %48 = vector.load %arg2[%c0_24, %c0_25, %47, %c0_26] : memref<1x8x20x20xf32, #tpu.memory_space<vmem>>, vector<1x8x16x20xf32>
    %49 = vector.shape_cast %48 : vector<1x8x16x20xf32> to vector<8x16x20xf32>
    %50 = vector.extract_strided_slice %49 {offsets = [0, 0, 0], sizes = [8, 16, 16], strides = [1, 1, 1]} : vector<8x16x20xf32> to vector<8x16x16xf32>
    %51 = vector.shape_cast %50 : vector<8x16x16xf32> to vector<8x256xf32>
    %c6 = arith.constant 6 : index
    %c0_27 = arith.constant 0 : index
    %c0_28 = arith.constant 0 : index
    %52 = vector.load %arg3[%c6, %c0_27, %c0_28] : memref<9x8x8xf32, #tpu.memory_space<vmem>>, vector<1x8x8xf32>
    %53 = vector.shape_cast %52 : vector<1x8x8xf32> to vector<8x8xf32>
    %cst_29 = arith.constant dense<0.000000e+00> : vector<8x256xf32>
    %54 = tpu.matmul %53, %51, %cst_29 {dimension_numbers = #tpu.dot_dimension_numbers<[1], [0], [0], [1], [0, 0, 1, 1], [], []>} : vector<8x8xf32>, vector<8x256xf32>, vector<8x256xf32> -> vector<8x256xf32>
    %55 = arith.addf %45, %54 : vector<8x256xf32>
    %56 = vector.extract_strided_slice %49 {offsets = [0, 0, 2], sizes = [8, 16, 16], strides = [1, 1, 1]} : vector<8x16x20xf32> to vector<8x16x16xf32>
    %57 = vector.shape_cast %56 : vector<8x16x16xf32> to vector<8x256xf32>
    %c7 = arith.constant 7 : index
    %c0_30 = arith.constant 0 : index
    %c0_31 = arith.constant 0 : index
    %58 = vector.load %arg3[%c7, %c0_30, %c0_31] : memref<9x8x8xf32, #tpu.memory_space<vmem>>, vector<1x8x8xf32>
    %59 = vector.shape_cast %58 : vector<1x8x8xf32> to vector<8x8xf32>
    %cst_32 = arith.constant dense<0.000000e+00> : vector<8x256xf32>
    %60 = tpu.matmul %59, %57, %cst_32 {dimension_numbers = #tpu.dot_dimension_numbers<[1], [0], [0], [1], [0, 0, 1, 1], [], []>} : vector<8x8xf32>, vector<8x256xf32>, vector<8x256xf32> -> vector<8x256xf32>
    %61 = arith.addf %55, %60 : vector<8x256xf32>
    %62 = vector.extract_strided_slice %49 {offsets = [0, 0, 4], sizes = [8, 16, 16], strides = [1, 1, 1]} : vector<8x16x20xf32> to vector<8x16x16xf32>
    %63 = vector.shape_cast %62 : vector<8x16x16xf32> to vector<8x256xf32>
    %c8 = arith.constant 8 : index
    %c0_33 = arith.constant 0 : index
    %c0_34 = arith.constant 0 : index
    %64 = vector.load %arg3[%c8, %c0_33, %c0_34] : memref<9x8x8xf32, #tpu.memory_space<vmem>>, vector<1x8x8xf32>
    %65 = vector.shape_cast %64 : vector<1x8x8xf32> to vector<8x8xf32>
    %cst_35 = arith.constant dense<0.000000e+00> : vector<8x256xf32>
    %66 = tpu.matmul %65, %63, %cst_35 {dimension_numbers = #tpu.dot_dimension_numbers<[1], [0], [0], [1], [0, 0, 1, 1], [], []>} : vector<8x8xf32>, vector<8x256xf32>, vector<8x256xf32> -> vector<8x256xf32>
    %67 = arith.addf %61, %66 : vector<8x256xf32>
    %c0_36 = arith.constant 0 : index
    %c0_37 = arith.constant 0 : index
    %c0_38 = arith.constant 0 : index
    %68 = vector.load %arg4[%c0_36, %c0_37, %c0_38] : memref<1x8x256xf32, #tpu.memory_space<vmem>>, vector<1x8x256xf32>
    %69 = vector.shape_cast %68 : vector<1x8x256xf32> to vector<8x256xf32>
    %70 = vector.shape_cast %67 : vector<8x256xf32> to vector<1x8x256xf32>
    tpu.vector_store %arg4[%c0_36, %c0_37, %c0_38], %70 {strides = array<i32>} : memref<1x8x256xf32, #tpu.memory_space<vmem>>, vector<1x8x256xf32>,
    %cst_39 = arith.constant dense<0.000000e+00> : vector<8xf32>
    %71 = vector.multi_reduction <add>, %67, %cst_39 [1] : vector<8x256xf32> to vector<8xf32>
    %72 = vector.shape_cast %71 : vector<8xf32> to vector<8x1xf32>
    %cst_40 = arith.constant 3.906250e-03 : f32
    %73 = vector.broadcast %cst_40 : f32 to vector<8x1xf32>
    %74 = arith.mulf %72, %73 : vector<8x1xf32>
    %75 = vector.broadcast %74 : vector<8x1xf32> to vector<8x256xf32>
    %76 = arith.subf %67, %75 : vector<8x256xf32>
    %77 = arith.mulf %76, %76 : vector<8x256xf32>
    %cst_41 = arith.constant dense<0.000000e+00> : vector<8xf32>
    %78 = vector.multi_reduction <add>, %77, %cst_41 [1] : vector<8x256xf32> to vector<8xf32>
    %79 = vector.shape_cast %78 : vector<8xf32> to vector<8x1xf32>
    %80 = tpu.concatenate %72, %79 in 1 : vector<8x1xf32>, vector<8x1xf32> -> vector<8x2xf32>
    %c0_42 = arith.constant 0 : index
    %c0_43 = arith.constant 0 : index
    %c0_44 = arith.constant 0 : index
    %c0_45 = arith.constant 0 : index
    %81 = vector.load %arg5[%c0_42, %c0_43, %c0_44, %c0_45] : memref<1x1x8x2xf32, #tpu.memory_space<vmem>>, vector<1x1x8x2xf32>
    %82 = vector.shape_cast %81 : vector<1x1x8x2xf32> to vector<8x2xf32>
    %83 = vector.shape_cast %80 : vector<8x2xf32> to vector<1x1x8x2xf32>
    tpu.vector_store %arg5[%c0_42, %c0_43, %c0_44, %c0_45], %83 {strides = array<i32>} : memref<1x1x8x2xf32, #tpu.memory_space<vmem>>, vector<1x1x8x2xf32>,
    return
  }
  func.func @transform_0(%arg0: i32, %arg1: i32) -> (i32, i32, i32, i32) {
    %c0_i32 = arith.constant 0 : i32
    %c0_i32_0 = arith.constant 0 : i32
    %c0_i32_1 = arith.constant 0 : i32
    %c0_i32_2 = arith.constant 0 : i32
    return %arg0, %c0_i32, %c0_i32_0, %c0_i32_1 : i32, i32, i32, i32
  }
  func.func @transform_1(%arg0: i32, %arg1: i32) -> (i32, i32, i32) {
    %c0_i32 = arith.constant 0 : i32
    %c0_i32_0 = arith.constant 0 : i32
    %c0_i32_1 = arith.constant 0 : i32
    %c0_i32_2 = arith.constant 0 : i32
    return %c0_i32, %c0_i32_0, %c0_i32_1 : i32, i32, i32
  }
  func.func @transform_2(%arg0: i32, %arg1: i32) -> (i32, i32, i32) {
    %c0_i32 = arith.constant 0 : i32
    %c0_i32_0 = arith.constant 0 : i32
    return %arg0, %c0_i32, %arg1 : i32, i32, i32
  }
  func.func @transform_3(%arg0: i32, %arg1: i32) -> (i32, i32, i32, i32) {
    %c0_i32 = arith.constant 0 : i32
    %c0_i32_0 = arith.constant 0 : i32
    %c0_i32_1 = arith.constant 0 : i32
    return %arg0, %arg1, %c0_i32, %c0_i32_0 : i32, i32, i32, i32
  }
}

module attributes {stable_mosaic.version = 11 : i64} {
  func.func @_bn_relu_kernel(%arg0: i32, %arg1: i32, %arg2: memref<1x8x256xf32, #tpu.memory_space<vmem>>, %arg3: memref<8x1xf32, #tpu.memory_space<vmem>>, %arg4: memref<8x1xf32, #tpu.memory_space<vmem>>, %arg5: memref<1x8x256xf32, #tpu.memory_space<vmem>>) attributes {dimension_semantics = [#tpu.dimension_semantics<parallel>, #tpu.dimension_semantics<parallel>], iteration_bounds = array<i64: 2, 1>, scalar_prefetch = 0 : i64, scratch_operands = 0 : i64, tpu.core_type = #tpu.core_type<tc>, window_params = [{transform_indices = @transform_0, window_bounds = array<i64: 1, 8, 256>}, {pipeline_mode = #tpu.pipeline_mode<synchronous>, transform_indices = @transform_1, window_bounds = array<i64: 8, 1>}, {pipeline_mode = #tpu.pipeline_mode<synchronous>, transform_indices = @transform_2, window_bounds = array<i64: 8, 1>}, {transform_indices = @transform_3, window_bounds = array<i64: 1, 8, 256>}]} {
    %c0 = arith.constant 0 : index
    %c0_0 = arith.constant 0 : index
    %c0_1 = arith.constant 0 : index
    %0 = vector.load %arg2[%c0, %c0_0, %c0_1] : memref<1x8x256xf32, #tpu.memory_space<vmem>>, vector<1x8x256xf32>
    %1 = vector.shape_cast %0 : vector<1x8x256xf32> to vector<8x256xf32>
    %c0_2 = arith.constant 0 : index
    %c0_3 = arith.constant 0 : index
    %2 = vector.load %arg3[%c0_2, %c0_3] : memref<8x1xf32, #tpu.memory_space<vmem>>, vector<8x1xf32>
    %3 = vector.broadcast %2 : vector<8x1xf32> to vector<8x256xf32>
    %4 = arith.mulf %1, %3 : vector<8x256xf32>
    %c0_4 = arith.constant 0 : index
    %c0_5 = arith.constant 0 : index
    %5 = vector.load %arg4[%c0_4, %c0_5] : memref<8x1xf32, #tpu.memory_space<vmem>>, vector<8x1xf32>
    %6 = vector.broadcast %5 : vector<8x1xf32> to vector<8x256xf32>
    %7 = arith.addf %4, %6 : vector<8x256xf32>
    %cst = arith.constant 0.000000e+00 : f32
    %8 = vector.broadcast %cst : f32 to vector<8x256xf32>
    %9 = arith.maximumf %7, %8 : vector<8x256xf32>
    %c0_6 = arith.constant 0 : index
    %c0_7 = arith.constant 0 : index
    %c0_8 = arith.constant 0 : index
    %10 = vector.load %arg5[%c0_6, %c0_7, %c0_8] : memref<1x8x256xf32, #tpu.memory_space<vmem>>, vector<1x8x256xf32>
    %11 = vector.shape_cast %10 : vector<1x8x256xf32> to vector<8x256xf32>
    %12 = vector.shape_cast %9 : vector<8x256xf32> to vector<1x8x256xf32>
    tpu.vector_store %arg5[%c0_6, %c0_7, %c0_8], %12 {strides = array<i32>} : memref<1x8x256xf32, #tpu.memory_space<vmem>>, vector<1x8x256xf32>,
    return
  }
  func.func @transform_0(%arg0: i32, %arg1: i32) -> (i32, i32, i32) {
    %c0_i32 = arith.constant 0 : i32
    %c0_i32_0 = arith.constant 0 : i32
    return %arg0, %c0_i32, %arg1 : i32, i32, i32
  }
  func.func @transform_1(%arg0: i32, %arg1: i32) -> (i32, i32) {
    %c0_i32 = arith.constant 0 : i32
    %c0_i32_0 = arith.constant 0 : i32
    %c0_i32_1 = arith.constant 0 : i32
    return %c0_i32, %c0_i32_0 : i32, i32
  }
  func.func @transform_2(%arg0: i32, %arg1: i32) -> (i32, i32) {
    %c0_i32 = arith.constant 0 : i32
    %c0_i32_0 = arith.constant 0 : i32
    %c0_i32_1 = arith.constant 0 : i32
    return %c0_i32, %c0_i32_0 : i32, i32
  }
  func.func @transform_3(%arg0: i32, %arg1: i32) -> (i32, i32, i32) {
    %c0_i32 = arith.constant 0 : i32
    %c0_i32_0 = arith.constant 0 : i32
    return %arg0, %c0_i32, %arg1 : i32, i32, i32
  }
}

</mosaic_0001>

<bundles_post_ra>
// kernel: aspp_forward.3
= control target key start
LH: loop header
LB: loop body
LE: loop exit
PB: predicated region body
PF: predicated region fallthrough
CT: control target
= control target key end

     0   :  { %s403_s12 = smov 0   ;;  %s405_s13 = smov 0   ;;  %s442_s0 = inlined_call_operand.vmem [shape: f32[2,8,256], index: 0, kind: input, shape index: {}, may-alias: {0,3}]   ;;  %s443_s1 = inlined_call_operand.vmem [shape: f32[8,1], index: 1, kind: input, shape index: {}]   ;;  %s444_s2 = inlined_call_operand.vmem [shape: f32[8,1], index: 2, kind: input, shape index: {}]   ;;  %s445_s3 = inlined_call_operand.vmem [shape: f32[2,8,256], index: 3, kind: output, shape index: {}, may-alias: {0,3}]  }
   0x1   :  { %s407_s14 = smov 0  }
   0x2 LB: > { %s25_s15 = sadd.s32 1, %s376_s13  ;;  %p323_p0 = scmp.ge.s32.totalorder %s380_s14, 1  ;;  %s380_s14 = sphi %s407_s14, %s13_s14   ;;  %s376_s13 = sphi %s405_s13, %s447_s13   ;;  %s372_s12 = sphi %s403_s12, %s446_s12  }
   0x3   : > { %p27_p1 = scmp.ge.s32.totalorder %s25_s15, 2  ;;  %p158_p2 = scmp.lt.s32.totalorder %s380_s14, 3 }
   0x5   : > { %s449_s15 = smov (%p27_p1, %s25_s15), 0  ;;  %p159_p3 = pnand %p323_p0, %p158_p2 }
   0x6   : > { %p191_p4 = scmp.lt.s32.totalorder (!%p159_p3), %s372_s12, 1 }
   0x7   : > { %162 = sbr.rel (%p159_p3) target bundleno = 147 (0x93), region = 32 }
   0xc   : > { %v212_v0 = vld [vmem:[%s443_s1] sm:$0xff]  ;;  %v382_v1 = vmov 0   ;;  %s451_s12 = smov (!%p191_p4, %s372_s12), 1 }
   0xd   : > { %357 = vset.pattern.permute.xlu0 %v382_v1  ;;  %v220_v2 = vld [vmem:[%s444_s2] sm:$0xff]  ;;  %s330_s20 = sshll.u32 %s451_s12, 4 }
   0xe   : > { %215 = vperm.xlu0 %357, %v212_v0   ;;  %s198_s23 = scalar_lea.vmem %s442_s0, %s330_s20  ;;  %s208_s26 = scalar_lea.vmem %s445_s3, %s330_s20 }
   0xf   : > { %v210_v4 = vld [vmem:[%s198_s23] sm:$0xff]  ;;  %v211_v5 = vld [vmem:[%s198_s23 + $0x8] sm:$0xff] }
  0x12   : > { %223 = vperm.xlu0 %357, %v220_v2  }
  0x89   : > { %v216_v3 = vpop.permute.xlu0 %215 }
  0x8a   : > { %v218_v6 = vmul.f32 %v216_v3, %v210_v4  ;;  %v219_v7 = vmul.f32 %v216_v3, %v211_v5 }
  0x8d   : > { %v224_v8 = vpop.permute.xlu0 %223 }
  0x8e   : > { %v226_v9 = vadd.f32 %v224_v8, %v218_v6  ;;  %v227_v10 = vadd.f32 %v224_v8, %v219_v7 }
  0x90   : > { %v228_v11 = vmax.f32 %v226_v9, 0.0  ;;  %v229_v12 = vmax.f32 %v227_v10, 0.0 }
  0x92   : > { %230 = vst [vmem:[%s208_s26] sm:$0xff] %v228_v11  ;;  %231 = vst [vmem:[%s208_s26 + $0x8] sm:$0xff] %v229_v12 }
  0x93 PF: > { %s13_s14 = sadd.s32 1, %s380_s14   ;;  %s446_s12 = smov %s376_s13 }
  0x94   : > { %p10_p5 = scmp.ge.s32.totalorder %s13_s14, 4   ;;  %s447_s13 = smov %s449_s15 }
  0x96   :  { %12 = sbr.rel (!%p10_p5) target bundleno = 2 (0x2), region = 62 }

// kernel: aspp_forward.2
= control target key start
LH: loop header
LB: loop body
LE: loop exit
PB: predicated region body
PF: predicated region fallthrough
CT: control target
= control target key end

     0   :  { %s4753_s12 = smov 0   ;;  %s4755_s13 = smov 0   ;;  %s7524_s0 = inlined_call_operand.vmem [shape: f32[2,8,20,20], index: 0, kind: input, shape index: {}]   ;;  %s7525_s1 = inlined_call_operand.vmem [shape: f32[9,8,8], index: 1, kind: input, shape index: {}]   ;;  %s7526_s2 = inlined_call_operand.vmem [shape: f32[2,8,256], index: 2, kind: output, shape index: {0}]   ;;  %s7527_s3 = inlined_call_operand.vmem [shape: f32[2,1,8,2], index: 3, kind: output, shape index: {1}]  }
   0x1   :  { %s4757_s14 = smov 0  }
   0x2 LB: > { %s26_s15 = sadd.s32 1, %s4715_s13  ;;  %p4537_p0 = scmp.ge.s32.totalorder %s4719_s14, 1  ;;  %s4719_s14 = sphi %s4757_s14, %s14_s14   ;;  %s4715_s13 = sphi %s4755_s13, %s8126_s13   ;;  %s4711_s12 = sphi %s4753_s12, %s8125_s12  }
   0x3   : > { %p28_p1 = scmp.ge.s32.totalorder %s26_s15, 2  ;;  %p156_p2 = scmp.lt.s32.totalorder %s4719_s14, 3 }
   0x5   : > { %s8128_s15 = smov (%p28_p1, %s26_s15), 0  ;;  %p157_p3 = pnand %p4537_p0, %p156_p2 }
   0x7   : > { %160 = sbr.rel (%p157_p3) target bundleno = 1062 (0x426), region = 28 }
   0xc   : > { %p191_p4 = scmp.lt.s32.totalorder %s4711_s12, 1  ;;  %s4721_s20 = smov 126   ;;  %v4723_v32 = vmov 1983009808   ;;  %v236_v34 = vlaneseq  ;;  %v4724_v44 = vmov 1934713408  }
   0xd   : > { %s4722_s21 = smov 124   ;;  %v234_v33 = vunpack.c.l.s4 %v4723_v32  ;;  %v298_v45 = vunpack.c.l.s4 %v4724_v44  ;;  %s4725_s22 = smov 16   ;;  %vm559_vm0 = vcmask 130048   ;;  %vm561_vm1 = vcmask 261120  }
   0xe   : > { %s8130_s12 = smov (!%p191_p4, %s4711_s12), 1  ;;  %v237_v36 = vshrl.u32 %v236_v34, 7  ;;  %s4726_s23 = smov 32   ;;  %vm563_vm2 = vcmask 392192   ;;  %vm565_vm3 = vcmask 523264   ;;  %vm567_vm4 = vcmask 654336  }
   0xf   : > { %s4594_s16 = smul.u32 192, %s8130_s12  ;;  %v235_v35 = vunpack.c.0.s8 %v234_v33  ;;  %v299_v50 = vunpack.c.0.s8 %v298_v45  ;;  %s4727_s24 = smov 48   ;;  %vm569_vm5 = vcmask 785408   ;;  %vm571_vm6 = vcmask 916480  }
  0x10   : > { %s4728_s25 = smov 64   ;;  %s4729_s26 = smov 80   ;;  %vm989_vm7 = vcmask 64512   ;;  %vm4399_vm8 = vcmask 7168   ;;  %vm4401_vm9 = vcmask 15360  }
  0x11   : > { %s4777_s19 = scalar_lea.vmem %s7524_s0, %s4594_s16  ;;  %v4919_v37 = vsub.s32 %v235_v35, %v237_v36  ;;  %v4985_v57 = vsub.s32 %v299_v50, %v237_v36  ;;  %s4730_s27 = smov 96  }
  0x12   : > { %v4780_v0 = vld [vmem:[%s4777_s19 + $0x38] sm:$0xff]  ;;  %v4783_v1 = vld [vmem:[%s4777_s19 + $0x8] sm:$0xff]  ;;  %v4794_v4 = vld [vmem:[%s4777_s19 + $0x50] sm:$0xff]  ;;  %s4731_s28 = smov 112  }
  0x13   : > { %607 = vrot.lane.b32.xlu1 %v4780_v0, %s4721_s20  ;;  %599 = vrot.lane.b32.xlu0 %v4783_v1, %s4721_s20  ;;  %v367_v2 = vcombine.low %v4783_v1, %v4780_v0  ;;  %v368_v3 = vcombine.high %v4783_v1, %v4780_v0  ;;  %v4797_v5 = vld [vmem:[%s4777_s19 + $0x20] sm:$0xff]  ;;  %v4807_v9 = vld [vmem:[%s4777_s19 + $0xb0] sm:$0xff] }
  0x14   : > { %v383_v6 = vcombine.low %v4797_v5, %v4794_v4  ;;  %v384_v7 = vcombine.high %v4797_v5, %v4794_v4  ;;  %v4804_v8 = vld [vmem:[%s4777_s19 + $0x80] sm:$0xff]  ;;  %v4810_v10 = vld [vmem:[%s4777_s19 + $0x68] sm:$0xff]  ;;  %v4817_v13 = vld [vmem:[%s4777_s19 + $0x98] sm:$0xff] }
  0x15   : > { %v415_v11 = vcombine.low %v4804_v8, %v4807_v9  ;;  %v416_v12 = vcombine.high %v4804_v8, %v4807_v9  ;;  %v399_v14 = vcombine.low %v4810_v10, %v4817_v13  ;;  %v400_v15 = vcombine.high %v4810_v10, %v4817_v13  ;;  %v4824_v16 = vld [vmem:[%s4777_s19 + $0x18] sm:$0xff]  ;;  %v4827_v17 = vld [vmem:[%s4777_s19 + $0x48] sm:$0xff]  ;;  %v4834_v18 = vld [vmem:[%s4777_s19] sm:$0xff] }
  0x16   : > { %v247_v19 = vcombine.low %v4824_v16, %v4827_v17  ;;  %v4839_v20 = vld [vmem:[%s4777_s19 + $0x30] sm:$0xff]  ;;  %v248_v21 = vcombine.high %v4824_v16, %v4827_v17  ;;  %v4846_v23 = vld [vmem:[%s4777_s19 + $0x78] sm:$0xff]  ;;  %v4849_v24 = vld [vmem:[%s4777_s19 + $0xa8] sm:$0xff]  ;;  %v4925_v38 = vrot.slane %v367_v2, %v4919_v37  ;;  %v4928_v39 = vrot.slane %v383_v6, %v4919_v37 }
  0x17   : > { %611 = vrot.lane.b32.xlu1 %v4794_v4, %s4721_s20  ;;  %603 = vrot.lane.b32.xlu0 %v4797_v5, %s4721_s20  ;;  %v231_v22 = vcombine.low %v4834_v18, %v4839_v20  ;;  %v232_v25 = vcombine.high %v4834_v18, %v4839_v20  ;;  %v4854_v26 = vld [vmem:[%s4777_s19 + $0x60] sm:$0xff]  ;;  %v279_v27 = vcombine.low %v4846_v23, %v4849_v24  ;;  %v4861_v29 = vld [vmem:[%s4777_s19 + $0x90] sm:$0xff] }
  0x18   : > { %v280_v28 = vcombine.high %v4846_v23, %v4849_v24  ;;  %v263_v30 = vcombine.low %v4854_v26, %v4861_v29  ;;  %v264_v31 = vcombine.high %v4854_v26, %v4861_v29  ;;  %v4931_v40 = vrot.slane %v415_v11, %v4919_v37  ;;  %v4941_v42 = vld [vmem:[%s4777_s19 + $0x22] sm:$0xff]  ;;  %v4944_v43 = vld [vmem:[%s4777_s19 + $0xa] sm:$0xff]  ;;  %v4955_v48 = vld [vmem:[%s4777_s19 + $0x52] sm:$0xff] }
  0x19   : > { %v4934_v41 = vrot.slane %v399_v14, %v4919_v37  ;;  %7735 = vst [vmem:[#allocation2_spill] sm:$0xff] %v4941_v42  ;;  %7736 = vst [vmem:[#allocation3_spill] sm:$0xff] %v4944_v43  ;;  %v4958_v49 = vld [vmem:[%s4777_s19 + $0x3a] sm:$0xff]  ;;  %v4964_v51 = vrot.slane %v247_v19, %v4919_v37  ;;  %v4967_v52 = vrot.slane %v231_v22, %v4919_v37  ;;  %v4980_v55 = vld [vmem:[%s4777_s19 + $0x82] sm:$0xff] }
  0x1a   : > { %7737 = vst [vmem:[#allocation4_spill] sm:$0xff] %v4955_v48  ;;  %7738 = vst [vmem:[#allocation5_spill] sm:$0xff] %v4958_v49  ;;  %v4970_v53 = vrot.slane %v279_v27, %v4919_v37  ;;  %v4973_v54 = vrot.slane %v263_v30, %v4919_v37  ;;  %v4983_v56 = vld [vmem:[%s4777_s19 + $0x6a] sm:$0xff]  ;;  %v432_v58 = vcombine.high %v4925_v38, %v4928_v39  ;;  %v5000_v62 = vld [vmem:[%s4777_s19 + $0xb2] sm:$0xff] }
  0x1b   : > { %619 = vrot.lane.b32.xlu1 %v4804_v8, %s4721_s20  ;;  %615 = vrot.lane.b32.xlu0 %v4810_v10, %s4721_s20  ;;  %7739 = vst [vmem:[#allocation6_spill] sm:$0xff] %v4980_v55  ;;  %7740 = vst [vmem:[#allocation7_spill] sm:$0xff] %v4983_v56  ;;  %v464_v59 = vcombine.high %v4934_v41, %v4931_v40  ;;  %v5003_v63 = vld [vmem:[%s4777_s19 + $0x9a] sm:$0xff]  ;;  %v5021_v19 = vld [vmem:[%s4777_s19 + $0x2] sm:$0xff]  ;;  %v296_v30 = vcombine.high %v4967_v52, %v4964_v51 }
  0x1c   : > { %7741 = vst [vmem:[#allocation8_spill] sm:$0xff] %v5000_v62  ;;  %7742 = vst [vmem:[#allocation9_spill] sm:$0xff] %v5003_v63  ;;  %v5006_v2 = vrot.slane %v432_v58, %v4985_v57  ;;  %v5018_v14 = vld [vmem:[%s4777_s19 + $0x1a] sm:$0xff]  ;;  %v5028_v22 = vld [vmem:[%s4777_s19 + $0x4a] sm:$0xff]  ;;  %v328_v32 = vcombine.high %v4973_v54, %v4970_v53  ;;  %v382_v50 = vrot.slane %v368_v3, %v4919_v37 }
  0x1d   : > { %v5009_v6 = vrot.slane %v464_v59, %v4985_v57  ;;  %7745 = vst [vmem:[#allocation12_spill] sm:$0xff] %v5018_v14  ;;  %7746 = vst [vmem:[#allocation13_spill] sm:$0xff] %v5021_v19  ;;  %v5031_v27 = vld [vmem:[%s4777_s19 + $0x32] sm:$0xff]  ;;  %v5040_v34 = vrot.slane %v296_v30, %v4985_v57  ;;  %v5050_v36 = vld [vmem:[%s4777_s19 + $0x7a] sm:$0xff]  ;;  %v398_v58 = vrot.slane %v384_v7, %v4919_v37 }
  0x1e   : > { %7743 = vst [vmem:[#allocation10_spill] sm:$0xff] %v5006_v2  ;;  %7747 = vst [vmem:[#allocation14_spill] sm:$0xff] %v5028_v22  ;;  %v5043_v35 = vrot.slane %v328_v32, %v4985_v57  ;;  %v5053_v44 = vld [vmem:[%s4777_s19 + $0x62] sm:$0xff]  ;;  %v430_v59 = vrot.slane %v416_v12, %v4919_v37  ;;  %v414_v30 = vrot.slane %v400_v15, %v4919_v37  ;;  %v5078_v32 = vld [vmem:[%s4777_s19 + $0xaa] sm:$0xff] }
  0x1f   : > { %627 = vrot.lane.b32.xlu1 %v4807_v9, %s4721_s20  ;;  %623 = vrot.lane.b32.xlu0 %v4817_v13, %s4721_s20  ;;  %7744 = vst [vmem:[#allocation11_spill] sm:$0xff] %v5009_v6  ;;  %7748 = vst [vmem:[#allocation15_spill] sm:$0xff] %v5031_v27  ;;  %v5081_v45 = vld [vmem:[%s4777_s19 + $0x92] sm:$0xff]  ;;  %v262_v7 = vrot.slane %v248_v21, %v4919_v37  ;;  %v5229_v46 = vld [vmem:[%s4777_s19 + $0x84] sm:$0xff] }
  0x20   : > { %7749 = vst [vmem:[#allocation16_spill] sm:$0xff] %v5040_v34  ;;  %7750 = vst [vmem:[#allocation17_spill] sm:$0xff] %v5043_v35  ;;  %v479_v3 = vcombine.low %v414_v30, %v430_v59 }
  0x21   : > { %7751 = vst [vmem:[#allocation18_spill] sm:$0xff] %v5050_v36  ;;  %7752 = vst [vmem:[#allocation19_spill] sm:$0xff] %v5053_v44 }
  0x22   : > { %7753 = vst [vmem:[#allocation20_spill] sm:$0xff] %v5078_v32  ;;  %7754 = vst [vmem:[#allocation21_spill] sm:$0xff] %v5081_v45 }
  0x23   : > { %601 = vrot.lane.b32.xlu1 %v4824_v16, %s4721_s20  ;;  %597 = vrot.lane.b32.xlu0 %v4834_v18, %s4721_s20 }
  0x27   : > { %609 = vrot.lane.b32.xlu1 %v4827_v17, %s4721_s20  ;;  %605 = vrot.lane.b32.xlu0 %v4839_v20, %s4721_s20 }
  0x2b   : > { %617 = vrot.lane.b32.xlu1 %v4846_v23, %s4721_s20  ;;  %613 = vrot.lane.b32.xlu0 %v4854_v26, %s4721_s20 }
  0x2f   : > { %625 = vrot.lane.b32.xlu1 %v4849_v24, %s4721_s20  ;;  %621 = vrot.lane.b32.xlu0 %v4861_v29, %s4721_s20 }
  0x33   : > { %1144 = vrot.lane.b32.xlu1 %v4797_v5, %s4722_s21  ;;  %1140 = vrot.lane.b32.xlu0 %v4783_v1, %s4722_s21  ;;  %v447_v1 = vcombine.low %v382_v50, %v398_v58  ;;  %v5093_v5 = vrot.slane %v479_v3, %v4985_v57  ;;  %v5181_v3 = vld [vmem:[%s4777_s19 + $0xc] sm:$0xff] }
  0x35   : > { %7756 = vst [vmem:[#allocation23_spill] sm:$0xff] %v5093_v5 }
  0x37   : > { %1152 = vrot.lane.b32.xlu1 %v4794_v4, %s4722_s21  ;;  %1148 = vrot.lane.b32.xlu0 %v4780_v0, %s4722_s21  ;;  %v5090_v4 = vrot.slane %v447_v1, %v4985_v57  ;;  %v5178_v1 = vld [vmem:[%s4777_s19 + $0x24] sm:$0xff] }
  0x39   : > { %7755 = vst [vmem:[#allocation22_spill] sm:$0xff] %v5090_v4 }
  0x3b   : > { %1160 = vrot.lane.b32.xlu1 %v4804_v8, %s4722_s21  ;;  %1156 = vrot.lane.b32.xlu0 %v4810_v10, %s4722_s21  ;;  %v246_v8 = vrot.slane %v232_v25, %v4919_v37  ;;  %v278_v10 = vrot.slane %v264_v31, %v4919_v37 }
  0x3d   : > { %v312_v61 = vcombine.high %v246_v8, %v262_v7 }
  0x3f   : > { %1168 = vrot.lane.b32.xlu1 %v4807_v9, %s4722_s21  ;;  %1164 = vrot.lane.b32.xlu0 %v4817_v13, %s4722_s21  ;;  %v294_v9 = vrot.slane %v280_v28, %v4919_v37  ;;  %v311_v13 = vcombine.low %v246_v8, %v262_v7  ;;  %v480_v28 = vcombine.high %v414_v30, %v430_v59  ;;  %v5232_v7 = vld [vmem:[%s4777_s19 + $0x6c] sm:$0xff] }
  0x41   : > { %v343_v15 = vcombine.low %v278_v10, %v294_v9  ;;  %v5163_v31 = vrot.slane %v480_v28, %v4985_v57  ;;  %v344_v60 = vcombine.high %v278_v10, %v294_v9 }
  0x43   : > { %1142 = vrot.lane.b32.xlu1 %v4824_v16, %s4722_s21  ;;  %1138 = vrot.lane.b32.xlu0 %v4834_v18, %s4722_s21  ;;  %v5122_v16 = vrot.slane %v311_v13, %v4985_v57  ;;  %7760 = vst [vmem:[#allocation27_spill] sm:$0xff] %v5163_v31  ;;  %v5203_v18 = vld [vmem:[%s4777_s19 + $0x3c] sm:$0xff] }
  0x45   : > { %7757 = vst [vmem:[#allocation24_spill] sm:$0xff] %v5122_v16 }
  0x47   : > { %1150 = vrot.lane.b32.xlu1 %v4827_v17, %s4722_s21  ;;  %1146 = vrot.lane.b32.xlu0 %v4839_v20, %s4722_s21  ;;  %v5125_v17 = vrot.slane %v343_v15, %v4985_v57  ;;  %v5200_v20 = vld [vmem:[%s4777_s19 + $0x54] sm:$0xff] }
  0x49   : > { %7758 = vst [vmem:[#allocation25_spill] sm:$0xff] %v5125_v17  ;;  %v5298_v17 = vld [vmem:[%s4777_s19 + $0x4c] sm:$0xff] }
  0x4b   : > { %1158 = vrot.lane.b32.xlu1 %v4846_v23, %s4722_s21  ;;  %1154 = vrot.lane.b32.xlu0 %v4854_v26, %s4722_s21 }
  0x4f   : > { %1166 = vrot.lane.b32.xlu1 %v4849_v24, %s4722_s21  ;;  %1162 = vrot.lane.b32.xlu0 %v4861_v29, %s4722_s21  ;;  %v448_v24 = vcombine.high %v382_v50, %v398_v58 }
  0x51   : > { %v5156_v29 = vrot.slane %v448_v24, %v4985_v57 }
  0x53   : > { %2066 = vrot.lane.b32.xlu1 %v4941_v42, %s4721_s20  ;;  %2062 = vrot.lane.b32.xlu0 %v4944_v43, %s4721_s20  ;;  %7759 = vst [vmem:[#allocation26_spill] sm:$0xff] %v5156_v29  ;;  %v5301_v29 = vld [vmem:[%s4777_s19 + $0x34] sm:$0xff] }
  0x57   : > { %2074 = vrot.lane.b32.xlu1 %v4955_v48, %s4721_s20  ;;  %2070 = vrot.lane.b32.xlu0 %v4958_v49, %s4721_s20 }
  0x5b   : > { %2082 = vrot.lane.b32.xlu1 %v4980_v55, %s4721_s20  ;;  %2078 = vrot.lane.b32.xlu0 %v4983_v56, %s4721_s20 }
  0x5f   : > { %2090 = vrot.lane.b32.xlu1 %v5000_v62, %s4721_s20  ;;  %2086 = vrot.lane.b32.xlu0 %v5003_v63, %s4721_s20 }
  0x63   : > { %2064 = vrot.lane.b32.xlu1 %v5018_v14, %s4721_s20  ;;  %2060 = vrot.lane.b32.xlu0 %v5021_v19, %s4721_s20 }
  0x67   : > { %2072 = vrot.lane.b32.xlu1 %v5028_v22, %s4721_s20  ;;  %2068 = vrot.lane.b32.xlu0 %v5031_v27, %s4721_s20 }
  0x6b   : > { %2080 = vrot.lane.b32.xlu1 %v5050_v36, %s4721_s20  ;;  %2076 = vrot.lane.b32.xlu0 %v5053_v44, %s4721_s20 }
  0x6f   : > { %2088 = vrot.lane.b32.xlu1 %v5078_v32, %s4721_s20  ;;  %2084 = vrot.lane.b32.xlu0 %v5081_v45, %s4721_s20 }
  0x73   : > { %2534 = vrot.lane.b32.xlu1 %v4941_v42, %s4722_s21  ;;  %2530 = vrot.lane.b32.xlu0 %v4944_v43, %s4722_s21  ;;  %v5329_v43 = vld [vmem:[%s4777_s19 + $0x64] sm:$0xff] }
  0x77   : > { %2542 = vrot.lane.b32.xlu1 %v4955_v48, %s4722_s21  ;;  %2538 = vrot.lane.b32.xlu0 %v4958_v49, %s4722_s21 }
  0x7b   : > { %2550 = vrot.lane.b32.xlu1 %v4980_v55, %s4722_s21  ;;  %2546 = vrot.lane.b32.xlu0 %v4983_v56, %s4722_s21 }
  0x7f   : > { %2558 = vrot.lane.b32.xlu1 %v5000_v62, %s4722_s21  ;;  %2554 = vrot.lane.b32.xlu0 %v5003_v63, %s4722_s21 }
  0x83   : > { %2532 = vrot.lane.b32.xlu1 %v5018_v14, %s4722_s21  ;;  %2528 = vrot.lane.b32.xlu0 %v5021_v19, %s4722_s21  ;;  %v5277_v14 = vld [vmem:[%s4777_s19 + $0x4] sm:$0xff] }
  0x85   : > { %v5143_v21 = vpop.permute.xlu1 %607  ;;  %v5145_v23 = vpop.permute.xlu0 %599 }
  0x86   : > { %v781_v30 = vcombine.low %v5145_v23, %v5143_v21 }
  0x87   : > { %2540 = vrot.lane.b32.xlu1 %v5028_v22, %s4722_s21  ;;  %2536 = vrot.lane.b32.xlu0 %v5031_v27, %s4722_s21  ;;  %v5274_v27 = vld [vmem:[%s4777_s19 + $0x1c] sm:$0xff] }
  0x88   : > { %v5235_v8 = vrot.slane %v781_v30, %v4919_v37  ;;  %v5252_v30 = vld [vmem:[%s4777_s19 + $0xb4] sm:$0xff] }
  0x89   : > { %v5151_v25 = vpop.permute.xlu1 %611  ;;  %v5153_v26 = vpop.permute.xlu0 %603 }
  0x8a   : > { %v797_v50 = vcombine.low %v5153_v26, %v5151_v25 }
  0x8b   : > { %2548 = vrot.lane.b32.xlu1 %v5050_v36, %s4722_s21  ;;  %2544 = vrot.lane.b32.xlu0 %v5053_v44, %s4722_s21  ;;  %v5255_v44 = vld [vmem:[%s4777_s19 + $0x9c] sm:$0xff] }
  0x8c   : > { %v5216_v47 = vrot.slane %v797_v50, %v4919_v37 }
  0x8d   : > { %v5167_v58 = vpop.permute.xlu1 %619  ;;  %v5169_v59 = vpop.permute.xlu0 %615 }
  0x8f   : > { %2556 = vrot.lane.b32.xlu1 %v5078_v32, %s4722_s21  ;;  %2552 = vrot.lane.b32.xlu0 %v5081_v45, %s4722_s21 }
  0x91   : > { %v5183_v13 = vpop.permute.xlu1 %627  ;;  %v5185_v15 = vpop.permute.xlu0 %623 }
  0x92   : > { %v829_v24 = vcombine.low %v5167_v58, %v5183_v13  ;;  %v813_v28 = vcombine.low %v5169_v59, %v5185_v15 }
  0x93   : > { %3456 = vrot.lane.b32.xlu1 %v5178_v1, %s4721_s20  ;;  %3452 = vrot.lane.b32.xlu0 %v5181_v3, %s4721_s20 }
  0x94   : > { %v5206_v12 = vrot.slane %v829_v24, %v4919_v37  ;;  %v5209_v0 = vrot.slane %v813_v28, %v4919_v37  ;;  %v5223_v24 = vrot.slane %v312_v61, %v4985_v57  ;;  %v5226_v28 = vrot.slane %v344_v60, %v4985_v57 }
  0x95   : > { %v5211_v33 = vpop.permute.xlu1 %601  ;;  %v5213_v11 = vpop.permute.xlu0 %597  ;;  %v845_v61 = vcombine.low %v5235_v8, %v5216_v47 }
  0x96   : > { %7761 = vst [vmem:[#allocation28_spill] sm:$0xff] %v5211_v33  ;;  %7762 = vst [vmem:[#allocation29_spill] sm:$0xff] %v5213_v11  ;;  %v877_v9 = vcombine.low %v5209_v0, %v5206_v12 }
  0x97   : > { %3464 = vrot.lane.b32.xlu1 %v5200_v20, %s4721_s20  ;;  %3460 = vrot.lane.b32.xlu0 %v5203_v18, %s4721_s20  ;;  %7763 = vst [vmem:[#allocation30_spill] sm:$0xff] %v5223_v24  ;;  %7764 = vst [vmem:[#allocation31_spill] sm:$0xff] %v5226_v28  ;;  %v5269_v60 = vrot.slane %v845_v61, %v4985_v57  ;;  %v5347_v28 = vld [vmem:[%s4777_s19 + $0x94] sm:$0xff] }
  0x98   : > { %v5262_v32 = vrot.slane %v877_v9, %v4985_v57 }
  0x99   : > { %v5239_v10 = vpop.permute.xlu1 %609  ;;  %v5241_v50 = vpop.permute.xlu0 %605  ;;  %7767 = vst [vmem:[#allocation34_spill] sm:$0xff] %v5269_v60 }
  0x9a   : > { %7765 = vst [vmem:[#allocation32_spill] sm:$0xff] %v5241_v50  ;;  %7766 = vst [vmem:[#allocation33_spill] sm:$0xff] %v5262_v32  ;;  %v661_v19 = vcombine.low %v5211_v33, %v5239_v10  ;;  %v645_v31 = vcombine.low %v5213_v11, %v5241_v50 }
  0x9b   : > { %3472 = vrot.lane.b32.xlu1 %v5229_v46, %s4721_s20  ;;  %3468 = vrot.lane.b32.xlu0 %v5232_v7, %s4721_s20 }
  0x9c   : > { %v5314_v55 = vrot.slane %v661_v19, %v4919_v37  ;;  %v5317_v62 = vrot.slane %v645_v31, %v4919_v37 }
  0x9d   : > { %v5257_v45 = vpop.permute.xlu1 %617  ;;  %v5259_v36 = vpop.permute.xlu0 %613 }
  0x9e   : > { %v709_v42 = vcombine.low %v5317_v62, %v5314_v55 }
  0x9f   : > { %3480 = vrot.lane.b32.xlu1 %v5252_v30, %s4721_s20  ;;  %3476 = vrot.lane.b32.xlu0 %v5255_v44, %s4721_s20 }
  0xa0   : > { %v5361_v34 = vrot.slane %v709_v42, %v4985_v57 }
  0xa1   : > { %v5279_v9 = vpop.permute.xlu1 %625  ;;  %v5281_v22 = vpop.permute.xlu0 %621 }
  0xa2   : > { %v693_v16 = vcombine.low %v5257_v45, %v5279_v9  ;;  %v677_v61 = vcombine.low %v5259_v36, %v5281_v22  ;;  %7775 = vst [vmem:[#allocation42_spill] sm:$0xff] %v5361_v34 }
  0xa3   : > { %3454 = vrot.lane.b32.xlu1 %v5274_v27, %s4721_s20  ;;  %3450 = vrot.lane.b32.xlu0 %v5277_v14, %s4721_s20 }
  0xa4   : > { %v5304_v5 = vrot.slane %v693_v16, %v4919_v37  ;;  %v5307_v4 = vrot.slane %v677_v61, %v4919_v37  ;;  %v5326_v61 = vld [vmem:[%s4777_s19 + $0x7c] sm:$0xff]  ;;  %v5344_v16 = vld [vmem:[%s4777_s19 + $0xac] sm:$0xff] }
  0xa5   : > { %v5309_v56 = vpop.permute.xlu1 %1144  ;;  %v5311_v63 = vpop.permute.xlu0 %1140 }
  0xa6   : > { %7768 = vst [vmem:[#allocation35_spill] sm:$0xff] %v5309_v56  ;;  %7769 = vst [vmem:[#allocation36_spill] sm:$0xff] %v5311_v63  ;;  %v741_v19 = vcombine.low %v5307_v4, %v5304_v5 }
  0xa7   : > { %3462 = vrot.lane.b32.xlu1 %v5298_v17, %s4721_s20  ;;  %3458 = vrot.lane.b32.xlu0 %v5301_v29, %s4721_s20 }
  0xa8   : > { %v5354_v35 = vrot.slane %v741_v19, %v4985_v57 }
  0xa9   : > { %v5333_v49 = vpop.permute.xlu1 %1152  ;;  %v5335_v31 = vpop.permute.xlu0 %1148 }
  0xaa   : > { %7770 = vst [vmem:[#allocation37_spill] sm:$0xff] %v5333_v49  ;;  %7771 = vst [vmem:[#allocation38_spill] sm:$0xff] %v5335_v31  ;;  %v1338_v6 = vcombine.low %v5309_v56, %v5333_v49  ;;  %v1322_v2 = vcombine.low %v5311_v63, %v5335_v31 }
  0xab   : > { %3470 = vrot.lane.b32.xlu1 %v5326_v61, %s4721_s20  ;;  %3466 = vrot.lane.b32.xlu0 %v5329_v43, %s4721_s20  ;;  %7774 = vst [vmem:[#allocation41_spill] sm:$0xff] %v5354_v35 }
  0xac   : > { %v5388_v19 = vrot.slane %v1338_v6, %v4919_v37  ;;  %v5391_v56 = vrot.slane %v1322_v2, %v4919_v37 }
  0xad   : > { %v5349_v24 = vpop.permute.xlu1 %1160  ;;  %v5351_v48 = vpop.permute.xlu0 %1156 }
  0xae   : > { %7772 = vst [vmem:[#allocation39_spill] sm:$0xff] %v5349_v24  ;;  %7773 = vst [vmem:[#allocation40_spill] sm:$0xff] %v5351_v48  ;;  %v1386_v6 = vcombine.low %v5391_v56, %v5388_v19 }
  0xaf   : > { %3478 = vrot.lane.b32.xlu1 %v5344_v16, %s4721_s20  ;;  %3474 = vrot.lane.b32.xlu0 %v5347_v28, %s4721_s20 }
  0xb1   : > { %v5367_v11 = vpop.permute.xlu1 %1168  ;;  %v5369_v50 = vpop.permute.xlu0 %1164 }
  0xb2   : > { %7776 = vst [vmem:[#allocation43_spill] sm:$0xff] %v5369_v50  ;;  %v1370_v33 = vcombine.low %v5349_v24, %v5367_v11  ;;  %v1354_v42 = vcombine.low %v5351_v48, %v5369_v50 }
  0xb3   : > { %3924 = vrot.lane.b32.xlu1 %v5178_v1, %s4722_s21  ;;  %3920 = vrot.lane.b32.xlu0 %v5181_v3, %s4722_s21 }
  0xb4   : > { %v5382_v63 = vrot.slane %v1370_v33, %v4919_v37  ;;  %v5385_v31 = vrot.slane %v1354_v42, %v4919_v37 }
  0xb5   : > { %v5393_v49 = vpop.permute.xlu1 %1142  ;;  %v5395_v48 = vpop.permute.xlu0 %1138 }
  0xb6   : > { %7777 = vst [vmem:[#allocation44_spill] sm:$0xff] %v5393_v49  ;;  %7778 = vst [vmem:[#allocation45_spill] sm:$0xff] %v5395_v48  ;;  %v1418_v1 = vcombine.low %v5385_v31, %v5382_v63 }
  0xb7   : > { %3932 = vrot.lane.b32.xlu1 %v5200_v20, %s4722_s21  ;;  %3928 = vrot.lane.b32.xlu0 %v5203_v18, %s4722_s21  ;;  %v5421_v18 = vrot.slane %v1386_v6, %v4985_v57 }
  0xb8   : > { %v5414_v3 = vrot.slane %v1418_v1, %v4985_v57 }
  0xb9   : > { %v5405_v33 = vpop.permute.xlu1 %1150  ;;  %v5407_v2 = vpop.permute.xlu0 %1146  ;;  %7784 = vst [vmem:[#allocation51_spill] sm:$0xff] %v5421_v18 }
  0xba   : > { %7779 = vst [vmem:[#allocation46_spill] sm:$0xff] %v5405_v33  ;;  %7780 = vst [vmem:[#allocation47_spill] sm:$0xff] %v5407_v2  ;;  %v1202_v24 = vcombine.low %v5393_v49, %v5405_v33 }
  0xbb   : > { %3940 = vrot.lane.b32.xlu1 %v5229_v46, %s4722_s21  ;;  %3936 = vrot.lane.b32.xlu0 %v5232_v7, %s4722_s21  ;;  %7781 = vst [vmem:[#allocation48_spill] sm:$0xff] %v5414_v3 }
  0xbc   : > { %v5456_v49 = vrot.slane %v1202_v24, %v4919_v37 }
  0xbd   : > { %v5416_v20 = vpop.permute.xlu1 %1158  ;;  %v5418_v42 = vpop.permute.xlu0 %1154 }
  0xbe   : > { %7782 = vst [vmem:[#allocation49_spill] sm:$0xff] %v5416_v20  ;;  %7783 = vst [vmem:[#allocation50_spill] sm:$0xff] %v5418_v42 }
  0xbf   : > { %3948 = vrot.lane.b32.xlu1 %v5252_v30, %s4722_s21  ;;  %3944 = vrot.lane.b32.xlu0 %v5255_v44, %s4722_s21  ;;  %v1186_v30 = vcombine.low %v5395_v48, %v5407_v2 }
  0xc1   : > { %v5429_v7 = vpop.permute.xlu1 %1166  ;;  %v5431_v1 = vpop.permute.xlu0 %1162  ;;  %v5459_v48 = vrot.slane %v1186_v30, %v4919_v37  ;;  %v7791_v30 = vcombine.low %v4934_v41, %v4931_v40  ;;  %v814_v40 = vcombine.high %v5169_v59, %v5185_v15 }
  0xc2   : > { %v1234_v50 = vcombine.low %v5416_v20, %v5429_v7  ;;  %v1218_v6 = vcombine.low %v5418_v42, %v5431_v1 }
  0xc3   : > { %3922 = vrot.lane.b32.xlu1 %v5274_v27, %s4722_s21  ;;  %3918 = vrot.lane.b32.xlu0 %v5277_v14, %s4722_s21  ;;  %v1250_v24 = vcombine.low %v5459_v48, %v5456_v49  ;;  %v5489_v2 = vrot.slane %v7791_v30, %v4985_v57 }
  0xc4   : > { %v5446_v44 = vrot.slane %v1234_v50, %v4919_v37  ;;  %v5449_v46 = vrot.slane %v1218_v6, %v4919_v37 }
  0xc5   : > { %v5451_v20 = vpop.permute.xlu1 %2066  ;;  %v5453_v42 = vpop.permute.xlu0 %2062  ;;  %7792 = vst [vmem:[#allocation57_spill] sm:$0xff] %v5489_v2 }
  0xc6   : > { %7785 = vst [vmem:[#allocation52_spill] sm:$0xff] %v5451_v20  ;;  %7786 = vst [vmem:[#allocation53_spill] sm:$0xff] %v5453_v42  ;;  %v1282_v14 = vcombine.low %v5449_v46, %v5446_v44 }
  0xc7   : > { %3930 = vrot.lane.b32.xlu1 %v5298_v17, %s4722_s21  ;;  %3926 = vrot.lane.b32.xlu0 %v5301_v29, %s4722_s21  ;;  %v878_v17 = vcombine.high %v5209_v0, %v5206_v12  ;;  %v7789_v29 = vcombine.low %v4925_v38, %v4928_v39  ;;  %v846_v0 = vcombine.high %v5235_v8, %v5216_v47 }
  0xc8   : > { %v5505_v38 = vrot.slane %v1250_v24, %v4985_v57  ;;  %v830_v39 = vcombine.high %v5167_v58, %v5183_v13  ;;  %v742_v12 = vcombine.high %v5307_v4, %v5304_v5  ;;  %v774_v58 = vcombine.high %v5361_v34, %v5354_v35 }
  0xc9   : > { %v5467_v27 = vpop.permute.xlu1 %2074  ;;  %v5469_v50 = vpop.permute.xlu0 %2070  ;;  %v5483_v6 = vrot.slane %v7789_v29, %v4985_v57  ;;  %v892_v41 = vrot.slane %v878_v17, %v4985_v57  ;;  %v798_v13 = vcombine.high %v5153_v26, %v5151_v25  ;;  %v860_v5 = vrot.slane %v846_v0, %v4985_v57 }
  0xca   : > { %7787 = vst [vmem:[#allocation54_spill] sm:$0xff] %v5467_v27  ;;  %7788 = vst [vmem:[#allocation55_spill] sm:$0xff] %v5469_v50  ;;  %v2260_v24 = vcombine.low %v5451_v20, %v5467_v27  ;;  %v2244_v17 = vcombine.low %v5453_v42, %v5469_v50  ;;  %v782_v25 = vcombine.high %v5145_v23, %v5143_v21  ;;  %v7869_v42 = vld [vmem:[#allocation21_spill] sm:$0xff]  ;;  %v7870_v50 = vld [vmem:[#allocation19_spill] sm:$0xff] }
  0xcb   : > { %3938 = vrot.lane.b32.xlu1 %v5326_v61, %s4722_s21  ;;  %3934 = vrot.lane.b32.xlu0 %v5329_v43, %s4722_s21  ;;  %7790 = vst [vmem:[#allocation56_spill] sm:$0xff] %v5483_v6  ;;  %v5496_v43 = vrot.slane %v1282_v14, %v4985_v57  ;;  %7796 = vst [vmem:[#allocation61_spill] sm:$0xff] %v5505_v38  ;;  %v496_v47 = vcombine.high %v5483_v6, %v5489_v2 }
  0xcc   : > { %v710_v14 = vcombine.high %v5317_v62, %v5314_v55  ;;  %v5544_v26 = vrot.slane %v830_v39, %v4919_v37  ;;  %v5547_v29 = vrot.slane %v814_v40, %v4919_v37  ;;  %v5561_v21 = vrot.slane %v798_v13, %v4919_v37 }
  0xcd   : > { %v5491_v33 = vpop.permute.xlu1 %2082  ;;  %v5493_v61 = vpop.permute.xlu0 %2078  ;;  %7795 = vst [vmem:[#allocation60_spill] sm:$0xff] %v5496_v43  ;;  %v7801_v23 = vcombine.low %v4967_v52, %v4964_v51  ;;  %v7803_v40 = vcombine.low %v4973_v54, %v4970_v53  ;;  %v5585_v52 = vrot.slane %v782_v25, %v4919_v37  ;;  %v912_v54 = vcombine.high %v860_v5, %v892_v41 }
  0xce   : > { %7793 = vst [vmem:[#allocation58_spill] sm:$0xff] %v5491_v33  ;;  %7794 = vst [vmem:[#allocation59_spill] sm:$0xff] %v5493_v61  ;;  %v724_v51 = vrot.slane %v710_v14, %v4985_v57  ;;  %v893_v53 = vcombine.low %v5547_v29, %v5544_v26  ;;  %v694_v13 = vcombine.high %v5257_v45, %v5279_v9  ;;  %v7810_v9 = vld [vmem:[#allocation32_spill] sm:$0xff] }
  0xcf   : > { %3946 = vrot.lane.b32.xlu1 %v5344_v16, %s4722_s21  ;;  %3942 = vrot.lane.b32.xlu0 %v5347_v28, %s4722_s21  ;;  %v910_v16 = vcombine.high %v5269_v60, %v5262_v32  ;;  %v5567_v39 = vrot.slane %v7801_v23, %v4985_v57  ;;  %v861_v25 = vcombine.low %v5585_v52, %v5561_v21  ;;  %v7811_v23 = vld [vmem:[#allocation29_spill] sm:$0xff] }
  0xd1   : > { %v5516_v8 = vpop.permute.xlu1 %2090  ;;  %v5518_v28 = vpop.permute.xlu0 %2086  ;;  %7802 = vst [vmem:[#allocation66_spill] sm:$0xff] %v5567_v39 }
  0xd2   : > { %7797 = vst [vmem:[#allocation62_spill] sm:$0xff] %v5516_v8  ;;  %7798 = vst [vmem:[#allocation63_spill] sm:$0xff] %v5518_v28  ;;  %v2292_v15 = vcombine.low %v5491_v33, %v5516_v8  ;;  %v2276_v4 = vcombine.low %v5493_v61, %v5518_v28  ;;  %v7866_v28 = vld [vmem:[#allocation13_spill] sm:$0xff] }
  0xd3   : > { %946 = vrot.lane.b32.xlu0 %v910_v16, %s4725_s22  ;;  %918 = vrot.lane.b32.xlu1 %v774_v58, %s4725_s22  ;;  %v911_v16 = vcombine.low %v860_v5, %v892_v41  ;;  %v756_v58 = vrot.slane %v742_v12, %v4985_v57  ;;  %v5579_v12 = vrot.slane %v2244_v17, %v4919_v37  ;;  %v7809_v5 = vld [vmem:[#allocation28_spill] sm:$0xff] }
  0xd4   : > { %v5550_v55 = vrot.slane %v2292_v15, %v4919_v37  ;;  %v5553_v62 = vrot.slane %v2276_v4, %v4919_v37  ;;  %v5573_v15 = vrot.slane %v7803_v40, %v4985_v57  ;;  %v5576_v4 = vrot.slane %v2260_v24, %v4919_v37 }
  0xd5   : > { %v5555_v30 = vpop.permute.xlu1 %2064  ;;  %v5557_v0 = vpop.permute.xlu0 %2060  ;;  %7806 = vst [vmem:[#allocation69_spill] sm:$0xff] %v5579_v12  ;;  %v678_v24 = vcombine.high %v5259_v36, %v5281_v22  ;;  %v775_v14 = vcombine.low %v724_v51, %v756_v58  ;;  %v662_v45 = vcombine.high %v7809_v5, %v5239_v10  ;;  %v646_v22 = vcombine.high %v7811_v23, %v7810_v9 }
  0xd6   : > { %7799 = vst [vmem:[#allocation64_spill] sm:$0xff] %v5555_v30  ;;  %7800 = vst [vmem:[#allocation65_spill] sm:$0xff] %v5557_v0  ;;  %v2340_v17 = vcombine.low %v5553_v62, %v5550_v55  ;;  %v360_v41 = vcombine.high %v5567_v39, %v5573_v15  ;;  %v2308_v36 = vcombine.low %v5579_v12, %v5576_v4 }
  0xd7   : > { %7804 = vst [vmem:[#allocation67_spill] sm:$0xff] %v5573_v15  ;;  %7805 = vst [vmem:[#allocation68_spill] sm:$0xff] %v5576_v4  ;;  %950 = vrot.lane.b32.xlu0 %v911_v16, %s4726_s23  ;;  %532 = vrot.lane.b32.xlu1 %v496_v47, %s4725_s22  ;;  %v5612_v40 = vrot.slane %v694_v13, %v4919_v37  ;;  %v5615_v59 = vrot.slane %v678_v24, %v4919_v37  ;;  %v7815_v13 = vld [vmem:[#allocation10_spill] sm:$0xff]  ;;  %v7816_v24 = vld [vmem:[#allocation11_spill] sm:$0xff] }
  0xd8   : > { %v901_v5 = vrot.slane %v893_v53, %v4985_v57  ;;  %v5623_v9 = vrot.slane %v2340_v17, %v4985_v57  ;;  %v5627_v23 = vrot.slane %v662_v45, %v4919_v37  ;;  %v7817_v15 = vcombine.low %v7815_v13, %v7816_v24 }
  0xd9   : > { %v5595_v16 = vpop.permute.xlu1 %2072  ;;  %v5597_v47 = vpop.permute.xlu0 %2068  ;;  %v5638_v53 = vrot.slane %v2308_v36, %v4985_v57  ;;  %v757_v17 = vcombine.low %v5615_v59, %v5612_v40 }
  0xda   : > { %7807 = vst [vmem:[#allocation70_spill] sm:$0xff] %v5595_v16  ;;  %7808 = vst [vmem:[#allocation71_spill] sm:$0xff] %v5597_v47  ;;  %v2124_v35 = vcombine.low %v5555_v30, %v5595_v16  ;;  %v2108_v34 = vcombine.low %v5557_v0, %v5597_v47 }
  0xdb   : > { %922 = vrot.lane.b32.xlu0 %v775_v14, %s4726_s23  ;;  %954 = vrot.lane.b32.xlu1 %v912_v54, %s4727_s24  ;;  %7814 = vst [vmem:[#allocation29_spill] sm:$0xff] %v5623_v9  ;;  %v869_v14 = vrot.slane %v861_v25, %v4985_v57  ;;  %v5630_v54 = vrot.slane %v646_v22, %v4919_v37  ;;  %7818 = vst [vmem:[#allocation10_spill] sm:$0xff] %v5638_v53 }
  0xdc   : > { %v776_v22 = vcombine.high %v724_v51, %v756_v58  ;;  %v765_v60 = vrot.slane %v757_v17, %v4985_v57  ;;  %v5672_v30 = vrot.slane %v2124_v35, %v4919_v37  ;;  %v5675_v0 = vrot.slane %v2108_v34, %v4919_v37 }
  0xdd   : > { %v5617_v39 = vpop.permute.xlu1 %2080  ;;  %v5619_v10 = vpop.permute.xlu0 %2076  ;;  %v913_v6 = vcombine.low %v869_v14, %v901_v5  ;;  %v725_v36 = vcombine.low %v5630_v54, %v5627_v23  ;;  %v914_v34 = vcombine.high %v869_v14, %v901_v5  ;;  %v862_v14 = vcombine.high %v5585_v52, %v5561_v21 }
  0xde   : > { %7812 = vst [vmem:[#allocation28_spill] sm:$0xff] %v5617_v39  ;;  %7813 = vst [vmem:[#allocation32_spill] sm:$0xff] %v5619_v10 }
  0xdf   : > { %536 = vrot.lane.b32.xlu1 %v7817_v15, %s4726_s23  ;;  %504 = vrot.lane.b32.xlu0 %v360_v41, %s4725_s22  ;;  %7825 = vst [vmem:[#allocation77_spill] sm:$0xff] %v5672_v30  ;;  %7826 = vst [vmem:[#allocation78_spill] sm:$0xff] %v5675_v0  ;;  %v733_v47 = vrot.slane %v725_v36, %v4985_v57 }
  0xe1   : > { %v5642_v25 = vpop.permute.xlu1 %2088  ;;  %v5644_v45 = vpop.permute.xlu0 %2084  ;;  %v778_v21 = vcombine.high %v733_v47, %v765_v60 }
  0xe2   : > { %7819 = vst [vmem:[#allocation11_spill] sm:$0xff] %v5642_v25  ;;  %7820 = vst [vmem:[#allocation72_spill] sm:$0xff] %v5644_v45  ;;  %v2156_v15 = vcombine.low %v5617_v39, %v5642_v25  ;;  %v2140_v41 = vcombine.low %v5619_v10, %v5644_v45  ;;  %v777_v10 = vcombine.low %v733_v47, %v765_v60  ;;  %v7836_v45 = vld [vmem:[#allocation4_spill] sm:$0xff]  ;;  %v7843_v25 = vld [vmem:[#allocation6_spill] sm:$0xff] }
  0xe3   : > { %958 = vrot.lane.b32.xlu1 %v913_v6, %s4728_s25  ;;  %926 = vrot.lane.b32.xlu0 %v776_v22, %s4727_s24  ;;  %v7827_v6 = vcombine.high %v7815_v13, %v7816_v24  ;;  %v7828_v22 = vld [vmem:[#allocation16_spill] sm:$0xff]  ;;  %v2172_v13 = vcombine.low %v5675_v0, %v5672_v30  ;;  %v894_v24 = vcombine.high %v5547_v29, %v5544_v26  ;;  %v7846_v60 = vld [vmem:[#allocation9_spill] sm:$0xff]  ;;  %v7847_v47 = vld [vmem:[#allocation7_spill] sm:$0xff] }
  0xe4   : > { %v5661_v58 = vrot.slane %v2156_v15, %v4919_v37  ;;  %v5664_v51 = vrot.slane %v2140_v41, %v4919_v37  ;;  %v7829_v15 = vld [vmem:[#allocation17_spill] sm:$0xff] }
  0xe5   : > { %v5666_v2 = vpop.permute.xlu1 %2534  ;;  %v5668_v32 = vpop.permute.xlu0 %2530  ;;  %v7830_v41 = vcombine.low %v7828_v22, %v7829_v15  ;;  %v7838_v26 = vcombine.high %v7828_v22, %v7829_v15  ;;  %v5717_v29 = vrot.slane %v2172_v13, %v4985_v57  ;;  %v5724_v52 = vrot.slane %v894_v24, %v4985_v57 }
  0xe6   : > { %7821 = vst [vmem:[#allocation73_spill] sm:$0xff] %v5661_v58  ;;  %7822 = vst [vmem:[#allocation74_spill] sm:$0xff] %v5664_v51  ;;  %v2204_v17 = vcombine.low %v5664_v51, %v5661_v58  ;;  %v1792_v24 = vcombine.low %v7847_v47, %v7846_v60 }
  0xe7   : > { %7823 = vst [vmem:[#allocation75_spill] sm:$0xff] %v5666_v2  ;;  %7824 = vst [vmem:[#allocation76_spill] sm:$0xff] %v5668_v32  ;;  %540 = vrot.lane.b32.xlu1 %v7827_v6, %s4727_s24  ;;  %508 = vrot.lane.b32.xlu0 %v7830_v41, %s4726_s23  ;;  %v1451_v41 = vcombine.high %v5421_v18, %v5414_v3  ;;  %v7841_v3 = vld [vmem:[#allocation3_spill] sm:$0xff]  ;;  %v7842_v18 = vld [vmem:[#allocation8_spill] sm:$0xff] }
  0xe8   : > { %v5705_v5 = vrot.slane %v2204_v17, %v4985_v57  ;;  %7839 = vst [vmem:[#allocation4_spill] sm:$0xff] %v5717_v29  ;;  %v1808_v61 = vcombine.low %v7843_v25, %v7842_v18 }
  0xe9   : > { %v5688_v35 = vpop.permute.xlu1 %2542  ;;  %v5690_v16 = vpop.permute.xlu0 %2538 }
  0xea   : > { %7831 = vst [vmem:[#allocation16_spill] sm:$0xff] %v5688_v35  ;;  %7832 = vst [vmem:[#allocation17_spill] sm:$0xff] %v5690_v16  ;;  %v2728_v22 = vcombine.low %v5666_v2, %v5688_v35  ;;  %v2712_v15 = vcombine.low %v5668_v32, %v5690_v16  ;;  %v1387_v32 = vcombine.high %v5391_v56, %v5388_v19  ;;  %v7848_v16 = vld [vmem:[#allocation22_spill] sm:$0xff] }
  0xeb   : > { %962 = vrot.lane.b32.xlu1 %v914_v34, %s4729_s26  ;;  %930 = vrot.lane.b32.xlu0 %v777_v10, %s4728_s25  ;;  %7835 = vst [vmem:[#allocation81_spill] sm:$0xff] %v5705_v5  ;;  %v7837_v34 = vld [vmem:[#allocation2_spill] sm:$0xff]  ;;  %v7840_v10 = vld [vmem:[#allocation5_spill] sm:$0xff]  ;;  %v758_v35 = vcombine.high %v5615_v59, %v5612_v40  ;;  %v1315_v59 = vcombine.high %v5505_v38, %v5496_v43 }
  0xec   : > { %v1776_v39 = vcombine.low %v7837_v34, %v7836_v45  ;;  %v1760_v17 = vcombine.low %v7841_v3, %v7840_v10  ;;  %v1419_v34 = vcombine.high %v5385_v31, %v5382_v63  ;;  %v5745_v31 = vrot.slane %v862_v14, %v4985_v57  ;;  %v7849_v3 = vld [vmem:[#allocation23_spill] sm:$0xff] }
  0xed   : > { %v5698_v36 = vpop.permute.xlu1 %2550  ;;  %v5700_v6 = vpop.permute.xlu0 %2546  ;;  %v7850_v2 = vcombine.low %v7848_v16, %v7849_v3  ;;  %v5765_v56 = vrot.slane %v2728_v22, %v4919_v37  ;;  %v5768_v19 = vrot.slane %v2712_v15, %v4919_v37  ;;  %v5786_v22 = vrot.slane %v1808_v61, %v4919_v37 }
  0xee   : > { %7833 = vst [vmem:[#allocation79_spill] sm:$0xff] %v5698_v36  ;;  %7834 = vst [vmem:[#allocation80_spill] sm:$0xff] %v5700_v6  ;;  %v915_v14 = vcombine.low %v5745_v31, %v5724_v52  ;;  %v5777_v40 = vrot.slane %v1419_v34, %v4985_v57  ;;  %v5789_v15 = vrot.slane %v1792_v24, %v4919_v37 }
  0xef   : > { %512 = vrot.lane.b32.xlu1 %v7838_v26, %s4727_s24  ;;  %1487 = vrot.lane.b32.xlu0 %v1451_v41, %s4725_s22  ;;  %7853 = vst [vmem:[#allocation6_spill] sm:$0xff] %v5765_v56  ;;  %7854 = vst [vmem:[#allocation9_spill] sm:$0xff] %v5768_v19  ;;  %v1283_v61 = vcombine.high %v5449_v46, %v5446_v44  ;;  %v5811_v24 = vrot.slane %v758_v35, %v4985_v57  ;;  %v7859_v44 = vld [vmem:[#allocation24_spill] sm:$0xff] }
  0xf0   : > { %v1251_v46 = vcombine.high %v5459_v48, %v5456_v49  ;;  %v7867_v48 = vld [vmem:[#allocation20_spill] sm:$0xff]  ;;  %v7868_v49 = vld [vmem:[#allocation18_spill] sm:$0xff]  ;;  %v7875_v30 = vcombine.high %v7848_v16, %v7849_v3  ;;  %v7878_v16 = vld [vmem:[#allocation43_spill] sm:$0xff] }
  0xf1   : > { %v5732_v13 = vpop.permute.xlu1 %2558  ;;  %v5734_v41 = vpop.permute.xlu0 %2554  ;;  %v1672_v8 = vcombine.low %v7868_v49, %v7867_v48 }
  0xf2   : > { %7844 = vst [vmem:[#allocation2_spill] sm:$0xff] %v5732_v13  ;;  %7845 = vst [vmem:[#allocation5_spill] sm:$0xff] %v5734_v41  ;;  %v2760_v26 = vcombine.low %v5698_v36, %v5732_v13  ;;  %v2744_v63 = vcombine.low %v5700_v6, %v5734_v41  ;;  %v726_v41 = vcombine.high %v5630_v54, %v5627_v23 }
  0xf3   : > { %934 = vrot.lane.b32.xlu1 %v778_v21, %s4729_s26  ;;  %544 = vrot.lane.b32.xlu0 %v7850_v2, %s4728_s25  ;;  %v5859_v51 = vrot.slane %v1251_v46, %v4985_v57  ;;  %v5877_v46 = vrot.slane %v1672_v8, %v4919_v37 }
  0xf4   : > { %v5757_v36 = vrot.slane %v2760_v26, %v4919_v37  ;;  %v5760_v6 = vrot.slane %v2744_v63, %v4919_v37  ;;  %v5780_v26 = vrot.slane %v1776_v39, %v4919_v37  ;;  %v5783_v63 = vrot.slane %v1760_v17, %v4919_v37 }
  0xf5   : > { %v5770_v21 = vpop.permute.xlu1 %2532  ;;  %v5772_v2 = vpop.permute.xlu0 %2528  ;;  %v5798_v39 = vrot.slane %v1387_v32, %v4985_v57  ;;  %v2776_v17 = vcombine.low %v5768_v19, %v5765_v56  ;;  %v5825_v13 = vrot.slane %v726_v41, %v4985_v57  ;;  %v7863_v19 = vld [vmem:[#allocation14_spill] sm:$0xff]  ;;  %v7864_v56 = vld [vmem:[#allocation12_spill] sm:$0xff]  ;;  %v5845_v41 = vrot.slane %v1283_v61, %v4985_v57 }
  0xf6   : > { %7851 = vst [vmem:[#allocation3_spill] sm:$0xff] %v5757_v36  ;;  %7852 = vst [vmem:[#allocation8_spill] sm:$0xff] %v5760_v6  ;;  %v2808_v43 = vcombine.low %v5760_v6, %v5757_v36  ;;  %v1824_v32 = vcombine.low %v5783_v63, %v5780_v26  ;;  %v1640_v6 = vcombine.low %v7864_v56, %v7863_v19  ;;  %v7865_v36 = vld [vmem:[#allocation15_spill] sm:$0xff] }
  0xf7   : > { %7855 = vst [vmem:[#allocation7_spill] sm:$0xff] %v5770_v21  ;;  %7856 = vst [vmem:[#allocation22_spill] sm:$0xff] %v5772_v2  ;;  %1459 = vrot.lane.b32.xlu1 %v1315_v59, %s4725_s22  ;;  %966 = vrot.lane.b32.xlu0 %v915_v14, %s4730_s27  ;;  %v1452_v54 = vcombine.low %v5798_v39, %v5777_v40  ;;  %v1856_v14 = vcombine.low %v5789_v15, %v5786_v22  ;;  %v7860_v59 = vld [vmem:[#allocation25_spill] sm:$0xff] }
  0xf8   : > { %v7861_v38 = vcombine.low %v7859_v44, %v7860_v59  ;;  %v5828_v35 = vrot.slane %v2808_v43, %v4985_v57  ;;  %v1624_v33 = vcombine.low %v7866_v28, %v7865_v36  ;;  %v779_v43 = vcombine.low %v5825_v13, %v5811_v24 }
  0xf9   : > { %v5804_v34 = vpop.permute.xlu1 %2540  ;;  %v5806_v23 = vpop.permute.xlu0 %2536  ;;  %v5848_v27 = vrot.slane %v2776_v17, %v4985_v57  ;;  %v5851_v0 = vrot.slane %v1824_v32, %v4985_v57  ;;  %v5862_v58 = vrot.slane %v1856_v14, %v4985_v57  ;;  %v5867_v17 = vrot.slane %v1640_v6, %v4919_v37 }
  0xfa   : > { %7857 = vst [vmem:[#allocation23_spill] sm:$0xff] %v5804_v34  ;;  %7858 = vst [vmem:[#allocation82_spill] sm:$0xff] %v5806_v23  ;;  %v5870_v32 = vrot.slane %v1624_v33, %v4919_v37  ;;  %v1316_v33 = vcombine.low %v5859_v51, %v5845_v41  ;;  %v916_v6 = vcombine.high %v5745_v31, %v5724_v52 }
  0xfb   : > { %516 = vrot.lane.b32.xlu1 %v7861_v38, %s4728_s25  ;;  %1491 = vrot.lane.b32.xlu0 %v1452_v54, %s4726_s23  ;;  %7862 = vst [vmem:[#allocation24_spill] sm:$0xff] %v5828_v35  ;;  %v1656_v38 = vcombine.low %v7870_v50, %v7869_v42  ;;  %7873 = vst [vmem:[#allocation12_spill] sm:$0xff] %v5848_v27  ;;  %v2592_v12 = vcombine.low %v5770_v21, %v5804_v34 }
  0xfc   : > { %7874 = vst [vmem:[#allocation15_spill] sm:$0xff] %v5851_v0  ;;  %7876 = vst [vmem:[#allocation13_spill] sm:$0xff] %v5862_v58  ;;  %v2576_v4 = vcombine.low %v5772_v2, %v5806_v23  ;;  %v1889_v52 = vcombine.high %v5851_v0, %v5862_v58 }
  0xfd   : > { %v5838_v20 = vpop.permute.xlu1 %2548  ;;  %v5840_v54 = vpop.permute.xlu0 %2544  ;;  %v5880_v14 = vrot.slane %v1656_v38, %v4919_v37 }
  0xfe   : > { %7871 = vst [vmem:[#allocation25_spill] sm:$0xff] %v5838_v20  ;;  %7872 = vst [vmem:[#allocation14_spill] sm:$0xff] %v5840_v54  ;;  %v5938_v58 = vrot.slane %v2576_v4, %v4919_v37 }
  0xff   : > { %938 = vrot.lane.b32.xlu1 %v779_v43, %s4730_s27  ;;  %548 = vrot.lane.b32.xlu0 %v7875_v30, %s4729_s26  ;;  %v7877_v43 = vld [vmem:[#allocation39_spill] sm:$0xff]  ;;  %v7879_v30 = vld [vmem:[#allocation40_spill] sm:$0xff] }
 0x100   : > { %v1371_v29 = vcombine.high %v7877_v43, %v5367_v11  ;;  %v1355_v3 = vcombine.high %v7879_v30, %v7878_v16  ;;  %v7882_v11 = vld [vmem:[#allocation37_spill] sm:$0xff]  ;;  %v7883_v43 = vld [vmem:[#allocation35_spill] sm:$0xff]  ;;  %v7884_v16 = vld [vmem:[#allocation38_spill] sm:$0xff] }
 0x101   : > { %v5882_v5 = vpop.permute.xlu1 %2556  ;;  %v5884_v61 = vpop.permute.xlu0 %2552  ;;  %v1339_v27 = vcombine.high %v7883_v43, %v7882_v11  ;;  %v7885_v30 = vld [vmem:[#allocation36_spill] sm:$0xff] }
 0x102   : > { %7880 = vst [vmem:[#allocation20_spill] sm:$0xff] %v5882_v5  ;;  %7881 = vst [vmem:[#allocation18_spill] sm:$0xff] %v5884_v61  ;;  %v1323_v8 = vcombine.high %v7885_v30, %v7884_v16  ;;  %v2624_v38 = vcombine.low %v5838_v20, %v5882_v5  ;;  %v2608_v35 = vcombine.low %v5840_v54, %v5884_v61  ;;  %v7897_v54 = vld [vmem:[#allocation47_spill] sm:$0xff]  ;;  %v7898_v61 = vld [vmem:[#allocation45_spill] sm:$0xff] }
 0x103   : > { %1463 = vrot.lane.b32.xlu1 %v1316_v33, %s4726_s23  ;;  %970 = vrot.lane.b32.xlu0 %v916_v6, %s4731_s28  ;;  %v5907_v31 = vrot.slane %v1371_v29, %v4919_v37  ;;  %v5910_v11 = vrot.slane %v1355_v3, %v4919_v37  ;;  %v1453_v6 = vcombine.high %v5798_v39, %v5777_v40  ;;  %v7889_v40 = vld [vmem:[#allocation49_spill] sm:$0xff]  ;;  %v7899_v5 = vld [vmem:[#allocation26_spill] sm:$0xff] }
 0x104   : > { %v5913_v43 = vrot.slane %v2624_v38, %v4919_v37  ;;  %v5916_v16 = vrot.slane %v2608_v35, %v4919_v37  ;;  %v1688_v29 = vcombine.low %v5870_v32, %v5867_v17  ;;  %v5927_v0 = vrot.slane %v1339_v27, %v4919_v37 }
 0x105   : > { %v5918_v30 = vpop.permute.xlu1 %3456  ;;  %v5920_v33 = vpop.permute.xlu0 %3452  ;;  %v5930_v3 = vrot.slane %v1323_v8, %v4919_v37  ;;  %v1720_v35 = vcombine.low %v5880_v14, %v5877_v46  ;;  %v5935_v38 = vrot.slane %v2592_v12, %v4919_v37  ;;  %v1434_v27 = vcombine.low %v5910_v11, %v5907_v31  ;;  %v7890_v8 = vld [vmem:[#allocation50_spill] sm:$0xff] }
 0x106   : > { %7886 = vst [vmem:[#allocation21_spill] sm:$0xff] %v5916_v16  ;;  %7887 = vst [vmem:[#allocation19_spill] sm:$0xff] %v5918_v30  ;;  %v1235_v39 = vcombine.high %v7889_v40, %v5429_v7  ;;  %v1219_v2 = vcombine.high %v7890_v8, %v5431_v1  ;;  %v2672_v12 = vcombine.low %v5916_v16, %v5913_v43  ;;  %v7895_v40 = vld [vmem:[#allocation46_spill] sm:$0xff]  ;;  %v7896_v8 = vld [vmem:[#allocation44_spill] sm:$0xff] }
 0x107   : > { %7888 = vst [vmem:[#allocation39_spill] sm:$0xff] %v5920_v33  ;;  %1925 = vrot.lane.b32.xlu1 %v1889_v52, %s4725_s22  ;;  %1495 = vrot.lane.b32.xlu0 %v1453_v6, %s4727_s24  ;;  %v5955_v52 = vrot.slane %v1688_v29, %v4985_v57  ;;  %v1402_v6 = vcombine.low %v5930_v3, %v5927_v0  ;;  %v7900_v16 = vld [vmem:[#allocation27_spill] sm:$0xff] }
 0x108   : > { %v5960_v21 = vrot.slane %v1720_v35, %v4985_v57  ;;  %v1825_v7 = vcombine.high %v5783_v63, %v5780_v26  ;;  %v1857_v1 = vcombine.high %v5789_v15, %v5786_v22  ;;  %v1203_v34 = vcombine.high %v7896_v8, %v7895_v40 }
 0x109   : > { %v5950_v23 = vpop.permute.xlu1 %3464  ;;  %v5952_v4 = vpop.permute.xlu0 %3460  ;;  %7893 = vst [vmem:[#allocation37_spill] sm:$0xff] %v5955_v52  ;;  %v1187_v20 = vcombine.high %v7898_v61, %v7897_v54  ;;  %v2640_v29 = vcombine.low %v5938_v58, %v5935_v38  ;;  %v7901_v35 = vcombine.low %v7899_v5, %v7900_v16  ;;  %v7902_v26 = vcombine.high %v7859_v44, %v7860_v59 }
 0x10a   : > { %7891 = vst [vmem:[#allocation43_spill] sm:$0xff] %v5950_v23  ;;  %7892 = vst [vmem:[#allocation40_spill] sm:$0xff] %v5952_v4  ;;  %v780_v63 = vcombine.high %v5825_v13, %v5811_v24  ;;  %v5983_v22 = vrot.slane %v1434_v27, %v4985_v57  ;;  %v5986_v15 = vrot.slane %v1235_v39, %v4919_v37 }
 0x10b   : > { %7894 = vst [vmem:[#allocation35_spill] sm:$0xff] %v5960_v21  ;;  %552 = vrot.lane.b32.xlu1 %v7901_v35, %s4730_s27  ;;  %520 = vrot.lane.b32.xlu0 %v7902_v26, %s4729_s26  ;;  %v5989_v54 = vrot.slane %v1219_v2, %v4919_v37  ;;  %v1317_v44 = vcombine.high %v5859_v51, %v5845_v41 }
 0x10c   : > { %v5998_v59 = vrot.slane %v2672_v12, %v4985_v57  ;;  %v1753_v13 = vcombine.high %v5955_v52, %v5960_v21  ;;  %v1410_v24 = vrot.slane %v1402_v6, %v4985_v57  ;;  %v6004_v27 = vrot.slane %v1825_v7, %v4985_v57 }
 0x10d   : > { %v5991_v61 = vpop.permute.xlu1 %3472  ;;  %v5993_v40 = vpop.permute.xlu0 %3468  ;;  %v6007_v2 = vrot.slane %v1857_v1, %v4985_v57  ;;  %v6010_v39 = vrot.slane %v1203_v34, %v4919_v37  ;;  %v6013_v8 = vrot.slane %v1187_v20, %v4919_v37  ;;  %v6018_v51 = vrot.slane %v2640_v29, %v4985_v57 }
 0x10e   : > { %7903 = vst [vmem:[#allocation38_spill] sm:$0xff] %v5991_v61  ;;  %7904 = vst [vmem:[#allocation36_spill] sm:$0xff] %v5993_v40  ;;  %v1298_v41 = vcombine.low %v5989_v54, %v5986_v15  ;;  %v1454_v34 = vcombine.low %v1410_v24, %v5983_v22  ;;  %v1689_v20 = vcombine.high %v5870_v32, %v5867_v17 }
 0x10f   : > { %7905 = vst [vmem:[#allocation49_spill] sm:$0xff] %v5998_v59  ;;  %1467 = vrot.lane.b32.xlu1 %v1317_v44, %s4727_s24  ;;  %942 = vrot.lane.b32.xlu0 %v780_v63, %s4731_s28  ;;  %7906 = vst [vmem:[#allocation50_spill] sm:$0xff] %v6018_v51  ;;  %v1890_v35 = vcombine.low %v6004_v27, %v6007_v2  ;;  %v1721_v26 = vcombine.high %v5880_v14, %v5877_v46 }
 0x110   : > { %v1266_v63 = vcombine.low %v6013_v8, %v6010_v39  ;;  %v3650_v17 = vcombine.low %v5918_v30, %v5950_v23  ;;  %v3634_v32 = vcombine.low %v5920_v33, %v5952_v4  ;;  %v6058_v52 = vrot.slane %v1298_v41, %v4985_v57  ;;  %v4680_v33 = vld [vmem:[%s4777_s19 + $0xa] sm:$0xff] }
 0x111   : > { %v6022_v12 = vpop.permute.xlu1 %3480  ;;  %v6024_v6 = vpop.permute.xlu0 %3476  ;;  %v6061_v21 = vrot.slane %v1689_v20, %v4985_v57  ;;  %v1761_v4 = vcombine.high %v4680_v33, %v7840_v10  ;;  %v7920_v30 = vcombine.high %v7899_v5, %v7900_v16  ;;  %v6595_v23 = vld [vmem:[%s4777_s19 + $0xac] sm:$0xff] }
 0x112   : > { %7907 = vst [vmem:[#allocation46_spill] sm:$0xff] %v6022_v12  ;;  %7908 = vst [vmem:[#allocation44_spill] sm:$0xff] %v6024_v6  ;;  %v3682_v1 = vcombine.low %v5991_v61, %v6022_v12  ;;  %v3666_v29 = vcombine.low %v5993_v40, %v6024_v6  ;;  %v7916_v40 = vld [vmem:[#allocation31_spill] sm:$0xff]  ;;  %v1274_v41 = vrot.slane %v1266_v63, %v4985_v57 }
 0x113   : > { %1897 = vrot.lane.b32.xlu1 %v1753_v13, %s4725_s22  ;;  %1499 = vrot.lane.b32.xlu0 %v1454_v34, %s4728_s25  ;;  %v6064_v13 = vrot.slane %v1721_v26, %v4985_v57  ;;  %v6067_v34 = vrot.slane %v3650_v17, %v4919_v37 }
 0x114   : > { %v6048_v44 = vrot.slane %v3682_v1, %v4919_v37  ;;  %v6051_v7 = vrot.slane %v3666_v29, %v4919_v37  ;;  %v6070_v1 = vrot.slane %v3634_v32, %v4919_v37  ;;  %v7915_v29 = vld [vmem:[#allocation30_spill] sm:$0xff]  ;;  %v1318_v17 = vcombine.low %v1274_v41, %v6058_v52 }
 0x115   : > { %v6053_v46 = vpop.permute.xlu1 %3454  ;;  %v6055_v14 = vpop.permute.xlu0 %3450  ;;  %7913 = vst [vmem:[#allocation83_spill] sm:$0xff] %v6067_v34  ;;  %v7917_v6 = vcombine.low %v7915_v29, %v7916_v40  ;;  %v4679_v32 = vld [vmem:[%s4777_s19 + $0x22] sm:$0xff] }
 0x116   : > { %7909 = vst [vmem:[#allocation47_spill] sm:$0xff] %v6048_v44  ;;  %7910 = vst [vmem:[#allocation45_spill] sm:$0xff] %v6051_v7  ;;  %v3730_v20 = vcombine.low %v6051_v7, %v6048_v44  ;;  %v1777_v12 = vcombine.high %v4679_v32, %v7836_v45  ;;  %v3698_v63 = vcombine.low %v6070_v1, %v6067_v34  ;;  %v8004_v34 = vld [vmem:[#allocation5_spill] sm:$0xff] }
 0x117   : > { %7911 = vst [vmem:[#allocation26_spill] sm:$0xff] %v6053_v46  ;;  %7912 = vst [vmem:[#allocation27_spill] sm:$0xff] %v6055_v14  ;;  %524 = vrot.lane.b32.xlu1 %v7917_v6, %s4730_s27  ;;  %1929 = vrot.lane.b32.xlu0 %v1890_v35, %s4726_s23  ;;  %v1809_v6 = vcombine.high %v7843_v25, %v7842_v18  ;;  %v1793_v35 = vcombine.high %v7847_v47, %v7846_v60 }
 0x118   : > { %7914 = vst [vmem:[#allocation84_spill] sm:$0xff] %v6070_v1  ;;  %v1754_v45 = vcombine.low %v6061_v21, %v6064_v13  ;;  %v1455_v18 = vcombine.high %v1410_v24, %v5983_v22  ;;  %v6108_v25 = vrot.slane %v3730_v20, %v4985_v57  ;;  %v6111_v60 = vrot.slane %v1777_v12, %v4919_v37 }
 0x119   : > { %v6080_v26 = vpop.permute.xlu1 %3462  ;;  %v6082_v61 = vpop.permute.xlu0 %3458  ;;  %v6114_v47 = vrot.slane %v1761_v4, %v4919_v37  ;;  %v6117_v5 = vrot.slane %v1809_v6, %v4919_v37  ;;  %v6120_v16 = vrot.slane %v1793_v35, %v4919_v37  ;;  %v1891_v22 = vcombine.high %v6004_v27, %v6007_v2 }
 0x11a   : > { %7918 = vst [vmem:[#allocation30_spill] sm:$0xff] %v6080_v26  ;;  %7919 = vst [vmem:[#allocation31_spill] sm:$0xff] %v6082_v61  ;;  %v6129_v24 = vrot.slane %v3698_v63, %v4985_v57  ;;  %v1625_v4 = vcombine.high %v7866_v28, %v7865_v36  ;;  %v1673_v12 = vcombine.high %v7868_v49, %v7867_v48 }
 0x11b   : > { %1471 = vrot.lane.b32.xlu1 %v1318_v17, %s4728_s25  ;;  %556 = vrot.lane.b32.xlu0 %v7920_v30, %s4731_s28  ;;  %v1641_v30 = vcombine.high %v7864_v56, %v7863_v19  ;;  %v1657_v20 = vcombine.high %v7870_v50, %v7869_v42  ;;  %v1435_v56 = vcombine.high %v5910_v11, %v5907_v31 }
 0x11c   : > { %v3514_v19 = vcombine.low %v6053_v46, %v6080_v26  ;;  %v3498_v27 = vcombine.low %v6055_v14, %v6082_v61  ;;  %v2373_v28 = vcombine.high %v5638_v53, %v5623_v9  ;;  %v1840_v48 = vcombine.low %v6114_v47, %v6111_v60  ;;  %v7960_v14 = vld [vmem:[#allocation63_spill] sm:$0xff] }
 0x11d   : > { %v6102_v10 = vpop.permute.xlu1 %3470  ;;  %v6104_v33 = vpop.permute.xlu0 %3466  ;;  %v1872_v49 = vcombine.low %v6120_v16, %v6117_v5  ;;  %v1403_v31 = vcombine.high %v5930_v3, %v5927_v0  ;;  %v6164_v11 = vrot.slane %v1641_v30, %v4919_v37  ;;  %v6167_v32 = vrot.slane %v1625_v4, %v4919_v37 }
 0x11e   : > { %7921 = vst [vmem:[#allocation85_spill] sm:$0xff] %v6102_v10  ;;  %7922 = vst [vmem:[#allocation86_spill] sm:$0xff] %v6104_v33  ;;  %v6176_v63 = vrot.slane %v3514_v19, %v4919_v37  ;;  %v6179_v0 = vrot.slane %v3498_v27, %v4919_v37  ;;  %v1449_v30 = vrot.slane %v1435_v56, %v4985_v57  ;;  %v7687_v46 = vmov 0.0  }
 0x11f   : > { %1901 = vrot.lane.b32.xlu1 %v1754_v45, %s4726_s23  ;;  %1503 = vrot.lane.b32.xlu0 %v1455_v18, %s4729_s26  ;;  %v1319_v18 = vcombine.high %v1274_v41, %v6058_v52  ;;  %v6191_v4 = vrot.slane %v1657_v20, %v4919_v37  ;;  %v6194_v19 = vrot.slane %v1840_v48, %v4985_v57 }
 0x120   : > { %7927 = vst [vmem:[#allocation91_spill] sm:$0xff] %v6176_v63  ;;  %7928 = vst [vmem:[#allocation92_spill] sm:$0xff] %v6179_v0  ;;  %v6197_v27 = vrot.slane %v1872_v49, %v4985_v57  ;;  %v7931_v52 = vcombine.high %v7915_v29, %v7916_v40  ;;  %v1755_v41 = vcombine.high %v6061_v21, %v6064_v13  ;;  %v7935_v13 = vld [vmem:[#allocation69_spill] sm:$0xff]  ;;  %1057 = vmatprep.mubr.f32.mxu0 %v7687_v46 }
 0x121   : > { %v6143_v2 = vpop.permute.xlu1 %3478  ;;  %v6145_v17 = vpop.permute.xlu0 %3474  ;;  %v1299_v20 = vcombine.high %v5989_v54, %v5986_v15  ;;  %v2341_v56 = vcombine.high %v5553_v62, %v5550_v55  ;;  %v1267_v29 = vcombine.high %v6013_v8, %v6010_v39  ;;  %v1704_v15 = vcombine.low %v6167_v32, %v6164_v11  ;;  %v7934_v54 = vld [vmem:[#allocation68_spill] sm:$0xff]  ;;  %1131 = vmatprep.mubr.f32.mxu1 %v7687_v46 }
 0x122   : > { %7923 = vst [vmem:[#allocation87_spill] sm:$0xff] %v6143_v2  ;;  %7924 = vst [vmem:[#allocation88_spill] sm:$0xff] %v6145_v17  ;;  %v3546_v42 = vcombine.low %v6102_v10, %v6143_v2  ;;  %v3530_v50 = vcombine.low %v6104_v33, %v6145_v17  ;;  %v1892_v21 = vcombine.low %v6194_v19, %v6197_v27 }
 0x123   : > { %2409 = vrot.lane.b32.xlu1 %v2373_v28, %s4725_s22  ;;  %1933 = vrot.lane.b32.xlu0 %v1891_v22, %s4727_s24  ;;  %v6188_v22 = vrot.slane %v1673_v12, %v4919_v37  ;;  %v1417_v12 = vrot.slane %v1403_v31, %v4985_v57  ;;  %v2309_v55 = vcombine.high %v7935_v13, %v7934_v54 }
 0x124   : > { %v6170_v6 = vrot.slane %v3546_v42, %v4919_v37  ;;  %v6173_v35 = vrot.slane %v3530_v50, %v4919_v37  ;;  %v3562_v42 = vcombine.low %v6179_v0, %v6176_v63  ;;  %v6235_v39 = vrot.slane %v1299_v20, %v4985_v57 }
 0x125   : > { %v6181_v3 = vpop.permute.xlu1 %3924  ;;  %v6183_v45 = vpop.permute.xlu0 %3920  ;;  %v1456_v40 = vcombine.low %v1417_v12, %v1449_v30  ;;  %v1736_v62 = vcombine.low %v6191_v4, %v6188_v22  ;;  %v6250_v13 = vrot.slane %v1267_v29, %v4985_v57  ;;  %v6258_v20 = vrot.slane %v2309_v55, %v4985_v57  ;;  %v7942_v29 = vld [vmem:[#allocation73_spill] sm:$0xff] }
 0x126   : > { %7925 = vst [vmem:[#allocation89_spill] sm:$0xff] %v6170_v6  ;;  %7926 = vst [vmem:[#allocation90_spill] sm:$0xff] %v6173_v35  ;;  %v3594_v28 = vcombine.low %v6173_v35, %v6170_v6  ;;  %v1705_v10 = vcombine.high %v6167_v32, %v6164_v11  ;;  %v1737_v2 = vcombine.high %v6191_v4, %v6188_v22  ;;  %v7981_v11 = vld [vmem:[#allocation65_spill] sm:$0xff] }
 0x127   : > { %7929 = vst [vmem:[#allocation93_spill] sm:$0xff] %v6181_v3  ;;  %7930 = vst [vmem:[#allocation94_spill] sm:$0xff] %v6183_v45  ;;  %1475 = vrot.lane.b32.xlu1 %v1319_v18, %s4729_s26  ;;  %528 = vrot.lane.b32.xlu0 %v7931_v52, %s4731_s28  ;;  %v7939_v18 = vld [vmem:[#allocation81_spill] sm:$0xff]  ;;  %v7940_v52 = vld [vmem:[#allocation4_spill] sm:$0xff]  ;;  %v6261_v36 = vrot.slane %v1736_v62, %v4985_v57 }
 0x128   : > { %v6232_v49 = vrot.slane %v3594_v28, %v4985_v57  ;;  %v2237_v54 = vcombine.high %v7940_v52, %v7939_v18  ;;  %v6253_v28 = vrot.slane %v1704_v15, %v4985_v57  ;;  %v7943_v18 = vld [vmem:[#allocation74_spill] sm:$0xff] }
 0x129   : > { %v6215_v50 = vpop.permute.xlu1 %3932  ;;  %v6217_v48 = vpop.permute.xlu0 %3928  ;;  %v2205_v15 = vcombine.high %v7943_v18, %v7942_v29  ;;  %v7946_v18 = vld [vmem:[#allocation77_spill] sm:$0xff]  ;;  %v7947_v29 = vld [vmem:[#allocation78_spill] sm:$0xff] }
 0x12a   : > { %7932 = vst [vmem:[#allocation95_spill] sm:$0xff] %v6215_v50  ;;  %7933 = vst [vmem:[#allocation96_spill] sm:$0xff] %v6217_v48  ;;  %v2173_v53 = vcombine.high %v7947_v29, %v7946_v18 }
 0x12b   : > { %1905 = vrot.lane.b32.xlu1 %v1755_v41, %s4727_s24  ;;  %1507 = vrot.lane.b32.xlu0 %v1456_v40, %s4730_s27  ;;  %7936 = vst [vmem:[#allocation68_spill] sm:$0xff] %v6232_v49  ;;  %v6244_v41 = vrot.slane %v2341_v56, %v4985_v57  ;;  %v6247_v40 = vrot.slane %v3562_v42, %v4985_v57  ;;  %v8003_v49 = vld [vmem:[#allocation79_spill] sm:$0xff] }
 0x12c   : > { %v1320_v42 = vcombine.low %v6250_v13, %v6235_v39  ;;  %v6306_v29 = vrot.slane %v2205_v15, %v4985_v57  ;;  %v7956_v15 = vld [vmem:[#allocation55_spill] sm:$0xff] }
 0x12d   : > { %v6237_v8 = vpop.permute.xlu1 %3940  ;;  %v6239_v31 = vpop.permute.xlu0 %3936  ;;  %7941 = vst [vmem:[#allocation98_spill] sm:$0xff] %v6247_v40  ;;  %v2374_v62 = vcombine.low %v6258_v20, %v6244_v41  ;;  %v8002_v40 = vld [vmem:[#allocation2_spill] sm:$0xff] }
 0x12e   : > { %7937 = vst [vmem:[#allocation69_spill] sm:$0xff] %v6237_v8  ;;  %7938 = vst [vmem:[#allocation97_spill] sm:$0xff] %v6239_v31  ;;  %v2761_v1 = vcombine.high %v8003_v49, %v8002_v40  ;;  %v8007_v40 = vld [vmem:[#allocation16_spill] sm:$0xff] }
 0x12f   : > { %2381 = vrot.lane.b32.xlu1 %v2237_v54, %s4725_s22  ;;  %1937 = vrot.lane.b32.xlu0 %v1892_v21, %s4728_s25  ;;  %v4118_v54 = vcombine.low %v6181_v3, %v6215_v50  ;;  %v4102_v21 = vcombine.low %v6183_v45, %v6217_v48  ;;  %v1756_v45 = vcombine.low %v6253_v28, %v6261_v36 }
 0x131   : > { %v6273_v55 = vpop.permute.xlu1 %3948  ;;  %v6275_v52 = vpop.permute.xlu0 %3944  ;;  %v6296_v50 = vrot.slane %v4118_v54, %v4919_v37  ;;  %v1893_v54 = vcombine.high %v6194_v19, %v6197_v27 }
 0x132   : > { %7944 = vst [vmem:[#allocation73_spill] sm:$0xff] %v6273_v55  ;;  %7945 = vst [vmem:[#allocation74_spill] sm:$0xff] %v6275_v52  ;;  %v4150_v56 = vcombine.low %v6237_v8, %v6273_v55  ;;  %v4134_v9 = vcombine.low %v6239_v31, %v6275_v52  ;;  %v6299_v31 = vrot.slane %v4102_v21, %v4919_v37  ;;  %v7954_v21 = vld [vmem:[#allocation54_spill] sm:$0xff]  ;;  %v7957_v52 = vld [vmem:[#allocation53_spill] sm:$0xff] }
 0x133   : > { %1479 = vrot.lane.b32.xlu1 %v1320_v42, %s4730_s27  ;;  %2413 = vrot.lane.b32.xlu0 %v2374_v62, %s4726_s23  ;;  %7950 = vst [vmem:[#allocation99_spill] sm:$0xff] %v6296_v50  ;;  %v1457_v62 = vcombine.high %v1417_v12, %v1449_v30  ;;  %v7955_v30 = vld [vmem:[#allocation52_spill] sm:$0xff]  ;;  %v2245_v8 = vcombine.high %v7957_v52, %v7956_v15  ;;  %v7958_v55 = vld [vmem:[#allocation62_spill] sm:$0xff] }
 0x134   : > { %v6290_v48 = vrot.slane %v4150_v56, %v4919_v37  ;;  %v6293_v3 = vrot.slane %v4134_v9, %v4919_v37  ;;  %7951 = vst [vmem:[#allocation100_spill] sm:$0xff] %v6299_v31  ;;  %v6313_v9 = vrot.slane %v2173_v53, %v4985_v57  ;;  %v2261_v12 = vcombine.high %v7955_v30, %v7954_v21  ;;  %v6384_v52 = vld [vmem:[%s4777_s19 + $0x84] sm:$0xff] }
 0x135   : > { %v6301_v18 = vpop.permute.xlu1 %3922  ;;  %v6303_v42 = vpop.permute.xlu0 %3918  ;;  %v4166_v53 = vcombine.low %v6299_v31, %v6296_v50  ;;  %v1873_v21 = vcombine.high %v6120_v16, %v6117_v5  ;;  %v6387_v31 = vld [vmem:[%s4777_s19 + $0xb4] sm:$0xff] }
 0x136   : > { %7948 = vst [vmem:[#allocation77_spill] sm:$0xff] %v6290_v48  ;;  %7949 = vst [vmem:[#allocation78_spill] sm:$0xff] %v6293_v3  ;;  %v4198_v56 = vcombine.low %v6293_v3, %v6290_v48  ;;  %v7959_v3 = vld [vmem:[#allocation58_spill] sm:$0xff]  ;;  %v2238_v27 = vcombine.low %v6313_v9, %v6306_v29  ;;  %v6353_v15 = vrot.slane %v2261_v12, %v4919_v37  ;;  %v7968_v12 = vld [vmem:[#allocation12_spill] sm:$0xff] }
 0x137   : > { %7952 = vst [vmem:[#allocation101_spill] sm:$0xff] %v6301_v18  ;;  %7953 = vst [vmem:[#allocation102_spill] sm:$0xff] %v6303_v42  ;;  %1909 = vrot.lane.b32.xlu1 %v1756_v45, %s4728_s25  ;;  %1511 = vrot.lane.b32.xlu0 %v1457_v62, %s4731_s28  ;;  %v2293_v48 = vcombine.high %v7959_v3, %v7958_v55  ;;  %v7961_v45 = vld [vmem:[#allocation59_spill] sm:$0xff]  ;;  %v1841_v55 = vcombine.high %v6114_v47, %v6111_v60  ;;  %v6368_v47 = vld [vmem:[%s4777_s19 + $0x3c] sm:$0xff] }
 0x138   : > { %v2277_v61 = vcombine.high %v7961_v45, %v7960_v14  ;;  %v6336_v3 = vld [vmem:[%s4777_s19 + $0x24] sm:$0xff]  ;;  %v6339_v14 = vld [vmem:[%s4777_s19 + $0x54] sm:$0xff]  ;;  %v6350_v30 = vrot.slane %v4198_v56, %v4985_v57  ;;  %v6356_v45 = vrot.slane %v2245_v8, %v4919_v37  ;;  %v6365_v60 = vld [vmem:[%s4777_s19 + $0xc] sm:$0xff]  ;;  %v6381_v46 = vrot.slane %v4166_v53, %v4985_v57 }
 0x139   : > { %v6328_v62 = vpop.permute.xlu1 %3930  ;;  %v6330_v19 = vpop.permute.xlu0 %3926  ;;  %v7967_v8 = vld [vmem:[#allocation24_spill] sm:$0xff]  ;;  %v3198_v5 = vcombine.low %v6384_v52, %v6387_v31 }
 0x13a   : > { %7962 = vst [vmem:[#allocation54_spill] sm:$0xff] %v6328_v62  ;;  %7963 = vst [vmem:[#allocation52_spill] sm:$0xff] %v6330_v19  ;;  %v3982_v50 = vcombine.low %v6301_v18, %v6328_v62  ;;  %v3966_v26 = vcombine.low %v6303_v42, %v6330_v19  ;;  %v6411_v18 = vld [vmem:[%s4777_s19 + $0x9c] sm:$0xff]  ;;  %v7972_v53 = vld [vmem:[#allocation72_spill] sm:$0xff] }
 0x13b   : > { %2385 = vrot.lane.b32.xlu1 %v2238_v27, %s4726_s23  ;;  %1941 = vrot.lane.b32.xlu0 %v1893_v54, %s4729_s26  ;;  %7964 = vst [vmem:[#allocation55_spill] sm:$0xff] %v6350_v30  ;;  %v6359_v27 = vrot.slane %v2293_v48, %v4919_v37  ;;  %v6362_v54 = vrot.slane %v2277_v61, %v4919_v37  ;;  %7969 = vst [vmem:[#allocation58_spill] sm:$0xff] %v6381_v46  ;;  %v7973_v19 = vld [vmem:[#allocation32_spill] sm:$0xff]  ;;  %v7980_v30 = vld [vmem:[#allocation71_spill] sm:$0xff] }
 0x13c   : > { %v2841_v48 = vcombine.high %v7968_v12, %v7967_v8  ;;  %v2375_v61 = vcombine.high %v6258_v20, %v6244_v41  ;;  %v1757_v8 = vcombine.high %v6253_v28, %v6261_v36  ;;  %v6400_v41 = vrot.slane %v1841_v55, %v4985_v57  ;;  %v6408_v12 = vld [vmem:[%s4777_s19 + $0x6c] sm:$0xff] }
 0x13d   : > { %v6372_v16 = vpop.permute.xlu1 %3938  ;;  %v6374_v56 = vpop.permute.xlu0 %3934  ;;  %v6403_v20 = vrot.slane %v1873_v21, %v4985_v57  ;;  %v3182_v36 = vcombine.low %v6408_v12, %v6411_v18  ;;  %v2324_v28 = vcombine.low %v6356_v45, %v6353_v15  ;;  %v2356_v55 = vcombine.low %v6362_v54, %v6359_v27 }
 0x13e   : > { %7965 = vst [vmem:[#allocation53_spill] sm:$0xff] %v6372_v16  ;;  %7966 = vst [vmem:[#allocation62_spill] sm:$0xff] %v6374_v56  ;;  %v1321_v21 = vcombine.high %v6250_v13, %v6235_v39  ;;  %v2141_v62 = vcombine.high %v7973_v19, %v7972_v53  ;;  %v6434_v46 = vrot.slane %v3982_v50, %v4919_v37  ;;  %v7978_v53 = vld [vmem:[#allocation70_spill] sm:$0xff] }
 0x13f   : > { %2877 = vrot.lane.b32.xlu1 %v2841_v48, %s4725_s22  ;;  %2417 = vrot.lane.b32.xlu0 %v2375_v61, %s4727_s24  ;;  %v7970_v48 = vld [vmem:[#allocation11_spill] sm:$0xff]  ;;  %v7971_v61 = vld [vmem:[#allocation28_spill] sm:$0xff]  ;;  %v6437_v39 = vrot.slane %v3966_v26, %v4919_v37  ;;  %v2109_v32 = vcombine.high %v7981_v11, %v7980_v30  ;;  %v1894_v26 = vcombine.low %v6400_v41, %v6403_v20 }
 0x140   : > { %v2157_v42 = vcombine.high %v7971_v61, %v7970_v48  ;;  %7976 = vst [vmem:[#allocation11_spill] sm:$0xff] %v6434_v46  ;;  %v7979_v48 = vld [vmem:[#allocation64_spill] sm:$0xff]  ;;  %v6458_v50 = vrot.slane %v2324_v28, %v4985_v57  ;;  %v2239_v28 = vcombine.high %v6313_v9, %v6306_v29  ;;  %v7988_v29 = vld [vmem:[#allocation9_spill] sm:$0xff] }
 0x141   : > { %v6425_v33 = vpop.permute.xlu1 %3946  ;;  %v6427_v17 = vpop.permute.xlu0 %3942  ;;  %7977 = vst [vmem:[#allocation28_spill] sm:$0xff] %v6437_v39  ;;  %v2125_v61 = vcombine.high %v7979_v48, %v7978_v53  ;;  %v6461_v53 = vrot.slane %v2356_v55, %v4985_v57  ;;  %v7985_v48 = vld [vmem:[#allocation8_spill] sm:$0xff]  ;;  %v4030_v55 = vcombine.low %v6437_v39, %v6434_v46  ;;  %v6529_v39 = vrot.slane %v3182_v36, %v4919_v37  ;;  %v7994_v36 = vld [vmem:[#allocation21_spill] sm:$0xff] }
 0x142   : > { %7974 = vst [vmem:[#allocation63_spill] sm:$0xff] %v6425_v33  ;;  %7975 = vst [vmem:[#allocation59_spill] sm:$0xff] %v6427_v17  ;;  %v4014_v13 = vcombine.low %v6372_v16, %v6425_v33  ;;  %v3998_v19 = vcombine.low %v6374_v56, %v6427_v17  ;;  %v6464_v30 = vrot.slane %v2157_v42, %v4919_v37  ;;  %v7987_v17 = vld [vmem:[#allocation6_spill] sm:$0xff] }
 0x143   : > { %1913 = vrot.lane.b32.xlu1 %v1757_v8, %s4729_s26  ;;  %1483 = vrot.lane.b32.xlu0 %v1321_v21, %s4731_s28  ;;  %v6467_v8 = vrot.slane %v2141_v62, %v4919_v37  ;;  %v7984_v21 = vld [vmem:[#allocation3_spill] sm:$0xff]  ;;  %v6485_v62 = vrot.slane %v1737_v2, %v4985_v57  ;;  %v2777_v9 = vcombine.high %v7988_v29, %v7987_v17 }
 0x144   : > { %v6452_v22 = vrot.slane %v4014_v13, %v4919_v37  ;;  %v6455_v4 = vrot.slane %v3998_v19, %v4919_v37  ;;  %v2809_v11 = vcombine.high %v7985_v48, %v7984_v21  ;;  %v6482_v19 = vrot.slane %v1705_v10, %v4985_v57 }
 0x145   : > { %v6471_v13 = vpop.permute.xlu1 %918  ;;  %v6473_v56 = vpop.permute.xlu0 %946  ;;  %v6488_v21 = vrot.slane %v2125_v61, %v4919_v37  ;;  %v6491_v48 = vrot.slane %v2109_v32, %v4919_v37  ;;  %v7989_v10 = vcombine.low %v6336_v3, %v6339_v14  ;;  %v2220_v61 = vcombine.low %v6467_v8, %v6464_v30 }
 0x146   : > { %7982 = vst [vmem:[#allocation72_spill] sm:$0xff] %v6452_v22  ;;  %7983 = vst [vmem:[#allocation32_spill] sm:$0xff] %v6455_v4  ;;  %v4062_v42 = vcombine.low %v6455_v4, %v6452_v22  ;;  %v2705_v17 = vcombine.high %v6018_v51, %v5998_v59  ;;  %v6532_v59 = vrot.slane %v4030_v55, %v4985_v57  ;;  %v6584_v22 = vld [vmem:[%s4777_s19 + $0x4] sm:$0xff] }
 0x147   : > { %7986 = vst [vmem:[#allocation70_spill] sm:$0xff] %v6471_v13  ;;  %2389 = vrot.lane.b32.xlu1 %v2239_v28, %s4727_s24  ;;  %1945 = vrot.lane.b32.xlu0 %v1894_v26, %s4730_s27  ;;  %v6501_v16 = vrot.slane %v7989_v10, %v4919_v37  ;;  %v2376_v26 = vcombine.low %v6458_v50, %v6461_v53  ;;  %v8009_v13 = vld [vmem:[#allocation17_spill] sm:$0xff] }
 0x148   : > { %v6504_v2 = vrot.slane %v4062_v42, %v4985_v57  ;;  %v6517_v28 = vrot.slane %v2809_v11, %v4985_v57  ;;  %v7992_v42 = vcombine.low %v6365_v60, %v6368_v47  ;;  %v6526_v10 = vrot.slane %v3198_v5, %v4919_v37  ;;  %7993 = vst [vmem:[#allocation65_spill] sm:$0xff] %v6532_v59  ;;  %v6587_v59 = vld [vmem:[%s4777_s19 + $0x34] sm:$0xff] }
 0x149   : > { %v6508_v32 = vpop.permute.xlu1 %532  ;;  %v6510_v33 = vpop.permute.xlu0 %950  ;;  %v2188_v51 = vcombine.low %v6491_v48, %v6488_v21  ;;  %v1758_v11 = vcombine.low %v6482_v19, %v6485_v62  ;;  %v2673_v46 = vcombine.high %v7994_v36, %v5913_v43  ;;  %v2641_v43 = vcombine.high %v5938_v58, %v5935_v38 }
 0x14a   : > { %7990 = vst [vmem:[#allocation64_spill] sm:$0xff] %v6504_v2  ;;  %7991 = vst [vmem:[#allocation71_spill] sm:$0xff] %v6508_v32  ;;  %v6523_v29 = vrot.slane %v7992_v42, %v4919_v37  ;;  %v2791_v42 = vrot.slane %v2777_v9, %v4985_v57  ;;  %v1895_v9 = vcombine.high %v6400_v41, %v6403_v20  ;;  %v6603_v32 = vld [vmem:[%s4777_s19 + $0x94] sm:$0xff] }
 0x14b   : > { %2849 = vrot.lane.b32.xlu1 %v2705_v17, %s4725_s22  ;;  %2421 = vrot.lane.b32.xlu0 %v2376_v26, %s4728_s25  ;;  %v6551_v26 = vrot.slane %v2220_v61, %v4985_v57  ;;  %v6562_v61 = vrot.slane %v2188_v51, %v4985_v57  ;;  %v3246_v41 = vcombine.low %v6529_v39, %v6526_v10 }
 0x14c   : > { %v2842_v17 = vcombine.low %v2791_v42, %v6517_v28  ;;  %v3214_v5 = vcombine.low %v6523_v29, %v6501_v16  ;;  %v6573_v38 = vrot.slane %v2673_v46, %v4985_v57  ;;  %v3014_v2 = vcombine.low %v6584_v22, %v6587_v59  ;;  %7999 = vst [vmem:[#allocation21_spill] sm:$0xff] %v6603_v32 }
 0x14d   : > { %v6545_v55 = vpop.permute.xlu1 %954  ;;  %v6547_v4 = vpop.permute.xlu0 %922  ;;  %v2240_v58 = vcombine.low %v6562_v61, %v6551_v26  ;;  %v6610_v63 = vrot.slane %v2641_v43, %v4985_v57  ;;  %v6616_v6 = vrot.slane %v3246_v41, %v4985_v57 }
 0x14e   : > { %7995 = vst [vmem:[#allocation3_spill] sm:$0xff] %v6547_v4  ;;  %v6613_v35 = vrot.slane %v3214_v5, %v4985_v57  ;;  %v8005_v4 = vld [vmem:[#allocation80_spill] sm:$0xff]  ;;  %v2377_v5 = vcombine.high %v6458_v50, %v6461_v53  ;;  %v6634_v41 = vrot.slane %v3014_v2, %v4919_v37  ;;  %v2325_v53 = vcombine.high %v6356_v45, %v6353_v15 }
 0x14f   : > { %1917 = vrot.lane.b32.xlu1 %v1758_v11, %s4730_s27  ;;  %2881 = vrot.lane.b32.xlu0 %v2842_v17, %s4726_s23  ;;  %v6576_v11 = vld [vmem:[%s4777_s19 + $0x1c] sm:$0xff]  ;;  %v6579_v17 = vld [vmem:[%s4777_s19 + $0x4c] sm:$0xff]  ;;  %8001 = vst [vmem:[#allocation104_spill] sm:$0xff] %v6616_v6  ;;  %v2745_v7 = vcombine.high %v8005_v4, %v8004_v34  ;;  %v6655_v2 = vrot.slane %v2761_v1, %v4919_v37 }
 0x150   : > { %v3030_v51 = vcombine.low %v6576_v11, %v6579_v17  ;;  %8000 = vst [vmem:[#allocation103_spill] sm:$0xff] %v6613_v35  ;;  %v8008_v4 = vld [vmem:[#allocation75_spill] sm:$0xff]  ;;  %v3279_v50 = vcombine.high %v6613_v35, %v6616_v6  ;;  %v8017_v6 = vld [vmem:[#allocation82_spill] sm:$0xff] }
 0x151   : > { %v6566_v20 = vpop.permute.xlu1 %536  ;;  %v6568_v36 = vpop.permute.xlu0 %504 }
 0x152   : > { %7996 = vst [vmem:[#allocation8_spill] sm:$0xff] %v6566_v20  ;;  %7997 = vst [vmem:[#allocation6_spill] sm:$0xff] %v6568_v36  ;;  %v6592_v36 = vld [vmem:[%s4777_s19 + $0x7c] sm:$0xff]  ;;  %v6600_v20 = vld [vmem:[%s4777_s19 + $0x64] sm:$0xff]  ;;  %v6631_v43 = vrot.slane %v3030_v51, %v4919_v37  ;;  %v6658_v51 = vrot.slane %v2745_v7, %v4919_v37  ;;  %v1759_v7 = vcombine.high %v6482_v19, %v6485_v62 }
 0x153   : > { %v3062_v46 = vcombine.low %v6592_v36, %v6595_v23  ;;  %7998 = vst [vmem:[#allocation9_spill] sm:$0xff] %v6600_v20  ;;  %v3046_v0 = vcombine.low %v6600_v20, %v6603_v32  ;;  %2393 = vrot.lane.b32.xlu1 %v2240_v58, %s4728_s25  ;;  %1949 = vrot.lane.b32.xlu0 %v1895_v9, %s4731_s28  ;;  %v8010_v20 = vld [vmem:[#allocation76_spill] sm:$0xff] }
 0x154   : > { %v2706_v9 = vcombine.low %v6610_v63, %v6573_v38  ;;  %v2713_v32 = vcombine.high %v8010_v20, %v8009_v13  ;;  %v2241_v19 = vcombine.high %v6562_v61, %v6551_v26  ;;  %v8018_v26 = vld [vmem:[#allocation22_spill] sm:$0xff] }
 0x155   : > { %v6622_v44 = vpop.permute.xlu1 %958  ;;  %v6624_v58 = vpop.permute.xlu0 %926  ;;  %v6637_v49 = vrot.slane %v3062_v46, %v4919_v37  ;;  %v6640_v34 = vrot.slane %v3046_v0, %v4919_v37  ;;  %v2357_v0 = vcombine.high %v6362_v54, %v6359_v27  ;;  %v2843_v46 = vcombine.high %v2791_v42, %v6517_v28  ;;  %v8011_v42 = vld [vmem:[#allocation20_spill] sm:$0xff] }
 0x156   : > { %8006 = vst [vmem:[#allocation2_spill] sm:$0xff] %v6624_v58  ;;  %v2729_v58 = vcombine.high %v8008_v4, %v8007_v40  ;;  %v6673_v1 = vrot.slane %v2713_v32, %v4919_v37  ;;  %v6680_v27 = vrot.slane %v2325_v53, %v4985_v57  ;;  %v2824_v28 = vcombine.low %v6658_v51, %v6655_v2  ;;  %v8014_v40 = vld [vmem:[#allocation14_spill] sm:$0xff] }
 0x157   : > { %2853 = vrot.lane.b32.xlu1 %v2706_v9, %s4726_s23  ;;  %2425 = vrot.lane.b32.xlu0 %v2377_v5, %s4729_s26  ;;  %v3078_v9 = vcombine.low %v6634_v41, %v6631_v43  ;;  %v3110_v15 = vcombine.low %v6640_v34, %v6637_v49  ;;  %v6683_v54 = vrot.slane %v2357_v0, %v4985_v57  ;;  %v8013_v5 = vld [vmem:[#allocation18_spill] sm:$0xff] }
 0x158   : > { %v6670_v45 = vrot.slane %v2729_v58, %v4919_v37  ;;  %v8012_v58 = vld [vmem:[#allocation25_spill] sm:$0xff]  ;;  %v2609_v4 = vcombine.high %v8014_v40, %v8013_v5  ;;  %v3215_v0 = vcombine.high %v6523_v29, %v6501_v16  ;;  %v8015_v5 = vld [vmem:[#allocation23_spill] sm:$0xff]  ;;  %v2577_v61 = vcombine.high %v8018_v26, %v8017_v6 }
 0x159   : > { %v6660_v13 = vpop.permute.xlu1 %540  ;;  %v6662_v20 = vpop.permute.xlu0 %508  ;;  %v2625_v32 = vcombine.high %v8012_v58, %v8011_v42  ;;  %v6698_v62 = vrot.slane %v3078_v9, %v4985_v57  ;;  %v6701_v53 = vrot.slane %v3110_v15, %v4985_v57  ;;  %v3247_v42 = vcombine.high %v6529_v39, %v6526_v10  ;;  %v8016_v40 = vld [vmem:[#allocation7_spill] sm:$0xff] }
 0x15a   : > { %v2792_v58 = vcombine.low %v6673_v1, %v6670_v45  ;;  %v2593_v35 = vcombine.high %v8016_v40, %v8015_v5  ;;  %v2221_v9 = vcombine.high %v6467_v8, %v6464_v30  ;;  %v2378_v16 = vcombine.low %v6680_v27, %v6683_v54 }
 0x15b   : > { %3315 = vrot.lane.b32.xlu1 %v3279_v50, %s4725_s22  ;;  %2885 = vrot.lane.b32.xlu0 %v2843_v46, %s4727_s24  ;;  %v6720_v39 = vrot.slane %v2625_v32, %v4919_v37  ;;  %v6723_v29 = vrot.slane %v2609_v4, %v4919_v37  ;;  %v2707_v6 = vcombine.high %v6610_v63, %v6573_v38 }
 0x15c   : > { %v2189_v30 = vcombine.high %v6491_v48, %v6488_v21  ;;  %v3143_v8 = vcombine.high %v6698_v62, %v6701_v53  ;;  %v6737_v32 = vrot.slane %v3215_v0, %v4985_v57  ;;  %v6740_v4 = vrot.slane %v3247_v42, %v4985_v57 }
 0x15d   : > { %v6691_v50 = vpop.permute.xlu1 %962  ;;  %v6693_v46 = vpop.permute.xlu0 %930  ;;  %v6746_v5 = vrot.slane %v2577_v61, %v4919_v37  ;;  %v2800_v63 = vrot.slane %v2792_v58, %v4985_v57  ;;  %v2688_v21 = vcombine.low %v6723_v29, %v6720_v39  ;;  %v3079_v40 = vcombine.high %v6634_v41, %v6631_v43 }
 0x15e   : > { %v6761_v0 = vrot.slane %v2189_v30, %v4985_v57  ;;  %v3280_v42 = vcombine.low %v6737_v32, %v6740_v4  ;;  %v3111_v26 = vcombine.high %v6640_v34, %v6637_v49  ;;  %v3167_v49 = vcombine.high %v6336_v3, %v6339_v14 }
 0x15f   : > { %2397 = vrot.lane.b32.xlu1 %v2241_v19, %s4729_s26  ;;  %1921 = vrot.lane.b32.xlu0 %v1759_v7, %s4731_s28  ;;  %v2832_v7 = vrot.slane %v2824_v28, %v4985_v57  ;;  %v6743_v19 = vrot.slane %v2593_v35, %v4919_v37  ;;  %v6758_v35 = vrot.slane %v2221_v9, %v4985_v57 }
 0x160   : > { %v6786_v43 = vrot.slane %v3079_v40, %v4985_v57  ;;  %v6789_v41 = vrot.slane %v3111_v26, %v4985_v57  ;;  %v3151_v34 = vcombine.high %v6365_v60, %v6368_v47  ;;  %v3183_v3 = vcombine.high %v6408_v12, %v6411_v18  ;;  %v8019_v47 = vld [vmem:[#allocation34_spill] sm:$0xff] }
 0x161   : > { %v6725_v10 = vpop.permute.xlu1 %512  ;;  %v6727_v15 = vpop.permute.xlu0 %1487  ;;  %v2844_v28 = vcombine.low %v2800_v63, %v2832_v7  ;;  %v2656_v58 = vcombine.low %v6746_v5, %v6743_v19  ;;  %v6812_v60 = vrot.slane %v3167_v49, %v4919_v37  ;;  %v2845_v26 = vcombine.high %v2800_v63, %v2832_v7 }
 0x162   : > { %v3144_v14 = vcombine.low %v6786_v43, %v6789_v41  ;;  %v6820_v18 = vrot.slane %v3151_v34, %v4919_v37  ;;  %v6830_v49 = vrot.slane %v3183_v3, %v4919_v37  ;;  %v3031_v7 = vcombine.high %v6576_v11, %v6579_v17 }
 0x163   : > { %2857 = vrot.lane.b32.xlu1 %v2707_v6, %s4727_s24  ;;  %2429 = vrot.lane.b32.xlu0 %v2378_v16, %s4730_s27  ;;  %v2242_v16 = vcombine.low %v6761_v0, %v6758_v35  ;;  %v6778_v6 = vrot.slane %v2688_v21, %v4985_v57  ;;  %v6783_v30 = vrot.slane %v2656_v58, %v4985_v57 }
 0x164   : > { %v3199_v58 = vcombine.high %v6384_v52, %v6387_v31  ;;  %v3063_v11 = vcombine.high %v6592_v36, %v6595_v23  ;;  %v6867_v23 = vrot.slane %v3031_v7, %v4919_v37  ;;  %v8029_v7 = vld [vmem:[#allocation45_spill] sm:$0xff] }
 0x165   : > { %v6753_v48 = vpop.permute.xlu1 %934  ;;  %v6755_v38 = vpop.permute.xlu0 %544  ;;  %v2709_v3 = vcombine.high %v6783_v30, %v6778_v6 }
 0x167   : > { %3287 = vrot.lane.b32.xlu1 %v3143_v8, %s4725_s22  ;;  %2889 = vrot.lane.b32.xlu0 %v2844_v28, %s4728_s25  ;;  %v2708_v28 = vcombine.low %v6783_v30, %v6778_v6  ;;  %v8024_v30 = vld [vmem:[#allocation70_spill] sm:$0xff] }
 0x169   : > { %v6773_v61 = vpop.permute.xlu1 %1459  ;;  %v967_v9 = vpop.permute.xlu0 %966 }
 0x16b   : > { %2401 = vrot.lane.b32.xlu1 %v2242_v16, %s4730_s27  ;;  %3319 = vrot.lane.b32.xlu0 %v3280_v42, %s4726_s23  ;;  %v2379_v42 = vcombine.high %v6680_v27, %v6683_v54  ;;  %v8020_v27 = vld [vmem:[#allocation33_spill] sm:$0xff]  ;;  %v6827_v16 = vrot.slane %v3199_v58, %v4919_v37 }
 0x16c   : > { %v8021_v54 = vcombine.low %v8019_v47, %v8020_v27  ;;  %v6884_v47 = vrot.slane %v3063_v11, %v4919_v37 }
 0x16d   : > { %v6795_v8 = vpop.permute.xlu1 %516  ;;  %v6797_v21 = vpop.permute.xlu0 %1491 }
 0x16e   : > { %v980_v31 = vsel %vm559_vm0, %v8021_v54, %v6473_v56 }
 0x16f   : > { %2861 = vrot.lane.b32.xlu1 %v2708_v28, %s4728_s25  ;;  %2433 = vrot.lane.b32.xlu0 %v2379_v42, %s4731_s28  ;;  %v981_v52 = vsel %vm561_vm1, %v980_v31, %v6510_v33  ;;  %v3281_v33 = vcombine.high %v6737_v32, %v6740_v4  ;;  %v3763_v32 = vcombine.high %v6129_v24, %v6108_v25  ;;  %v8025_v31 = vld [vmem:[#allocation42_spill] sm:$0xff] }
 0x170   : > { %v982_v56 = vsel %vm563_vm2, %v981_v52, %v6545_v55  ;;  %v3015_v55 = vcombine.high %v6584_v22, %v6587_v59  ;;  %v3262_v59 = vcombine.low %v6830_v49, %v6827_v16  ;;  %v8022_v22 = vld [vmem:[#allocation21_spill] sm:$0xff]  ;;  %v2793_v4 = vcombine.high %v6673_v1, %v6670_v45 }
 0x171   : > { %v939_v12 = vpop.permute.xlu1 %938  ;;  %v6824_v40 = vpop.permute.xlu0 %548  ;;  %v983_v34 = vsel %vm565_vm3, %v982_v56, %v6622_v44  ;;  %v2825_v44 = vcombine.high %v6658_v51, %v6655_v2  ;;  %v8023_v2 = vld [vmem:[#allocation9_spill] sm:$0xff] }
 0x172   : > { %v984_v63 = vsel %vm567_vm4, %v983_v34, %v6691_v50  ;;  %v3230_v50 = vcombine.low %v6820_v18, %v6812_v60  ;;  %v3047_v51 = vcombine.high %v8023_v2, %v8022_v22  ;;  %v6881_v1 = vrot.slane %v3015_v55, %v4919_v37  ;;  %v8026_v52 = vld [vmem:[#allocation41_spill] sm:$0xff]  ;;  %v8030_v55 = vld [vmem:[#allocation3_spill] sm:$0xff] }
 0x173   : > { %3291 = vrot.lane.b32.xlu1 %v3144_v14, %s4726_s23  ;;  %2893 = vrot.lane.b32.xlu0 %v2845_v26, %s4729_s26  ;;  %v985_v28 = vsel %vm569_vm5, %v984_v63, %v967_v9  ;;  %v2243_v14 = vcombine.high %v6761_v0, %v6758_v35  ;;  %v6878_v45 = vrot.slane %v2825_v44, %v4985_v57 }
 0x174   : > { %v6887_v27 = vrot.slane %v3230_v50, %v4985_v57  ;;  %v6890_v54 = vrot.slane %v3262_v59, %v4985_v57  ;;  %v6893_v6 = vrot.slane %v3047_v51, %v4919_v37  ;;  %v3145_v35 = vcombine.high %v6786_v43, %v6789_v41  ;;  %v8033_v50 = vld [vmem:[#allocation84_spill] sm:$0xff] }
 0x175   : > { %v6849_v42 = vpop.permute.xlu1 %1463  ;;  %v971_v58 = vpop.permute.xlu0 %970  ;;  %v2807_v0 = vrot.slane %v2793_v4, %v4985_v57  ;;  %v8027_v26 = vcombine.low %v8025_v31, %v8026_v52  ;;  %v2689_v34 = vcombine.high %v6723_v29, %v6720_v39  ;;  %v2657_v41 = vcombine.high %v6746_v5, %v6743_v19 }
 0x176   : > { %v986_v17 = vsel %vm571_vm6, %v985_v28, %v971_v58  ;;  %v3282_v39 = vcombine.low %v6887_v27, %v6890_v54  ;;  %v3094_v29 = vcombine.low %v6881_v1, %v6867_v23  ;;  %v3126_v19 = vcombine.low %v6893_v6, %v6884_v47 }
 0x177   : > { %3799 = vrot.lane.b32.xlu1 %v3763_v32, %s4725_s22  ;;  %3323 = vrot.lane.b32.xlu0 %v3281_v33, %s4727_s24  ;;  %v973_v56 = vsel %vm559_vm0, %v8027_v26, %v8024_v30  ;;  %v8028_v33 = vld [vmem:[#allocation47_spill] sm:$0xff]  ;;  %v2846_v43 = vcombine.low %v2807_v0, %v6878_v45  ;;  %v8031_v32 = vld [vmem:[#allocation2_spill] sm:$0xff]  ;;  %v6943_v52 = vrot.slane %v2657_v41, %v4985_v57 }
 0x178   : > { %1023 = vmatprep.subr.mxu0 %v986_v17  ;;  %v3731_v63 = vcombine.high %v8029_v7, %v8028_v33  ;;  %v974_v44 = vsel %vm561_vm1, %v973_v56, %v8030_v55  ;;  %v8032_v17 = vld [vmem:[#allocation83_spill] sm:$0xff]  ;;  %v6952_v26 = vrot.slane %v3094_v29, %v4985_v57  ;;  %v6955_v56 = vrot.slane %v3126_v19, %v4985_v57  ;;  %v8037_v33 = vld [vmem:[#allocation56_spill] sm:$0xff]  ;;  %v8039_v55 = vld [vmem:[#allocation90_spill] sm:$0xff] }
 0x179   : > { %v6869_v36 = vpop.permute.xlu1 %1925  ;;  %v6871_v9 = vpop.permute.xlu0 %1495  ;;  %v975_v11 = vsel %vm563_vm2, %v974_v44, %v8031_v32  ;;  %v3699_v59 = vcombine.high %v8033_v50, %v8032_v17  ;;  %v8041_v29 = vld [vmem:[#allocation91_spill] sm:$0xff]  ;;  %v8042_v17 = vld [vmem:[#allocation92_spill] sm:$0xff] }
 0x17a   : > { %v976_v22 = vsel %vm565_vm3, %v975_v11, %v6693_v46  ;;  %v6938_v46 = vrot.slane %v2689_v34, %v4985_v57  ;;  %v8036_v34 = vld [vmem:[#allocation57_spill] sm:$0xff]  ;;  %v3563_v50 = vcombine.high %v8042_v17, %v8041_v29  ;;  %v8050_v29 = vld [vmem:[#allocation38_spill] sm:$0xff] }
 0x17b   : > { %2865 = vrot.lane.b32.xlu1 %v2709_v3, %s4729_s26  ;;  %2405 = vrot.lane.b32.xlu0 %v2243_v14, %s4731_s28  ;;  %v977_v5 = vsel %vm567_vm4, %v976_v22, %v6753_v48  ;;  %v8034_v3 = vld [vmem:[#allocation68_spill] sm:$0xff]  ;;  %v8035_v14 = vld [vmem:[#allocation98_spill] sm:$0xff]  ;;  %v4542_v48 = vld [vmem:[%s7525_s1 + $0x8] sm:$0xff]  ;;  %v495_v7 = vcombine.low %v8037_v33, %v8036_v34 }
 0x17c   : > { %v978_v2 = vsel %vm569_vm5, %v977_v5, %v939_v12  ;;  %v3627_v30 = vcombine.high %v8035_v14, %v8034_v3  ;;  %v3713_v12 = vrot.slane %v3699_v59, %v4985_v57  ;;  %v2710_v32 = vcombine.low %v6943_v52, %v6938_v46  ;;  %v8043_v22 = vld [vmem:[#allocation71_spill] sm:$0xff]  ;;  %v8044_v5 = vld [vmem:[#allocation8_spill] sm:$0xff] }
 0x17d   : > { %v553_v28 = vpop.permute.xlu1 %552  ;;  %v6911_v58 = vpop.permute.xlu0 %520  ;;  %v3146_v59 = vcombine.low %v6952_v26, %v6955_v56  ;;  %v573_v19 = vsel %vm559_vm0, %v495_v7, %v8043_v22  ;;  %v6994_v7 = vrot.slane %v3563_v50, %v4985_v57  ;;  %v8052_v22 = vld [vmem:[#allocation36_spill] sm:$0xff] }
 0x17f   : > { %3295 = vrot.lane.b32.xlu1 %v3145_v35, %s4727_s24  ;;  %2897 = vrot.lane.b32.xlu0 %v2846_v43, %s4730_s27  ;;  %v3745_v35 = vrot.slane %v3731_v63, %v4985_v57  ;;  %v8038_v63 = vld [vmem:[#allocation89_spill] sm:$0xff] }
 0x180   : > { %v3595_v44 = vcombine.high %v8039_v55, %v8038_v63  ;;  %v3283_v63 = vcombine.high %v6887_v27, %v6890_v54 }
 0x181   : > { %v6933_v51 = vpop.permute.xlu1 %1467  ;;  %v943_v4 = vpop.permute.xlu0 %942  ;;  %v3764_v11 = vcombine.low %v3713_v12, %v3745_v35 }
 0x182   : > { %v979_v31 = vsel %vm571_vm6, %v978_v2, %v943_v4  ;;  %v574_v2 = vsel %vm561_vm1, %v573_v19, %v8044_v5 }
 0x183   : > { %3771 = vrot.lane.b32.xlu1 %v3627_v30, %s4725_s22  ;;  %3327 = vrot.lane.b32.xlu0 %v3282_v39, %s4728_s25  ;;  %v8040_v39 = vmov 0.0   ;;  %v575_v34 = vsel %vm563_vm2, %v574_v2, %v6660_v13 }
 0x184   : > { %1024 = vmatpush1.msra.mxu0 %v979_v31  ;;  %v2847_v31 = vcombine.high %v2807_v0, %v6878_v45  ;;  %v576_v33 = vsel %vm565_vm3, %v575_v34, %v6755_v38  ;;  %v8045_v45 = vld [vmem:[#allocation43_spill] sm:$0xff]  ;;  %v8049_v38 = vld [vmem:[#allocation46_spill] sm:$0xff] }
 0x185   : > { %v6961_v43 = vpop.permute.xlu1 %1897  ;;  %v6963_v41 = vpop.permute.xlu0 %1499  ;;  %4543 = vmatmul.mubr.msk.f32.vlgmr.msra.gmra.mxu0 %vm989_vm7, %v4542_v48  ;;  %v6985_v48 = vrot.slane %v3595_v44, %v4985_v57  ;;  %v8046_v0 = vld [vmem:[#allocation19_spill] sm:$0xff]  ;;  %v8047_v44 = vld [vmem:[#allocation40_spill] sm:$0xff]  ;;  %v577_v13 = vsel %vm567_vm4, %v576_v33, %v6824_v40  ;;  %v3683_v17 = vcombine.high %v8050_v29, %v8049_v38  ;;  %v3263_v40 = vcombine.high %v6830_v49, %v6827_v16 }
 0x186   : > { %1597 = vmatprep.mubr.f32.mxu0 %v8040_v39  ;;  %v3651_v55 = vcombine.high %v8046_v0, %v8045_v45  ;;  %v578_v50 = vsel %vm569_vm5, %v577_v13, %v553_v28  ;;  %v8053_v33 = vld [vmem:[#allocation67_spill] sm:$0xff]  ;;  %v8054_v45 = vld [vmem:[#allocation66_spill] sm:$0xff]  ;;  %v3147_v38 = vcombine.high %v6952_v26, %v6955_v56 }
 0x187   : > { %2869 = vrot.lane.b32.xlu1 %v2710_v32, %s4730_s27  ;;  %3803 = vrot.lane.b32.xlu0 %v3764_v11, %s4726_s23  ;;  %v8048_v32 = vld [vmem:[#allocation39_spill] sm:$0xff]  ;;  %v3628_v54 = vcombine.low %v6994_v7, %v6985_v48  ;;  %v359_v0 = vcombine.low %v8054_v45, %v8053_v33  ;;  %v7044_v13 = vrot.slane %v3263_v40, %v4985_v57 }
 0x188   : > { %v3635_v11 = vcombine.high %v8048_v32, %v8047_v44  ;;  %v7021_v28 = vrot.slane %v3651_v55, %v4919_v37  ;;  %v7029_v44 = vrot.slane %v3683_v17, %v4919_v37  ;;  %v8055_v49 = vld [vmem:[#allocation55_spill] sm:$0xff]  ;;  %v3765_v32 = vcombine.high %v3713_v12, %v3745_v35  ;;  %v8059_v35 = vld [vmem:[#allocation88_spill] sm:$0xff]  ;;  %v8060_v12 = vld [vmem:[#allocation86_spill] sm:$0xff] }
 0x189   : > { %v6979_v4 = vpop.permute.xlu1 %524  ;;  %v6981_v30 = vpop.permute.xlu0 %1929  ;;  %v8057_v17 = vld [vmem:[#allocation87_spill] sm:$0xff]  ;;  %v2711_v45 = vcombine.high %v6943_v52, %v6938_v46  ;;  %v3095_v46 = vcombine.high %v6881_v1, %v6867_v23  ;;  %v3629_v1 = vcombine.high %v6994_v7, %v6985_v48 }
 0x18a   : > { %v7024_v34 = vrot.slane %v3635_v11, %v4919_v37 }
 0x18b   : > { %3299 = vrot.lane.b32.xlu1 %v3146_v59, %s4728_s25  ;;  %2901 = vrot.lane.b32.xlu0 %v2847_v31, %s4731_s28  ;;  %v8051_v59 = vld [vmem:[#allocation44_spill] sm:$0xff]  ;;  %v3231_v31 = vcombine.high %v6820_v18, %v6812_v60  ;;  %v7123_v7 = vrot.slane %v3095_v46, %v4985_v57 }
 0x18c   : > { %v3667_v19 = vcombine.high %v8052_v22, %v8051_v59  ;;  %v3714_v29 = vcombine.low %v7024_v34, %v7021_v28  ;;  %v8058_v59 = vld [vmem:[#allocation85_spill] sm:$0xff] }
 0x18d   : > { %v7009_v5 = vpop.permute.xlu1 %1471  ;;  %v557_v27 = vpop.permute.xlu0 %556  ;;  %v7041_v11 = vrot.slane %v3231_v31, %v4985_v57  ;;  %v3547_v22 = vcombine.high %v8058_v59, %v8057_v17  ;;  %v8063_v31 = vld [vmem:[#allocation26_spill] sm:$0xff] }
 0x18e   : > { %v579_v2 = vsel %vm571_vm6, %v578_v50, %v557_v27  ;;  %v7032_v60 = vrot.slane %v3667_v19, %v4919_v37  ;;  %v3531_v19 = vcombine.high %v8060_v12, %v8059_v35  ;;  %v8061_v50 = vld [vmem:[#allocation6_spill] sm:$0xff]  ;;  %v8067_v35 = vld [vmem:[#allocation29_spill] sm:$0xff] }
 0x18f   : > { %3775 = vrot.lane.b32.xlu1 %v3628_v54, %s4726_s23  ;;  %3331 = vrot.lane.b32.xlu0 %v3283_v63, %s4729_s26  ;;  %v8056_v63 = vld [vmem:[#allocation58_spill] sm:$0xff]  ;;  %v560_v27 = vsel %vm559_vm0, %v359_v0, %v8061_v50  ;;  %v7089_v52 = vrot.slane %v3547_v22, %v4919_v37 }
 0x190   : > { %1097 = vmatprep.subr.mxu1 %v579_v2  ;;  %v4231_v55 = vcombine.high %v8056_v63, %v8055_v49  ;;  %v3746_v54 = vcombine.low %v7032_v60, %v7029_v44  ;;  %v8062_v2 = vld [vmem:[#allocation30_spill] sm:$0xff]  ;;  %v562_v26 = vsel %vm561_vm1, %v560_v27, %v6662_v20  ;;  %v3284_v20 = vcombine.low %v7041_v11, %v7044_v13 }
 0x191   : > { %v7034_v18 = vpop.permute.xlu1 %1901  ;;  %v7036_v16 = vpop.permute.xlu0 %1503  ;;  %v3515_v40 = vcombine.high %v8063_v31, %v8062_v2  ;;  %v564_v0 = vsel %vm563_vm2, %v562_v26, %v6725_v10  ;;  %v8066_v59 = vld [vmem:[#allocation10_spill] sm:$0xff]  ;;  %v3127_v10 = vcombine.high %v6893_v6, %v6884_v47  ;;  %v7092_v2 = vrot.slane %v3531_v19, %v4919_v37 }
 0x192   : > { %v8068_v12 = vcombine.low %v8066_v59, %v8067_v35  ;;  %v566_v27 = vsel %vm565_vm3, %v564_v0, %v6795_v8  ;;  %v8069_v8 = vld [vmem:[#allocation77_spill] sm:$0xff]  ;;  %v8070_v26 = vld [vmem:[#allocation78_spill] sm:$0xff]  ;;  %v7105_v47 = vrot.slane %v3746_v54, %v4985_v57  ;;  %v3722_v19 = vrot.slane %v3714_v29, %v4985_v57  ;;  %v8073_v0 = vld [vmem:[#allocation64_spill] sm:$0xff] }
 0x193   : > { %4267 = vrot.lane.b32.xlu1 %v4231_v55, %s4725_s22  ;;  %3807 = vrot.lane.b32.xlu0 %v3765_v32, %s4727_s24  ;;  %v8064_v55 = vld [vmem:[#allocation31_spill] sm:$0xff]  ;;  %v568_v31 = vsel %vm567_vm4, %v566_v27, %v6911_v58  ;;  %v7108_v6 = vrot.slane %v3515_v40, %v4919_v37  ;;  %v7126_v54 = vrot.slane %v3127_v10, %v4985_v57  ;;  %v8074_v59 = vld [vmem:[#allocation65_spill] sm:$0xff]  ;;  %v8092_v63 = vld [vmem:[#allocation94_spill] sm:$0xff] }
 0x194   : > { %v8065_v32 = vld [vmem:[#allocation27_spill] sm:$0xff]  ;;  %v3610_v29 = vcombine.low %v7092_v2, %v7089_v52  ;;  %v4095_v35 = vcombine.high %v8074_v59, %v8073_v0  ;;  %v8083_v0 = vld [vmem:[#allocation48_spill] sm:$0xff] }
 0x195   : > { %v2410_v56 = vpop.permute.xlu1 %2409  ;;  %v7064_v33 = vpop.permute.xlu0 %1933  ;;  %v3499_v17 = vcombine.high %v8065_v32, %v8064_v55  ;;  %v8071_v55 = vld [vmem:[#allocation99_spill] sm:$0xff]  ;;  %v8072_v32 = vld [vmem:[#allocation100_spill] sm:$0xff]  ;;  %v3148_v46 = vcombine.low %v7123_v7, %v7126_v54 }
 0x196   : > { %v7076_v50 = vsel %vm559_vm0, %v8068_v12, %v2410_v56  ;;  %v570_v56 = vsel %vm569_vm5, %v568_v31, %v6979_v4  ;;  %v580_v4 = vld [vmem:[%s7525_s1] sm:$0xff]  ;;  %v4167_v48 = vcombine.high %v8072_v32, %v8071_v55  ;;  %v3766_v12 = vcombine.low %v3722_v19, %v7105_v47 }
 0x197   : > { %3303 = vrot.lane.b32.xlu1 %v3147_v38, %s4729_s26  ;;  %2873 = vrot.lane.b32.xlu0 %v2711_v45, %s4731_s28  ;;  %v4199_v38 = vcombine.high %v8070_v26, %v8069_v8  ;;  %v7111_v58 = vrot.slane %v3499_v17, %v4919_v37  ;;  %v7148_v31 = vrot.slane %v3610_v29, %v4985_v57  ;;  %v8075_v8 = vld [vmem:[#allocation72_spill] sm:$0xff] }
 0x198   : > { %v4181_v10 = vrot.slane %v4167_v48, %v4985_v57  ;;  %v8076_v26 = vld [vmem:[#allocation32_spill] sm:$0xff]  ;;  %v8080_v48 = vld [vmem:[#allocation11_spill] sm:$0xff] }
 0x199   : > { %v7100_v45 = vpop.permute.xlu1 %1475  ;;  %v529_v23 = vpop.permute.xlu0 %528  ;;  %v3578_v27 = vcombine.low %v7111_v58, %v7108_v6  ;;  %v8081_v29 = vld [vmem:[#allocation28_spill] sm:$0xff] }
 0x19a   : > { %v572_v22 = vsel %vm571_vm6, %v570_v56, %v529_v23 }
 0x19b   : > { %3779 = vrot.lane.b32.xlu1 %v3629_v1, %s4727_s24  ;;  %3335 = vrot.lane.b32.xlu0 %v3284_v20, %s4730_s27  ;;  %v7136_v20 = vrot.slane %v4199_v38, %v4985_v57  ;;  %v4063_v38 = vcombine.high %v8076_v26, %v8075_v8  ;;  %v3285_v8 = vcombine.high %v7041_v11, %v7044_v13  ;;  %v8082_v26 = vld [vmem:[#allocation51_spill] sm:$0xff] }
 0x19c   : > { %1098 = vmatpush1.msra.mxu1 %v572_v22  ;;  %v8077_v22 = vld [vmem:[#allocation4_spill] sm:$0xff] }
 0x19d   : > { %v7130_v40 = vpop.permute.xlu1 %1905  ;;  %v1508_v17 = vpop.permute.xlu0 %1507  ;;  %4544 = vmatmul.mubr.msk.f32.vlgmr.msra.gmra.mxu1 %vm989_vm7, %v580_v4  ;;  %v4232_v1 = vcombine.low %v4181_v10, %v7136_v20  ;;  %v8078_v4 = vld [vmem:[#allocation81_spill] sm:$0xff]  ;;  %v7188_v13 = vrot.slane %v4063_v38, %v4985_v57  ;;  %v3747_v38 = vcombine.high %v7032_v60, %v7029_v44  ;;  %v3715_v44 = vcombine.high %v7024_v34, %v7021_v28  ;;  %v8093_v34 = vld [vmem:[#allocation63_spill] sm:$0xff] }
 0x19e   : > { %2035 = vmatprep.mubr.f32.mxu1 %v8040_v39  ;;  %v8079_v55 = vcombine.low %v8077_v22, %v8078_v4  ;;  %v8084_v22 = vcombine.low %v8082_v26, %v8083_v0  ;;  %v8085_v4 = vld [vmem:[#allocation73_spill] sm:$0xff] }
 0x19f   : > { %4239 = vrot.lane.b32.xlu1 %v4095_v35, %s4725_s22  ;;  %3811 = vrot.lane.b32.xlu0 %v3766_v12, %s4728_s25  ;;  %v7162_v35 = vrot.slane %v3578_v27, %v4985_v57  ;;  %v4031_v12 = vcombine.high %v8081_v29, %v8080_v48  ;;  %v8087_v48 = vld [vmem:[#allocation74_spill] sm:$0xff]  ;;  %v8088_v29 = vld [vmem:[#allocation97_spill] sm:$0xff] }
 0x1a0   : > { %v8090_v0 = vld [vmem:[#allocation93_spill] sm:$0xff] }
 0x1a1   : > { %v2382_v56 = vpop.permute.xlu1 %2381  ;;  %v7152_v23 = vpop.permute.xlu0 %1937  ;;  %v3630_v27 = vcombine.low %v7162_v35, %v7148_v31 }
 0x1a2   : > { %v7159_v32 = vsel %vm559_vm0, %v8079_v55, %v2382_v56  ;;  %v1521_v56 = vsel %vm559_vm0, %v8084_v22, %v6727_v15  ;;  %v8086_v55 = vld [vmem:[#allocation69_spill] sm:$0xff]  ;;  %v8089_v15 = vld [vmem:[#allocation95_spill] sm:$0xff]  ;;  %v8091_v22 = vld [vmem:[#allocation96_spill] sm:$0xff] }
 0x1a3   : > { %3307 = vrot.lane.b32.xlu1 %v3148_v46, %s4730_s27  ;;  %4271 = vrot.lane.b32.xlu0 %v4232_v1, %s4726_s23  ;;  %v4151_v59 = vcombine.high %v8086_v55, %v8085_v4  ;;  %v4135_v46 = vcombine.high %v8088_v29, %v8087_v48  ;;  %v1522_v1 = vsel %vm561_vm1, %v1521_v56, %v6797_v21 }
 0x1a4   : > { %v4119_v26 = vcombine.high %v8090_v0, %v8089_v15  ;;  %v4103_v3 = vcombine.high %v8092_v63, %v8091_v22  ;;  %v1523_v4 = vsel %vm563_vm2, %v1522_v1, %v6871_v9  ;;  %v4045_v21 = vrot.slane %v4031_v12, %v4985_v57  ;;  %v8097_v22 = vld [vmem:[#allocation54_spill] sm:$0xff] }
 0x1a5   : > { %v7183_v49 = vpop.permute.xlu1 %1479  ;;  %v7185_v11 = vpop.permute.xlu0 %2413  ;;  %v1524_v55 = vsel %vm565_vm3, %v1523_v4, %v6963_v41  ;;  %v3767_v63 = vcombine.high %v3722_v19, %v7105_v47  ;;  %v7207_v48 = vrot.slane %v4151_v59, %v4919_v37  ;;  %v7210_v9 = vrot.slane %v4135_v46, %v4919_v37  ;;  %v8094_v59 = vld [vmem:[#allocation53_spill] sm:$0xff]  ;;  %v8096_v46 = vld [vmem:[#allocation62_spill] sm:$0xff] }
 0x1a6   : > { %v1525_v56 = vsel %vm567_vm4, %v1524_v55, %v7036_v16  ;;  %v4096_v12 = vcombine.low %v4045_v21, %v7188_v13  ;;  %v7219_v60 = vrot.slane %v4119_v26, %v4919_v37  ;;  %v7222_v16 = vrot.slane %v4103_v3, %v4919_v37  ;;  %v8095_v3 = vld [vmem:[#allocation59_spill] sm:$0xff]  ;;  %v8098_v4 = vld [vmem:[#allocation101_spill] sm:$0xff] }
 0x1a7   : > { %3783 = vrot.lane.b32.xlu1 %v3630_v27, %s4728_s25  ;;  %3339 = vrot.lane.b32.xlu0 %v3285_v8, %s4731_s28  ;;  %v1526_v41 = vsel %vm569_vm5, %v1525_v56, %v1508_v17  ;;  %v3149_v19 = vcombine.high %v7123_v7, %v7126_v54  ;;  %v3761_v17 = vrot.slane %v3747_v38, %v4985_v57  ;;  %v8099_v38 = vld [vmem:[#allocation52_spill] sm:$0xff]  ;;  %v8100_v56 = vld [vmem:[#allocation102_spill] sm:$0xff] }
 0x1a8   : > { %v4214_v28 = vcombine.low %v7210_v9, %v7207_v48  ;;  %v4015_v29 = vcombine.high %v8094_v59, %v8093_v34  ;;  %v3999_v1 = vcombine.high %v8096_v46, %v8095_v3  ;;  %v4233_v26 = vcombine.high %v4181_v10, %v7136_v20  ;;  %v8101_v20 = vld [vmem:[#allocation61_spill] sm:$0xff]  ;;  %v8102_v10 = vld [vmem:[#allocation60_spill] sm:$0xff] }
 0x1a9   : > { %v7213_v27 = vpop.permute.xlu1 %1909  ;;  %v1512_v8 = vpop.permute.xlu0 %1511  ;;  %v4182_v7 = vcombine.low %v7222_v16, %v7219_v60  ;;  %v3729_v54 = vrot.slane %v3715_v44, %v4985_v57  ;;  %v3983_v55 = vcombine.high %v8098_v4, %v8097_v22 }
 0x1aa   : > { %v1527_v47 = vsel %vm571_vm6, %v1526_v41, %v1512_v8  ;;  %v3611_v41 = vcombine.high %v7092_v2, %v7089_v52  ;;  %v8103_v8 = vcombine.low %v8101_v20, %v8102_v10  ;;  %v4029_v34 = vrot.slane %v4015_v29, %v4919_v37 }
 0x1ab   : > { %4243 = vrot.lane.b32.xlu1 %v4096_v12, %s4726_s23  ;;  %3815 = vrot.lane.b32.xlu0 %v3767_v63, %s4729_s26  ;;  %v3967_v63 = vcombine.high %v8100_v56, %v8099_v38  ;;  %v3768_v44 = vcombine.low %v3729_v54, %v3761_v17  ;;  %v4013_v59 = vrot.slane %v3999_v1, %v4919_v37  ;;  %v4545_v56 = vld [vmem:[%s7525_s1 + $0x10] sm:$0xff] }
 0x1ac   : > { %1563 = vmatprep.subr.mxu0 %v1527_v47  ;;  %v1514_v12 = vsel %vm559_vm0, %v8103_v8, %v6773_v61  ;;  %v3631_v47 = vcombine.high %v7162_v35, %v7148_v31  ;;  %v4222_v52 = vrot.slane %v4214_v28, %v4985_v57  ;;  %v3579_v2 = vcombine.high %v7111_v58, %v7108_v6  ;;  %v8105_v31 = vld [vmem:[#allocation24_spill] sm:$0xff]  ;;  %v8107_v8 = vld [vmem:[#allocation13_spill] sm:$0xff] }
 0x1ad   : > { %v7236_v15 = vpop.permute.xlu1 %2385  ;;  %v7238_v0 = vpop.permute.xlu0 %1941  ;;  %v4190_v1 = vrot.slane %v4182_v7, %v4985_v57  ;;  %v3981_v22 = vrot.slane %v3967_v63, %v4919_v37  ;;  %v3625_v6 = vrot.slane %v3611_v41, %v4985_v57  ;;  %v4078_v58 = vcombine.low %v4013_v59, %v4029_v34 }
 0x1ae   : > { %v4097_v38 = vcombine.high %v4045_v21, %v7188_v13  ;;  %v3769_v20 = vcombine.high %v3729_v54, %v3761_v17  ;;  %v4079_v17 = vcombine.high %v4013_v59, %v4029_v34 }
 0x1af   : > { %3311 = vrot.lane.b32.xlu1 %v3149_v19, %s4731_s28  ;;  %4275 = vrot.lane.b32.xlu0 %v4233_v26, %s4727_s24  ;;  %v1515_v19 = vsel %vm561_vm1, %v1514_v12, %v6849_v42  ;;  %v8104_v26 = vld [vmem:[#allocation12_spill] sm:$0xff]  ;;  %v3997_v42 = vrot.slane %v3983_v55, %v4919_v37  ;;  %v4234_v37 = vcombine.low %v4190_v1, %v4222_v52  ;;  %v8108_v12 = vld [vmem:[#allocation15_spill] sm:$0xff] }
 0x1b0   : > { %v1516_v61 = vsel %vm563_vm2, %v1515_v19, %v6933_v51  ;;  %v8106_v35 = vcombine.low %v8104_v26, %v8105_v31  ;;  %v4086_v13 = vrot.slane %v4078_v58, %v4985_v57  ;;  %v8110_v26 = vld [vmem:[#allocation49_spill] sm:$0xff]  ;;  %v4093_v58 = vrot.slane %v4079_v17, %v4985_v57 }
 0x1b1   : > { %v2878_v3 = vpop.permute.xlu1 %2877  ;;  %v7263_v46 = vpop.permute.xlu0 %2417  ;;  %v1517_v28 = vsel %vm565_vm3, %v1516_v61, %v7009_v5  ;;  %v4046_v63 = vcombine.low %v3981_v22, %v3997_v42  ;;  %v8109_v61 = vld [vmem:[#allocation50_spill] sm:$0xff] }
 0x1b2   : > { %v7274_v29 = vsel %vm559_vm0, %v8106_v35, %v2878_v3  ;;  %v1518_v51 = vsel %vm567_vm4, %v1517_v28, %v7100_v45  ;;  %v3593_v45 = vrot.slane %v3579_v2, %v4985_v57  ;;  %v4235_v3 = vcombine.high %v4190_v1, %v4222_v52 }
 0x1b3   : > { %3819 = vrot.lane.b32.xlu1 %v3768_v44, %s4730_s27  ;;  %3787 = vrot.lane.b32.xlu0 %v3631_v47, %s4729_s26  ;;  %v1519_v7 = vsel %vm569_vm5, %v1518_v51, %v7183_v49  ;;  %v4054_v21 = vrot.slane %v4046_v63, %v4985_v57  ;;  %v1888_v44 = vcombine.low %v8108_v12, %v8107_v8 }
 0x1b4   : > { %v3632_v10 = vcombine.low %v3593_v45, %v3625_v6  ;;  %v4215_v47 = vcombine.high %v7210_v9, %v7207_v48  ;;  %v8111_v31 = vcombine.low %v8109_v61, %v8110_v26  ;;  %v4183_v28 = vcombine.high %v7222_v16, %v7219_v60 }
 0x1b5   : > { %v7288_v4 = vpop.permute.xlu1 %1913  ;;  %v1484_v55 = vpop.permute.xlu0 %1483  ;;  %v4098_v2 = vcombine.low %v4054_v21, %v4086_v13  ;;  %v4047_v51 = vcombine.high %v3981_v22, %v3997_v42  ;;  %v1959_v48 = vsel %vm559_vm0, %v1888_v44, %v6869_v36  ;;  %v3633_v9 = vcombine.high %v3593_v45, %v3625_v6 }
 0x1b6   : > { %v1520_v5 = vsel %vm571_vm6, %v1519_v7, %v1484_v55  ;;  %v1960_v34 = vsel %vm561_vm1, %v1959_v48, %v6981_v30  ;;  %v4099_v1 = vcombine.high %v4054_v21, %v4086_v13  ;;  %v4229_v60 = vrot.slane %v4215_v47, %v4985_v57 }
 0x1b7   : > { %4279 = vrot.lane.b32.xlu1 %v4234_v37, %s4728_s25  ;;  %4247 = vrot.lane.b32.xlu0 %v4097_v38, %s4727_s24  ;;  %v1961_v16 = vsel %vm563_vm2, %v1960_v34, %v7064_v33  ;;  %v4061_v36 = vrot.slane %v4047_v51, %v4985_v57  ;;  %v4197_v30 = vrot.slane %v4183_v28, %v4985_v57  ;;  %s4593_s24 = sshll.u32 %s8130_s12, 4 }
 0x1b8   : > { %1564 = vmatpush1.msra.mxu0 %v1520_v5  ;;  %v1962_v42 = vsel %vm565_vm3, %v1961_v16, %v7152_v23  ;;  %v8112_v23 = vld [vmem:[#allocation35_spill] sm:$0xff]  ;;  %v8113_v5 = vld [vmem:[#allocation37_spill] sm:$0xff] }
 0x1b9   : > { %v7298_v49 = vpop.permute.xlu1 %2389  ;;  %v1946_v41 = vpop.permute.xlu0 %1945  ;;  %4546 = vmatmul.mubr.msk.f32.vlgmr.msra.gmra.mxu0 %vm989_vm7, %v4545_v56  ;;  %v1963_v22 = vsel %vm567_vm4, %v1962_v42, %v7238_v0  ;;  %v4100_v37 = vcombine.low %v4061_v36, %v4093_v58  ;;  %v4236_v33 = vcombine.low %v4197_v30, %v4229_v60  ;;  %v1752_v56 = vcombine.low %v8113_v5, %v8112_v23 }
 0x1ba   : > { %2519 = vmatprep.mubr.f32.mxu0 %v8040_v39  ;;  %v1964_v6 = vsel %vm569_vm5, %v1963_v22, %v1946_v41  ;;  %v4101_v0 = vcombine.high %v4061_v36, %v4093_v58  ;;  %v4237_v45 = vcombine.high %v4197_v30, %v4229_v60  ;;  %v4565_v30 = vld [vmem:[%s7525_s1 + $0x20] sm:$0xff] }
 0x1bb   : > { %3823 = vrot.lane.b32.xlu1 %v3769_v20, %s4731_s28  ;;  %3791 = vrot.lane.b32.xlu0 %v3632_v10, %s4730_s27  ;;  %v1952_v41 = vsel %vm559_vm0, %v1752_v56, %v6961_v43  ;;  %v4563_v43 = vld [vmem:[%s7525_s1 + $0x18] sm:$0xff] }
 0x1bc   : > { %v1953_v20 = vsel %vm561_vm1, %v1952_v41, %v7034_v18 }
 0x1bd   : > { %v2850_v54 = vpop.permute.xlu1 %2849  ;;  %v7310_v19 = vpop.permute.xlu0 %2421  ;;  %v1954_v21 = vsel %vm563_vm2, %v1953_v20, %v7130_v40 }
 0x1be   : > { %v7316_v35 = vsel %vm559_vm0, %v8111_v31, %v2850_v54  ;;  %v1955_v8 = vsel %vm565_vm3, %v1954_v21, %v7213_v27 }
 0x1bf   : > { %4283 = vrot.lane.b32.xlu1 %v4235_v3, %s4729_s26  ;;  %4251 = vrot.lane.b32.xlu0 %v4098_v2, %s4728_s25  ;;  %v1956_v12 = vsel %vm567_vm4, %v1955_v8, %v7288_v4  ;;  %v2444_v3 = vsel %vm561_vm1, %v7076_v50, %v7185_v11  ;;  %v2437_v11 = vsel %vm561_vm1, %v7159_v32, %v7236_v15 }
 0x1c0   : > { %v2445_v26 = vsel %vm563_vm2, %v2444_v3, %v7263_v46 }
 0x1c1   : > { %v1918_v59 = vpop.permute.xlu1 %1917  ;;  %v7326_v52 = vpop.permute.xlu0 %2881  ;;  %v2446_v31 = vsel %vm565_vm3, %v2445_v26, %v7310_v19  ;;  %v2438_v19 = vsel %vm563_vm2, %v2437_v11, %v7298_v49 }
 0x1c2   : > { %v1957_v44 = vsel %vm569_vm5, %v1956_v12, %v1918_v59 }
 0x1c3   : > { %4255 = vrot.lane.b32.xlu1 %v4099_v1, %s4729_s26  ;;  %3795 = vrot.lane.b32.xlu0 %v3633_v9, %s4731_s28 }
 0x1c5   : > { %v2394_v7 = vpop.permute.xlu1 %2393  ;;  %v1950_v55 = vpop.permute.xlu0 %1949 }
 0x1c6   : > { %v1965_v38 = vsel %vm571_vm6, %v1964_v6, %v1950_v55  ;;  %v2439_v58 = vsel %vm565_vm3, %v2438_v19, %v2394_v7  ;;  %v2912_v7 = vsel %vm561_vm1, %v7274_v29, %v7326_v52 }
 0x1c7   : > { %4259 = vrot.lane.b32.xlu1 %v4100_v37, %s4730_s27  ;;  %4287 = vrot.lane.b32.xlu0 %v4236_v33, %s4730_s27  ;;  %s204_s27 = scalar_lea.vmem %s7526_s2, %s4593_s24 }
 0x1c8   : > { %2001 = vmatprep.subr.mxu1 %v1965_v38 }
 0x1c9   : > { %v7346_v57 = vpop.permute.xlu1 %2853  ;;  %v2426_v63 = vpop.permute.xlu0 %2425 }
 0x1ca   : > { %v2447_v28 = vsel %vm567_vm4, %v2446_v31, %v2426_v63  ;;  %v2905_v29 = vsel %vm561_vm1, %v7316_v35, %v7346_v57 }
 0x1cb   : > { %4263 = vrot.lane.b32.xlu1 %v4101_v0, %s4731_s28  ;;  %4291 = vrot.lane.b32.xlu0 %v4237_v45, %s4731_s28  ;;  %s4541_s28 = sshll.u32 %s8130_s12, 3 }
 0x1cc   : > { %s212_s4 = scalar_lea.vmem %s7527_s3, %s4541_s28 }
 0x1cd   : > { %v7354_v10 = vpop.permute.xlu1 %3315  ;;  %v2886_v13 = vpop.permute.xlu0 %2885 }
 0x1ce   : > { %v2913_v33 = vsel %vm563_vm2, %v2912_v7, %v2886_v13 }
 0x1d1   : > { %v2398_v47 = vpop.permute.xlu1 %2397  ;;  %v1922_v17 = vpop.permute.xlu0 %1921 }
 0x1d2   : > { %v1958_v18 = vsel %vm571_vm6, %v1957_v44, %v1922_v17  ;;  %v2440_v60 = vsel %vm567_vm4, %v2439_v58, %v2398_v47  ;;  %v4567_v17 = vld [vmem:[%s7525_s1 + $0x28] sm:$0xff] }
 0x1d3   : > { %2002 = vmatpush1.msra.mxu1 %v1958_v18  ;;  %v8114_v18 = vld [vmem:[#allocation104_spill] sm:$0xff] }
 0x1d4   : > { %4564 = vmatmul.mubr.msk.f32.vlgmr.msra.gmra.mxu1 %vm989_vm7, %v4563_v43 }
 0x1d5   : > { %v2858_v40 = vpop.permute.xlu1 %2857  ;;  %v2430_v54 = vpop.permute.xlu0 %2429  ;;  %2987 = vmatprep.mubr.f32.mxu1 %v8040_v39 }
 0x1d6   : > { %v2448_v51 = vsel %vm569_vm5, %v2447_v28, %v2430_v54  ;;  %v2906_v13 = vsel %vm563_vm2, %v2905_v29, %v2858_v40  ;;  %v8115_v40 = vld [vmem:[#allocation103_spill] sm:$0xff] }
 0x1d7   : > { %v3278_v54 = vcombine.low %v8115_v40, %v8114_v18 }
 0x1d9   : > { %v7369_v27 = vpop.permute.xlu1 %3287  ;;  %v2890_v4 = vpop.permute.xlu0 %2889 }
 0x1da   : > { %v2914_v38 = vsel %vm565_vm3, %v2913_v33, %v2890_v4 }
 0x1dd   : > { %v2402_v2 = vpop.permute.xlu1 %2401  ;;  %v7374_v61 = vpop.permute.xlu0 %3319 }
 0x1de   : > { %v2441_v16 = vsel %vm569_vm5, %v2440_v60, %v2402_v2  ;;  %v3349_v2 = vsel %vm559_vm0, %v3278_v54, %v7354_v10 }
 0x1df   : > { %v3350_v26 = vsel %vm561_vm1, %v3349_v2, %v7374_v61 }
 0x1e1   : > { %v2862_v48 = vpop.permute.xlu1 %2861  ;;  %v2434_v9 = vpop.permute.xlu0 %2433 }
 0x1e2   : > { %v2449_v34 = vsel %vm571_vm6, %v2448_v51, %v2434_v9  ;;  %v2907_v21 = vsel %vm565_vm3, %v2906_v13, %v2862_v48  ;;  %v3142_v9 = vcombine.low %v6698_v62, %v6701_v53 }
 0x1e3   : > { %2485 = vmatprep.subr.mxu0 %v2449_v34 }
 0x1e4   : > { %v3342_v61 = vsel %vm559_vm0, %v3142_v9, %v7369_v27 }
 0x1e5   : > { %v7383_v59 = vpop.permute.xlu1 %3291  ;;  %v2894_v50 = vpop.permute.xlu0 %2893 }
 0x1e6   : > { %v2915_v23 = vsel %vm567_vm4, %v2914_v38, %v2894_v50 }
 0x1e9   : > { %v7388_v46 = vpop.permute.xlu1 %3799  ;;  %v3324_v1 = vpop.permute.xlu0 %3323 }
 0x1ea   : > { %v3351_v51 = vsel %vm563_vm2, %v3350_v26, %v3324_v1  ;;  %v3343_v1 = vsel %vm561_vm1, %v3342_v61, %v7383_v59  ;;  %v4589_v61 = vld [vmem:[%s7525_s1 + $0x40] sm:$0xff] }
 0x1ed   : > { %v2866_v42 = vpop.permute.xlu1 %2865  ;;  %v2406_v36 = vpop.permute.xlu0 %2405 }
 0x1ee   : > { %v2442_v32 = vsel %vm571_vm6, %v2441_v16, %v2406_v36  ;;  %v2908_v8 = vsel %vm567_vm4, %v2907_v21, %v2866_v42 }
 0x1ef   : > { %2486 = vmatpush1.msra.mxu0 %v2442_v32  ;;  %v4585_v32 = vld [vmem:[%s7525_s1 + $0x30] sm:$0xff] }
 0x1f0   : > { %4566 = vmatmul.mubr.msk.f32.vlgmr.msra.gmra.mxu0 %vm989_vm7, %v4565_v30 }
 0x1f1   : > { %v3296_v15 = vpop.permute.xlu1 %3295  ;;  %v2898_v22 = vpop.permute.xlu0 %2897  ;;  %3425 = vmatprep.mubr.f32.mxu0 %v8040_v39 }
 0x1f2   : > { %v2916_v5 = vsel %vm569_vm5, %v2915_v23, %v2898_v22  ;;  %v3344_v16 = vsel %vm563_vm2, %v3343_v1, %v3296_v15  ;;  %v8116_v15 = vcombine.low %v6129_v24, %v6108_v25  ;;  %v8117_v25 = vld [vmem:[#allocation68_spill] sm:$0xff] }
 0x1f3   : > { %v8118_v24 = vcombine.low %v8035_v14, %v8117_v25  ;;  %v4587_v14 = vld [vmem:[%s7525_s1 + $0x38] sm:$0xff] }
 0x1f5   : > { %v7401_v49 = vpop.permute.xlu1 %3771  ;;  %v3328_v6 = vpop.permute.xlu0 %3327 }
 0x1f6   : > { %v3352_v48 = vsel %vm565_vm3, %v3351_v51, %v3328_v6  ;;  %v3833_v6 = vsel %vm559_vm0, %v8116_v15, %v7388_v46  ;;  %v3826_v46 = vsel %vm559_vm0, %v8118_v24, %v7401_v49 }
 0x1f9   : > { %v2870_v55 = vpop.permute.xlu1 %2869  ;;  %v3804_v37 = vpop.permute.xlu0 %3803 }
 0x1fa   : > { %v2909_v12 = vsel %vm569_vm5, %v2908_v8, %v2870_v55  ;;  %v3834_v7 = vsel %vm561_vm1, %v3833_v6, %v3804_v37 }
 0x1fd   : > { %v3300_v56 = vpop.permute.xlu1 %3299  ;;  %v2902_v63 = vpop.permute.xlu0 %2901 }
 0x1fe   : > { %v2917_v0 = vsel %vm571_vm6, %v2916_v5, %v2902_v63  ;;  %v3345_v62 = vsel %vm565_vm3, %v3344_v16, %v3300_v56 }
 0x1ff   : > { %2953 = vmatprep.subr.mxu1 %v2917_v0 }
 0x201   : > { %v7411_v45 = vpop.permute.xlu1 %3775  ;;  %v3332_v41 = vpop.permute.xlu0 %3331 }
 0x202   : > { %v3353_v34 = vsel %vm567_vm4, %v3352_v48, %v3332_v41  ;;  %v3827_v37 = vsel %vm561_vm1, %v3826_v46, %v7411_v45  ;;  %v8119_v45 = vld [vmem:[#allocation58_spill] sm:$0xff] }
 0x205   : > { %v7416_v52 = vpop.permute.xlu1 %4267  ;;  %v3808_v20 = vpop.permute.xlu0 %3807 }
 0x206   : > { %v3835_v38 = vsel %vm563_vm2, %v3834_v7, %v3808_v20 }
 0x209   : > { %v3304_v44 = vpop.permute.xlu1 %3303  ;;  %v2874_v47 = vpop.permute.xlu0 %2873 }
 0x20a   : > { %v2910_v43 = vsel %vm571_vm6, %v2909_v12, %v2874_v47  ;;  %v3346_v53 = vsel %vm567_vm4, %v3345_v62, %v3304_v44  ;;  %v8120_v47 = vld [vmem:[#allocation55_spill] sm:$0xff] }
 0x20b   : > { %2954 = vmatpush1.msra.mxu1 %v2910_v43 }
 0x20c   : > { %4568 = vmatmul.mubr.msk.f32.vlgmr.msra.gmra.mxu1 %vm989_vm7, %v4567_v17  ;;  %v8121_v17 = vcombine.low %v8119_v45, %v8120_v47 }
 0x20d   : > { %v3780_v35 = vpop.permute.xlu1 %3779  ;;  %v3336_v57 = vpop.permute.xlu0 %3335  ;;  %3909 = vmatprep.mubr.f32.mxu1 %v8040_v39 }
 0x20e   : > { %v3354_v50 = vsel %vm569_vm5, %v3353_v34, %v3336_v57  ;;  %v3828_v20 = vsel %vm563_vm2, %v3827_v37, %v3780_v35  ;;  %v4301_v43 = vsel %vm559_vm0, %v8121_v17, %v7416_v52  ;;  %v8122_v35 = vld [vmem:[#allocation65_spill] sm:$0xff]  ;;  %v8123_v57 = vld [vmem:[#allocation64_spill] sm:$0xff] }
 0x20f   : > { %v8124_v18 = vcombine.low %v8122_v35, %v8123_v57 }
 0x211   : > { %v4240_v4 = vpop.permute.xlu1 %4239  ;;  %v3812_v3 = vpop.permute.xlu0 %3811 }
 0x212   : > { %v3836_v23 = vsel %vm565_vm3, %v3835_v38, %v3812_v3  ;;  %v4294_v40 = vsel %vm559_vm0, %v8124_v18, %v4240_v4 }
 0x215   : > { %v3308_v31 = vpop.permute.xlu1 %3307  ;;  %v4272_v28 = vpop.permute.xlu0 %4271 }
 0x216   : > { %v3347_v42 = vsel %vm569_vm5, %v3346_v53, %v3308_v31  ;;  %v4302_v54 = vsel %vm561_vm1, %v4301_v43, %v4272_v28 }
 0x219   : > { %v3784_v11 = vpop.permute.xlu1 %3783  ;;  %v3340_v19 = vpop.permute.xlu0 %3339 }
 0x21a   : > { %v3355_v10 = vsel %vm571_vm6, %v3354_v50, %v3340_v19  ;;  %v3829_v13 = vsel %vm565_vm3, %v3828_v20, %v3784_v11 }
 0x21b   : > { %3391 = vmatprep.subr.mxu0 %v3355_v10 }
 0x21d   : > { %v4244_v58 = vpop.permute.xlu1 %4243  ;;  %v3816_v60 = vpop.permute.xlu0 %3815 }
 0x21e   : > { %v3837_v5 = vsel %vm567_vm4, %v3836_v23, %v3816_v60  ;;  %v4295_v3 = vsel %vm561_vm1, %v4294_v40, %v4244_v58 }
 0x221   : > { %v3312_v36 = vpop.permute.xlu1 %3311  ;;  %v4276_v30 = vpop.permute.xlu0 %4275 }
 0x222   : > { %v3348_v27 = vsel %vm571_vm6, %v3347_v42, %v3312_v36  ;;  %v4303_v31 = vsel %vm563_vm2, %v4302_v54, %v4276_v30 }
 0x223   : > { %3392 = vmatpush1.msra.mxu0 %v3348_v27 }
 0x224   : > { %4586 = vmatmul.mubr.msk.f32.vlgmr.msra.gmra.mxu0 %vm989_vm7, %v4585_v32 }
 0x225   : > { %v3820_v59 = vpop.permute.xlu1 %3819  ;;  %v3788_v22 = vpop.permute.xlu0 %3787  ;;  %4377 = vmatprep.mubr.f32.mxu0 %v8040_v39 }
 0x226   : > { %v3838_v56 = vsel %vm569_vm5, %v3837_v5, %v3820_v59  ;;  %v3830_v21 = vsel %vm567_vm4, %v3829_v13, %v3788_v22 }
 0x229   : > { %v4280_v55 = vpop.permute.xlu1 %4279  ;;  %v4248_v33 = vpop.permute.xlu0 %4247 }
 0x22a   : > { %v4296_v51 = vsel %vm563_vm2, %v4295_v3, %v4248_v33  ;;  %v4304_v48 = vsel %vm565_vm3, %v4303_v31, %v4280_v55 }
 0x22d   : > { %v3824_v63 = vpop.permute.xlu1 %3823  ;;  %v3792_v39 = vpop.permute.xlu0 %3791 }
 0x22e   : > { %v3839_v0 = vsel %vm571_vm6, %v3838_v56, %v3824_v63  ;;  %v3831_v8 = vsel %vm569_vm5, %v3830_v21, %v3792_v39 }
 0x22f   : > { %3875 = vmatprep.subr.mxu1 %v3839_v0 }
 0x231   : > { %v4284_v41 = vpop.permute.xlu1 %4283  ;;  %v4252_v29 = vpop.permute.xlu0 %4251 }
 0x232   : > { %v4297_v52 = vsel %vm565_vm3, %v4296_v51, %v4252_v29  ;;  %v4305_v9 = vsel %vm567_vm4, %v4304_v48, %v4284_v41 }
 0x235   : > { %v4256_v12 = vpop.permute.xlu1 %4255  ;;  %v3796_v44 = vpop.permute.xlu0 %3795 }
 0x236   : > { %v3832_v49 = vsel %vm571_vm6, %v3831_v8, %v3796_v44  ;;  %v4298_v4 = vsel %vm567_vm4, %v4297_v52, %v4256_v12 }
 0x237   : > { %3876 = vmatpush1.msra.mxu1 %v3832_v49 }
 0x238   : > { %4588 = vmatmul.mubr.msk.f32.vlgmr.msra.gmra.mxu1 %vm989_vm7, %v4587_v14 }
 0x239   : > { %v4260_v2 = vpop.permute.xlu1 %4259  ;;  %v4288_v26 = vpop.permute.xlu0 %4287 }
 0x23a   : > { %v4299_v34 = vsel %vm569_vm5, %v4298_v4, %v4260_v2  ;;  %v4306_v28 = vsel %vm569_vm5, %v4305_v9, %v4288_v26 }
 0x23d   : > { %v4264_v50 = vpop.permute.xlu1 %4263  ;;  %v4292_v11 = vpop.permute.xlu0 %4291 }
 0x23e   : > { %v4300_v19 = vsel %vm571_vm6, %v4299_v34, %v4264_v50  ;;  %v4307_v10 = vsel %vm571_vm6, %v4306_v28, %v4292_v11 }
 0x23f   : > { %4343 = vmatprep.subr.mxu0 %v4307_v10 }
 0x240   : > { %4344 = vmatpush1.msra.mxu0 %v4300_v19 }
 0x241   : > { %4590 = vmatmul.mubr.msk.f32.vlgmr.msra.gmra.mxu0 %vm989_vm7, %v4589_v61 }
 0x245   : > { %v1059_v1 = vpop.f32.mrf.mxu0 }
 0x247   : > { %v1061_v58 = vpop.f32.mrf.mxu0 }
 0x25d   : > { %v1133_v60 = vpop.f32.mrf.mxu1 }
 0x25e   : > { %v1134_v53 = vadd.f32 %v1133_v60, %v1059_v1 }
 0x25f   : > { %v1135_v16 = vpop.f32.mrf.mxu1 }
 0x260   : > { %v1136_v42 = vadd.f32 %v1135_v16, %v1061_v58 }
 0x279   : > { %v1599_v62 = vpop.f32.mrf.mxu0 }
 0x27a   : > { %v1604_v32 = vadd.f32 %v1599_v62, %v1134_v53 }
 0x27b   : > { %v1601_v36 = vpop.f32.mrf.mxu0 }
 0x27c   : > { %v1605_v27 = vadd.f32 %v1601_v36, %v1136_v42 }
 0x294   : > { %v2037_v30 = vpop.f32.mrf.mxu1 }
 0x295   : > { %v2042_v15 = vadd.f32 %v2037_v30, %v1604_v32 }
 0x296   : > { %v2039_v59 = vpop.f32.mrf.mxu1 }
 0x297   : > { %v2043_v6 = vadd.f32 %v2039_v59, %v1605_v27 }
 0x2b0   : > { %v2521_v22 = vpop.f32.mrf.mxu0 }
 0x2b1   : > { %v2526_v33 = vadd.f32 %v2521_v22, %v2042_v15 }
 0x2b2   : > { %v2523_v7 = vpop.f32.mrf.mxu0 }
 0x2b3   : > { %v2527_v38 = vadd.f32 %v2523_v7, %v2043_v6 }
 0x2cc   : > { %v2989_v55 = vpop.f32.mrf.mxu1 }
 0x2cd   : > { %v2994_v56 = vadd.f32 %v2989_v55, %v2526_v33 }
 0x2ce   : > { %v2991_v23 = vpop.f32.mrf.mxu1 }
 0x2cf   : > { %v2995_v63 = vadd.f32 %v2991_v23, %v2527_v38 }
 0x2e4   : > { %v3427_v5 = vpop.f32.mrf.mxu0 }
 0x2e5   : > { %v3432_v25 = vadd.f32 %v3427_v5, %v2994_v56 }
 0x2e6   : > { %v3429_v39 = vpop.f32.mrf.mxu0 }
 0x2e7   : > { %v3433_v24 = vadd.f32 %v3429_v39, %v2995_v63 }
 0x2f8   : > { %v3911_v0 = vpop.f32.mrf.mxu1 }
 0x2f9   : > { %v3916_v37 = vadd.f32 %v3911_v0, %v3432_v25 }
 0x2fa   : > { %v3913_v46 = vpop.f32.mrf.mxu1 }
 0x2fb   : > { %v3917_v29 = vadd.f32 %v3913_v46, %v3433_v24 }
 0x301   : > { %v4379_v41 = vpop.f32.mrf.mxu0 }
 0x302   : > { %v4384_v20 = vadd.f32 %v4379_v41, %v3916_v37 }
 0x303   : > { %v4381_v13 = vpop.f32.mrf.mxu0 }
 0x304   : > { %4386 = vst [vmem:[%s204_s27] sm:$0xff] %v4384_v20  ;;  %v4385_v21 = vadd.f32 %v4381_v13, %v3917_v29 }
 0x306   : > { %4387 = vst [vmem:[%s204_s27 + $0x8] sm:$0xff] %v4385_v21  ;;  %v4388_v8 = vadd.f32 %v4385_v21, %v4384_v20 }
 0x308   : > { %4389 = vadd.xlane.f32.xlu0 %v4388_v8 }
 0x391   : > { %v4390_v12 = vpop.xlane.xlu0 %4389 }
 0x392   : > { %v4391_v44 = vmul.f32 0.00390625, %v4390_v12 }
 0x394   : > { %v4392_v14 = vsub.f32 %v4384_v20, %v4391_v44  ;;  %v4393_v49 = vsub.f32 %v4385_v21, %v4391_v44 }
 0x396   : > { %v4394_v45 = vmul.f32 %v4392_v14, %v4392_v14  ;;  %v4395_v47 = vmul.f32 %v4393_v49, %v4393_v49 }
 0x398   : > { %v4396_v17 = vadd.f32 %v4395_v47, %v4394_v45 }
 0x39a   : > { %4397 = vadd.xlane.f32.xlu1 %v4396_v17 }
 0x423   : > { %v4398_v43 = vpop.xlane.xlu1 %4397 }
 0x424   : > { %v4400_v35 = vsel %vm4399_vm8, %v4390_v12, %v4398_v43 }
 0x425   : > { %4402 = vst.msk [vmem:[%s212_s4] sm:$0xff] %vm4401_vm9, %v4400_v35 }
 0x426 PF: > { %s14_s14 = sadd.s32 1, %s4719_s14   ;;  %s8125_s12 = smov %s4715_s13 }
 0x427   : > { %p11_p5 = scmp.ge.s32.totalorder %s14_s14, 4   ;;  %s8126_s13 = smov %s8128_s15 }
 0x429   :  { %13 = sbr.rel (!%p11_p5) target bundleno = 2 (0x2), region = 81 }

</bundles_post_ra>
